<compile_context>
chip_gen: v5e
topology: v5e:2x2
jax: 0.10.0
libtpu: 0.0.40
codegen_flags: <defaults>
</compile_context>

<pallas_src>
import math

import jax
import jax.numpy as jnp
from jax.experimental import pallas as pl
from jax.experimental.pallas import tpu as pltpu


# --------------------------------------------------------------------------- kernel
def _make_block_kernel(mode, Ho, Wo, Cin, Cmid, Cout):
    """mode: 'pad'  -> x_ref block is (1, H+2, W+2, Cin)   (stride == 1)
             'taps' -> x_ref block is (1, 9, Ho*Wo, Cin)   (stride folded by wrapper)."""
    HoWo = Ho * Wo

    def kernel(x_ref, w1_ref, s1_ref, t1_ref, w2_ref, s2_ref, t2_ref,
               wsc_ref, ssc_ref, tsc_ref, o_ref, p1_ref):
        # ---- conv1 (3x3) + bn1 + relu -------------------------------------
        acc1 = jnp.zeros((HoWo, Cmid), jnp.float32)
        if mode == "pad":
            x = x_ref[0]                                      # (H+2, W+2, Cin)
            for dy in range(3):
                for dx in range(3):
                    patch = x[dy:dy + Ho, dx:dx + Wo, :].reshape(HoWo, Cin)
                    acc1 = acc1 + jnp.dot(patch, w1_ref[3 * dy + dx],
                                          preferred_element_type=jnp.float32)
            xc = x[1:1 + Ho, 1:1 + Wo, :].reshape(HoWo, Cin)  # center tap for skip
        else:  # 'taps'
            for t in range(9):
                acc1 = acc1 + jnp.dot(x_ref[0, t], w1_ref[t],
                                      preferred_element_type=jnp.float32)
            xc = x_ref[0, 4]                                  # center tap for skip
        y1 = jnp.maximum(acc1 * s1_ref[...] + t1_ref[...], 0.0)   # (HoWo, Cmid)

        # ---- zero-padded scratch so conv2 (stride 1, pad 1) is contiguous --
        p1_ref[...] = jnp.zeros_like(p1_ref)
        p1_ref[1:Ho + 1, 1:Wo + 1, :] = y1.reshape(Ho, Wo, Cmid)

        # ---- conv2 (3x3, stride 1) + bn2 (alpha pre-folded) -----------------
        acc2 = jnp.zeros((HoWo, Cout), jnp.float32)
        for dy in range(3):
            for dx in range(3):
                patch = p1_ref[dy:dy + Ho, dx:dx + Wo, :].reshape(HoWo, Cmid)
                acc2 = acc2 + jnp.dot(patch, w2_ref[3 * dy + dx],
                                      preferred_element_type=jnp.float32)
        main = acc2 * s2_ref[...] + t2_ref[...]               # = alpha * bn2(conv2)

        # ---- shortcut (1x1 conv, or identity via eye); (1-alpha) pre-folded --
        skip = jnp.dot(xc, wsc_ref[...], preferred_element_type=jnp.float32)
        skip = skip * ssc_ref[...] + tsc_ref[...]             # = (1-alpha) * shortcut(x)

        # ---- mix + relu ------------------------------------------------------
        o_ref[0] = jnp.maximum(main + skip, 0.0).reshape(Ho, Wo, Cout)

    return kernel


# --------------------------------------------------------------------------- wrapper
def _fold_bn(bn, eps):
    gamma, beta, mean, var = bn
    scale = gamma / jnp.sqrt(var + eps)
    shift = beta - mean * scale
    return scale.astype(jnp.float32), shift.astype(jnp.float32)


def learnable_skip_basic_block(x_nchw, params, *, stride=1, eps=1e-5):
    """Fused Pallas forward. x_nchw: (B, Cin, H, W) f32 -> (B, Cout, Ho, Wo) f32."""
    B, Cin, H, W = x_nchw.shape
    w1 = params["conv1_w"]                       # (Cmid, Cin, 3, 3)  OIHW
    w2 = params["conv2_w"]                       # (Cout, Cmid, 3, 3)
    Cmid, Cout = w1.shape[0], w2.shape[0]
    alpha = params["alpha"].astype(jnp.float32)

    Ho = (H + 2 - 3) // stride + 1
    Wo = (W + 2 - 3) // stride + 1

    # --- fold BatchNorm (+ alpha mixing) into per-channel scale / shift ------
    s1, t1 = _fold_bn(params["bn1"], eps)
    s2, t2 = _fold_bn(params["bn2"], eps)
    s2, t2 = alpha * s2, alpha * t2
    if params["shortcut"] is not None:
        wsc = params["shortcut"]["conv_w"].reshape(Cout, Cin).T              # (Cin, Cout)
        ssc, tsc = _fold_bn(params["shortcut"]["bn"], eps)
        ssc, tsc = (1.0 - alpha) * ssc, (1.0 - alpha) * tsc
    else:
        wsc = jnp.eye(Cin, dtype=jnp.float32)                                # identity skip
        ssc = (1.0 - alpha) * jnp.ones((Cout,), jnp.float32)
        tsc = jnp.zeros((Cout,), jnp.float32)

    # --- weights to (tap, Cin, Cout); scale/shift to (1, C) ------------------
    w1_r = jnp.transpose(w1, (2, 3, 1, 0)).reshape(9, Cin, Cmid)
    w2_r = jnp.transpose(w2, (2, 3, 1, 0)).reshape(9, Cmid, Cout)
    s1, t1 = s1.reshape(1, Cmid), t1.reshape(1, Cmid)
    s2, t2 = s2.reshape(1, Cout), t2.reshape(1, Cout)
    ssc, tsc = ssc.reshape(1, Cout), tsc.reshape(1, Cout)

    # --- input prep: NCHW -> NHWC, spatial zero-pad ---------------------------
    x = jnp.transpose(x_nchw, (0, 2, 3, 1)).astype(jnp.float32)   # (B, H, W, Cin)
    x_pad = jnp.pad(x, ((0, 0), (1, 1), (1, 1), (0, 0)))
    if stride == 1:
        mode = "pad"
        x_in = x_pad                                              # (B, H+2, W+2, Cin)
    else:
        mode = "taps"
        taps = [x_pad[:, dy:dy + stride * Ho:stride, dx:dx + stride * Wo:stride, :]
                for dy in range(3) for dx in range(3)]
        x_in = jnp.stack(taps, axis=1).reshape(B, 9, Ho * Wo, Cin)

    kernel = _make_block_kernel(mode, Ho, Wo, Cin, Cmid, Cout)

    def resident(shape):            # full-array block, constant index_map -> stays in VMEM
        return pl.BlockSpec(shape, lambda b: (0,) * len(shape))

    x_block = (1,) + tuple(x_in.shape[1:])
    x_ndim = x_in.ndim

    out_nhwc = pl.pallas_call(
        kernel,
        out_shape=jax.ShapeDtypeStruct((B, Ho, Wo, Cout), jnp.float32),
        grid=(B,),
        in_specs=[
            pl.BlockSpec(x_block, lambda b: (b,) + (0,) * (x_ndim - 1)),
            resident(w1_r.shape), resident(s1.shape), resident(t1.shape),
            resident(w2_r.shape), resident(s2.shape), resident(t2.shape),
            resident(wsc.shape), resident(ssc.shape), resident(tsc.shape),
        ],
        out_specs=pl.BlockSpec((1, Ho, Wo, Cout), lambda b: (b, 0, 0, 0)),
        scratch_shapes=[pltpu.VMEM((Ho + 2, Wo + 2, Cmid), jnp.float32)],
        compiler_params=pltpu.CompilerParams(
            dimension_semantics=("parallel",),   # v7x: shard batch across the 2 TCs
        ),
    )(x_in, w1_r, s1, t1, w2_r, s2, t2, wsc, ssc, tsc)

    return jnp.transpose(out_nhwc, (0, 3, 1, 2))                  # back to NCHW


# --------------------------------------------------------------------------- reference
def reference_forward(x_nchw, params, *, stride=1, eps=1e-5):
    hi = jax.lax.Precision.HIGHEST

    def conv(x, w, s, pad):
        return jax.lax.conv_general_dilated(
            x, w, (s, s), ((pad, pad), (pad, pad)),
            dimension_numbers=("NCHW", "OIHW", "NCHW"), precision=hi)

    def bn(x, p):
        g, b, m, v = p
        inv = g / jnp.sqrt(v + eps)
        return x * inv[None, :, None, None] + (b - m * inv)[None, :, None, None]

    out = jax.nn.relu(bn(conv(x_nchw, params["conv1_w"], stride, 1), params["bn1"]))
    out = bn(conv(out, params["conv2_w"], 1, 1), params["bn2"])
    if params["shortcut"] is not None:
        skip = bn(conv(x_nchw, params["shortcut"]["conv_w"], stride, 0),
                  params["shortcut"]["bn"])
    else:
        skip = x_nchw
    a = params["alpha"]
    return jax.nn.relu(a * out + (1.0 - a) * skip)


# --------------------------------------------------------------------------- params
def init_params(key, in_planes, planes, stride):
    ks = iter(jax.random.split(key, 16))

    def conv_w(k, cout, cin, ksz):
        fan_in = cin * ksz * ksz
        return jax.random.normal(k, (cout, cin, ksz, ksz), jnp.float32) * math.sqrt(2.0 / fan_in)

    def bn_p(k, c):
        k1, k2, k3, k4 = jax.random.split(k, 4)
        return (jax.random.uniform(k1, (c,), jnp.float32, 0.5, 1.5),   # gamma
                jax.random.normal(k2, (c,), jnp.float32) * 0.1,        # beta
                jax.random.normal(k3, (c,), jnp.float32) * 0.1,        # running mean
                jax.random.uniform(k4, (c,), jnp.float32, 0.5, 1.5))   # running var

    params = {
        "conv1_w": conv_w(next(ks), planes, in_planes, 3),
        "bn1": bn_p(next(ks), planes),
        "conv2_w": conv_w(next(ks), planes, planes, 3),
        "bn2": bn_p(next(ks), planes),
        "alpha": jnp.asarray(0.3, jnp.float32),
    }
    if stride != 1 or in_planes != planes:
        params["shortcut"] = {"conv_w": conv_w(next(ks), planes, in_planes, 1),
                              "bn": bn_p(next(ks), planes)}
    else:
        params["shortcut"] = None
    return params


# --------------------------------------------------------------------------- main
if __name__ == "__main__":
    key = jax.random.PRNGKey(0)
    kx, kp1, kp2 = jax.random.split(key, 3)

    B, C, H, W = 2, 16, 16, 16
    x = jax.random.normal(kx, (B, C, H, W), jnp.float32)

    # Case A: stride=1, in_planes == planes  ->  identity shortcut.
    pA = init_params(kp1, in_planes=C, planes=C, stride=1)
    outA = jax.block_until_ready(learnable_skip_basic_block(x, pA, stride=1))
    refA = reference_forward(x, pA, stride=1)
    assert outA.shape == (B, C, H, W), outA.shape
    errA = float(jnp.max(jnp.abs(outA - refA)))
    assert errA < 1e-2, errA

    # Case B: stride=2, channel expansion  ->  1x1-conv + BN projection shortcut.
    planes = 32
    pB = init_params(kp2, in_planes=C, planes=planes, stride=2)
    outB = jax.block_until_ready(learnable_skip_basic_block(x, pB, stride=2))
    refB = reference_forward(x, pB, stride=2)
    assert outB.shape == (B, planes, H // 2, W // 2), outB.shape
    errB = float(jnp.max(jnp.abs(outB - refB)))
    assert errB < 1e-2, errB

    print("KERNEL_OK")
</pallas_src>

<mosaic_0001>
module attributes {stable_mosaic.version = 11 : i64} {
  func.func @kernel(%arg0: i32, %arg1: memref<1x18x18x16xf32, #tpu.memory_space<vmem>>, %arg2: memref<9x16x16xf32, #tpu.memory_space<vmem>>, %arg3: memref<1x16xf32, #tpu.memory_space<vmem>>, %arg4: memref<1x16xf32, #tpu.memory_space<vmem>>, %arg5: memref<9x16x16xf32, #tpu.memory_space<vmem>>, %arg6: memref<1x16xf32, #tpu.memory_space<vmem>>, %arg7: memref<1x16xf32, #tpu.memory_space<vmem>>, %arg8: memref<16x16xf32, #tpu.memory_space<vmem>>, %arg9: memref<1x16xf32, #tpu.memory_space<vmem>>, %arg10: memref<1x16xf32, #tpu.memory_space<vmem>>, %arg11: memref<1x16x16x16xf32, #tpu.memory_space<vmem>>, %arg12: memref<18x18x16xf32, #tpu.memory_space<vmem>>) attributes {dimension_semantics = [#tpu.dimension_semantics<parallel>], iteration_bounds = array<i64: 2>, scalar_prefetch = 0 : i64, scratch_operands = 1 : i64, tpu.core_type = #tpu.core_type<tc>, window_params = [{transform_indices = @transform_0, window_bounds = array<i64: 1, 18, 18, 16>}, {pipeline_mode = #tpu.pipeline_mode<synchronous>, transform_indices = @transform_1, window_bounds = array<i64: 9, 16, 16>}, {pipeline_mode = #tpu.pipeline_mode<synchronous>, transform_indices = @transform_2, window_bounds = array<i64: 1, 16>}, {pipeline_mode = #tpu.pipeline_mode<synchronous>, transform_indices = @transform_3, window_bounds = array<i64: 1, 16>}, {pipeline_mode = #tpu.pipeline_mode<synchronous>, transform_indices = @transform_4, window_bounds = array<i64: 9, 16, 16>}, {pipeline_mode = #tpu.pipeline_mode<synchronous>, transform_indices = @transform_5, window_bounds = array<i64: 1, 16>}, {pipeline_mode = #tpu.pipeline_mode<synchronous>, transform_indices = @transform_6, window_bounds = array<i64: 1, 16>}, {pipeline_mode = #tpu.pipeline_mode<synchronous>, transform_indices = @transform_7, window_bounds = array<i64: 16, 16>}, {pipeline_mode = #tpu.pipeline_mode<synchronous>, transform_indices = @transform_8, window_bounds = array<i64: 1, 16>}, {pipeline_mode = #tpu.pipeline_mode<synchronous>, transform_indices = @transform_9, window_bounds = array<i64: 1, 16>}, {transform_indices = @transform_10, window_bounds = array<i64: 1, 16, 16, 16>}]} {
    %cst = arith.constant 0.000000e+00 : f32
    %0 = vector.broadcast %cst : f32 to vector<256x16xf32>
    %c0 = arith.constant 0 : index
    %c0_0 = arith.constant 0 : index
    %c0_1 = arith.constant 0 : index
    %c0_2 = arith.constant 0 : index
    %1 = vector.load %arg1[%c0, %c0_0, %c0_1, %c0_2] : memref<1x18x18x16xf32, #tpu.memory_space<vmem>>, vector<1x18x18x16xf32>
    %2 = vector.shape_cast %1 : vector<1x18x18x16xf32> to vector<18x18x16xf32>
    %3 = vector.extract_strided_slice %2 {offsets = [0, 0, 0], sizes = [16, 16, 16], strides = [1, 1, 1]} : vector<18x18x16xf32> to vector<16x16x16xf32>
    %4 = vector.shape_cast %3 : vector<16x16x16xf32> to vector<256x16xf32>
    %c0_3 = arith.constant 0 : index
    %c0_4 = arith.constant 0 : index
    %c0_5 = arith.constant 0 : index
    %5 = vector.load %arg2[%c0_3, %c0_4, %c0_5] : memref<9x16x16xf32, #tpu.memory_space<vmem>>, vector<1x16x16xf32>
    %6 = vector.shape_cast %5 : vector<1x16x16xf32> to vector<16x16xf32>
    %cst_6 = arith.constant dense<0.000000e+00> : vector<256x16xf32>
    %7 = tpu.matmul %4, %6, %cst_6 {dimension_numbers = #tpu.dot_dimension_numbers<[1], [0], [0], [1], [0, 0, 1, 1], [], []>} : vector<256x16xf32>, vector<16x16xf32>, vector<256x16xf32> -> vector<256x16xf32>
    %8 = arith.addf %0, %7 : vector<256x16xf32>
    %9 = vector.extract_strided_slice %2 {offsets = [0, 1, 0], sizes = [16, 16, 16], strides = [1, 1, 1]} : vector<18x18x16xf32> to vector<16x16x16xf32>
    %10 = vector.shape_cast %9 : vector<16x16x16xf32> to vector<256x16xf32>
    %c1 = arith.constant 1 : index
    %c0_7 = arith.constant 0 : index
    %c0_8 = arith.constant 0 : index
    %11 = vector.load %arg2[%c1, %c0_7, %c0_8] : memref<9x16x16xf32, #tpu.memory_space<vmem>>, vector<1x16x16xf32>
    %12 = vector.shape_cast %11 : vector<1x16x16xf32> to vector<16x16xf32>
    %cst_9 = arith.constant dense<0.000000e+00> : vector<256x16xf32>
    %13 = tpu.matmul %10, %12, %cst_9 {dimension_numbers = #tpu.dot_dimension_numbers<[1], [0], [0], [1], [0, 0, 1, 1], [], []>} : vector<256x16xf32>, vector<16x16xf32>, vector<256x16xf32> -> vector<256x16xf32>
    %14 = arith.addf %8, %13 : vector<256x16xf32>
    %15 = vector.extract_strided_slice %2 {offsets = [0, 2, 0], sizes = [16, 16, 16], strides = [1, 1, 1]} : vector<18x18x16xf32> to vector<16x16x16xf32>
    %16 = vector.shape_cast %15 : vector<16x16x16xf32> to vector<256x16xf32>
    %c2 = arith.constant 2 : index
    %c0_10 = arith.constant 0 : index
    %c0_11 = arith.constant 0 : index
    %17 = vector.load %arg2[%c2, %c0_10, %c0_11] : memref<9x16x16xf32, #tpu.memory_space<vmem>>, vector<1x16x16xf32>
    %18 = vector.shape_cast %17 : vector<1x16x16xf32> to vector<16x16xf32>
    %cst_12 = arith.constant dense<0.000000e+00> : vector<256x16xf32>
    %19 = tpu.matmul %16, %18, %cst_12 {dimension_numbers = #tpu.dot_dimension_numbers<[1], [0], [0], [1], [0, 0, 1, 1], [], []>} : vector<256x16xf32>, vector<16x16xf32>, vector<256x16xf32> -> vector<256x16xf32>
    %20 = arith.addf %14, %19 : vector<256x16xf32>
    %21 = vector.extract_strided_slice %2 {offsets = [1, 0, 0], sizes = [16, 16, 16], strides = [1, 1, 1]} : vector<18x18x16xf32> to vector<16x16x16xf32>
    %22 = vector.shape_cast %21 : vector<16x16x16xf32> to vector<256x16xf32>
    %c3 = arith.constant 3 : index
    %c0_13 = arith.constant 0 : index
    %c0_14 = arith.constant 0 : index
    %23 = vector.load %arg2[%c3, %c0_13, %c0_14] : memref<9x16x16xf32, #tpu.memory_space<vmem>>, vector<1x16x16xf32>
    %24 = vector.shape_cast %23 : vector<1x16x16xf32> to vector<16x16xf32>
    %cst_15 = arith.constant dense<0.000000e+00> : vector<256x16xf32>
    %25 = tpu.matmul %22, %24, %cst_15 {dimension_numbers = #tpu.dot_dimension_numbers<[1], [0], [0], [1], [0, 0, 1, 1], [], []>} : vector<256x16xf32>, vector<16x16xf32>, vector<256x16xf32> -> vector<256x16xf32>
    %26 = arith.addf %20, %25 : vector<256x16xf32>
    %27 = vector.extract_strided_slice %2 {offsets = [1, 1, 0], sizes = [16, 16, 16], strides = [1, 1, 1]} : vector<18x18x16xf32> to vector<16x16x16xf32>
    %28 = vector.shape_cast %27 : vector<16x16x16xf32> to vector<256x16xf32>
    %c4 = arith.constant 4 : index
    %c0_16 = arith.constant 0 : index
    %c0_17 = arith.constant 0 : index
    %29 = vector.load %arg2[%c4, %c0_16, %c0_17] : memref<9x16x16xf32, #tpu.memory_space<vmem>>, vector<1x16x16xf32>
    %30 = vector.shape_cast %29 : vector<1x16x16xf32> to vector<16x16xf32>
    %cst_18 = arith.constant dense<0.000000e+00> : vector<256x16xf32>
    %31 = tpu.matmul %28, %30, %cst_18 {dimension_numbers = #tpu.dot_dimension_numbers<[1], [0], [0], [1], [0, 0, 1, 1], [], []>} : vector<256x16xf32>, vector<16x16xf32>, vector<256x16xf32> -> vector<256x16xf32>
    %32 = arith.addf %26, %31 : vector<256x16xf32>
    %33 = vector.extract_strided_slice %2 {offsets = [1, 2, 0], sizes = [16, 16, 16], strides = [1, 1, 1]} : vector<18x18x16xf32> to vector<16x16x16xf32>
    %34 = vector.shape_cast %33 : vector<16x16x16xf32> to vector<256x16xf32>
    %c5 = arith.constant 5 : index
    %c0_19 = arith.constant 0 : index
    %c0_20 = arith.constant 0 : index
    %35 = vector.load %arg2[%c5, %c0_19, %c0_20] : memref<9x16x16xf32, #tpu.memory_space<vmem>>, vector<1x16x16xf32>
    %36 = vector.shape_cast %35 : vector<1x16x16xf32> to vector<16x16xf32>
    %cst_21 = arith.constant dense<0.000000e+00> : vector<256x16xf32>
    %37 = tpu.matmul %34, %36, %cst_21 {dimension_numbers = #tpu.dot_dimension_numbers<[1], [0], [0], [1], [0, 0, 1, 1], [], []>} : vector<256x16xf32>, vector<16x16xf32>, vector<256x16xf32> -> vector<256x16xf32>
    %38 = arith.addf %32, %37 : vector<256x16xf32>
    %39 = vector.extract_strided_slice %2 {offsets = [2, 0, 0], sizes = [16, 16, 16], strides = [1, 1, 1]} : vector<18x18x16xf32> to vector<16x16x16xf32>
    %40 = vector.shape_cast %39 : vector<16x16x16xf32> to vector<256x16xf32>
    %c6 = arith.constant 6 : index
    %c0_22 = arith.constant 0 : index
    %c0_23 = arith.constant 0 : index
    %41 = vector.load %arg2[%c6, %c0_22, %c0_23] : memref<9x16x16xf32, #tpu.memory_space<vmem>>, vector<1x16x16xf32>
    %42 = vector.shape_cast %41 : vector<1x16x16xf32> to vector<16x16xf32>
    %cst_24 = arith.constant dense<0.000000e+00> : vector<256x16xf32>
    %43 = tpu.matmul %40, %42, %cst_24 {dimension_numbers = #tpu.dot_dimension_numbers<[1], [0], [0], [1], [0, 0, 1, 1], [], []>} : vector<256x16xf32>, vector<16x16xf32>, vector<256x16xf32> -> vector<256x16xf32>
    %44 = arith.addf %38, %43 : vector<256x16xf32>
    %45 = vector.extract_strided_slice %2 {offsets = [2, 1, 0], sizes = [16, 16, 16], strides = [1, 1, 1]} : vector<18x18x16xf32> to vector<16x16x16xf32>
    %46 = vector.shape_cast %45 : vector<16x16x16xf32> to vector<256x16xf32>
    %c7 = arith.constant 7 : index
    %c0_25 = arith.constant 0 : index
    %c0_26 = arith.constant 0 : index
    %47 = vector.load %arg2[%c7, %c0_25, %c0_26] : memref<9x16x16xf32, #tpu.memory_space<vmem>>, vector<1x16x16xf32>
    %48 = vector.shape_cast %47 : vector<1x16x16xf32> to vector<16x16xf32>
    %cst_27 = arith.constant dense<0.000000e+00> : vector<256x16xf32>
    %49 = tpu.matmul %46, %48, %cst_27 {dimension_numbers = #tpu.dot_dimension_numbers<[1], [0], [0], [1], [0, 0, 1, 1], [], []>} : vector<256x16xf32>, vector<16x16xf32>, vector<256x16xf32> -> vector<256x16xf32>
    %50 = arith.addf %44, %49 : vector<256x16xf32>
    %51 = vector.extract_strided_slice %2 {offsets = [2, 2, 0], sizes = [16, 16, 16], strides = [1, 1, 1]} : vector<18x18x16xf32> to vector<16x16x16xf32>
    %52 = vector.shape_cast %51 : vector<16x16x16xf32> to vector<256x16xf32>
    %c8 = arith.constant 8 : index
    %c0_28 = arith.constant 0 : index
    %c0_29 = arith.constant 0 : index
    %53 = vector.load %arg2[%c8, %c0_28, %c0_29] : memref<9x16x16xf32, #tpu.memory_space<vmem>>, vector<1x16x16xf32>
    %54 = vector.shape_cast %53 : vector<1x16x16xf32> to vector<16x16xf32>
    %cst_30 = arith.constant dense<0.000000e+00> : vector<256x16xf32>
    %55 = tpu.matmul %52, %54, %cst_30 {dimension_numbers = #tpu.dot_dimension_numbers<[1], [0], [0], [1], [0, 0, 1, 1], [], []>} : vector<256x16xf32>, vector<16x16xf32>, vector<256x16xf32> -> vector<256x16xf32>
    %56 = arith.addf %50, %55 : vector<256x16xf32>
    %57 = vector.extract_strided_slice %2 {offsets = [1, 1, 0], sizes = [16, 16, 16], strides = [1, 1, 1]} : vector<18x18x16xf32> to vector<16x16x16xf32>
    %58 = vector.shape_cast %57 : vector<16x16x16xf32> to vector<256x16xf32>
    %c0_31 = arith.constant 0 : index
    %c0_32 = arith.constant 0 : index
    %59 = vector.load %arg3[%c0_31, %c0_32] : memref<1x16xf32, #tpu.memory_space<vmem>>, vector<1x16xf32>
    %60 = vector.broadcast %59 : vector<1x16xf32> to vector<256x16xf32>
    %61 = arith.mulf %56, %60 : vector<256x16xf32>
    %c0_33 = arith.constant 0 : index
    %c0_34 = arith.constant 0 : index
    %62 = vector.load %arg4[%c0_33, %c0_34] : memref<1x16xf32, #tpu.memory_space<vmem>>, vector<1x16xf32>
    %63 = vector.broadcast %62 : vector<1x16xf32> to vector<256x16xf32>
    %64 = arith.addf %61, %63 : vector<256x16xf32>
    %cst_35 = arith.constant 0.000000e+00 : f32
    %65 = vector.broadcast %cst_35 : f32 to vector<256x16xf32>
    %66 = arith.maximumf %64, %65 : vector<256x16xf32>
    %cst_36 = arith.constant 0.000000e+00 : f32
    %67 = vector.broadcast %cst_36 : f32 to vector<18x18x16xf32>
    %c0_37 = arith.constant 0 : index
    %c0_38 = arith.constant 0 : index
    %c0_39 = arith.constant 0 : index
    %68 = vector.load %arg12[%c0_37, %c0_38, %c0_39] : memref<18x18x16xf32, #tpu.memory_space<vmem>>, vector<18x18x16xf32>
    tpu.vector_store %arg12[%c0_37, %c0_38, %c0_39], %67 {strides = array<i32>} : memref<18x18x16xf32, #tpu.memory_space<vmem>>, vector<18x18x16xf32>,
    %69 = vector.shape_cast %66 : vector<256x16xf32> to vector<16x16x16xf32>
    %c1_40 = arith.constant 1 : index
    %c1_41 = arith.constant 1 : index
    %c0_42 = arith.constant 0 : index
    %70 = vector.load %arg12[%c1_40, %c1_41, %c0_42] : memref<18x18x16xf32, #tpu.memory_space<vmem>>, vector<16x16x16xf32>
    tpu.vector_store %arg12[%c1_40, %c1_41, %c0_42], %69 {strides = array<i32>} : memref<18x18x16xf32, #tpu.memory_space<vmem>>, vector<16x16x16xf32>,
    %cst_43 = arith.constant 0.000000e+00 : f32
    %71 = vector.broadcast %cst_43 : f32 to vector<256x16xf32>
    %c0_44 = arith.constant 0 : index
    %c0_45 = arith.constant 0 : index
    %c0_46 = arith.constant 0 : index
    %72 = vector.load %arg12[%c0_44, %c0_45, %c0_46] : memref<18x18x16xf32, #tpu.memory_space<vmem>>, vector<16x16x16xf32>
    %73 = vector.shape_cast %72 : vector<16x16x16xf32> to vector<256x16xf32>
    %c0_47 = arith.constant 0 : index
    %c0_48 = arith.constant 0 : index
    %c0_49 = arith.constant 0 : index
    %74 = vector.load %arg5[%c0_47, %c0_48, %c0_49] : memref<9x16x16xf32, #tpu.memory_space<vmem>>, vector<1x16x16xf32>
    %75 = vector.shape_cast %74 : vector<1x16x16xf32> to vector<16x16xf32>
    %cst_50 = arith.constant dense<0.000000e+00> : vector<256x16xf32>
    %76 = tpu.matmul %73, %75, %cst_50 {dimension_numbers = #tpu.dot_dimension_numbers<[1], [0], [0], [1], [0, 0, 1, 1], [], []>} : vector<256x16xf32>, vector<16x16xf32>, vector<256x16xf32> -> vector<256x16xf32>
    %77 = arith.addf %71, %76 : vector<256x16xf32>
    %c0_51 = arith.constant 0 : index
    %c1_52 = arith.constant 1 : index
    %c0_53 = arith.constant 0 : index
    %78 = vector.load %arg12[%c0_51, %c1_52, %c0_53] : memref<18x18x16xf32, #tpu.memory_space<vmem>>, vector<16x16x16xf32>
    %79 = vector.shape_cast %78 : vector<16x16x16xf32> to vector<256x16xf32>
    %c1_54 = arith.constant 1 : index
    %c0_55 = arith.constant 0 : index
    %c0_56 = arith.constant 0 : index
    %80 = vector.load %arg5[%c1_54, %c0_55, %c0_56] : memref<9x16x16xf32, #tpu.memory_space<vmem>>, vector<1x16x16xf32>
    %81 = vector.shape_cast %80 : vector<1x16x16xf32> to vector<16x16xf32>
    %cst_57 = arith.constant dense<0.000000e+00> : vector<256x16xf32>
    %82 = tpu.matmul %79, %81, %cst_57 {dimension_numbers = #tpu.dot_dimension_numbers<[1], [0], [0], [1], [0, 0, 1, 1], [], []>} : vector<256x16xf32>, vector<16x16xf32>, vector<256x16xf32> -> vector<256x16xf32>
    %83 = arith.addf %77, %82 : vector<256x16xf32>
    %c0_58 = arith.constant 0 : index
    %c2_59 = arith.constant 2 : index
    %c0_60 = arith.constant 0 : index
    %84 = vector.load %arg12[%c0_58, %c2_59, %c0_60] : memref<18x18x16xf32, #tpu.memory_space<vmem>>, vector<16x16x16xf32>
    %85 = vector.shape_cast %84 : vector<16x16x16xf32> to vector<256x16xf32>
    %c2_61 = arith.constant 2 : index
    %c0_62 = arith.constant 0 : index
    %c0_63 = arith.constant 0 : index
    %86 = vector.load %arg5[%c2_61, %c0_62, %c0_63] : memref<9x16x16xf32, #tpu.memory_space<vmem>>, vector<1x16x16xf32>
    %87 = vector.shape_cast %86 : vector<1x16x16xf32> to vector<16x16xf32>
    %cst_64 = arith.constant dense<0.000000e+00> : vector<256x16xf32>
    %88 = tpu.matmul %85, %87, %cst_64 {dimension_numbers = #tpu.dot_dimension_numbers<[1], [0], [0], [1], [0, 0, 1, 1], [], []>} : vector<256x16xf32>, vector<16x16xf32>, vector<256x16xf32> -> vector<256x16xf32>
    %89 = arith.addf %83, %88 : vector<256x16xf32>
    %c1_65 = arith.constant 1 : index
    %c0_66 = arith.constant 0 : index
    %c0_67 = arith.constant 0 : index
    %90 = vector.load %arg12[%c1_65, %c0_66, %c0_67] : memref<18x18x16xf32, #tpu.memory_space<vmem>>, vector<16x16x16xf32>
    %91 = vector.shape_cast %90 : vector<16x16x16xf32> to vector<256x16xf32>
    %c3_68 = arith.constant 3 : index
    %c0_69 = arith.constant 0 : index
    %c0_70 = arith.constant 0 : index
    %92 = vector.load %arg5[%c3_68, %c0_69, %c0_70] : memref<9x16x16xf32, #tpu.memory_space<vmem>>, vector<1x16x16xf32>
    %93 = vector.shape_cast %92 : vector<1x16x16xf32> to vector<16x16xf32>
    %cst_71 = arith.constant dense<0.000000e+00> : vector<256x16xf32>
    %94 = tpu.matmul %91, %93, %cst_71 {dimension_numbers = #tpu.dot_dimension_numbers<[1], [0], [0], [1], [0, 0, 1, 1], [], []>} : vector<256x16xf32>, vector<16x16xf32>, vector<256x16xf32> -> vector<256x16xf32>
    %95 = arith.addf %89, %94 : vector<256x16xf32>
    %c1_72 = arith.constant 1 : index
    %c1_73 = arith.constant 1 : index
    %c0_74 = arith.constant 0 : index
    %96 = vector.load %arg12[%c1_72, %c1_73, %c0_74] : memref<18x18x16xf32, #tpu.memory_space<vmem>>, vector<16x16x16xf32>
    %97 = vector.shape_cast %96 : vector<16x16x16xf32> to vector<256x16xf32>
    %c4_75 = arith.constant 4 : index
    %c0_76 = arith.constant 0 : index
    %c0_77 = arith.constant 0 : index
    %98 = vector.load %arg5[%c4_75, %c0_76, %c0_77] : memref<9x16x16xf32, #tpu.memory_space<vmem>>, vector<1x16x16xf32>
    %99 = vector.shape_cast %98 : vector<1x16x16xf32> to vector<16x16xf32>
    %cst_78 = arith.constant dense<0.000000e+00> : vector<256x16xf32>
    %100 = tpu.matmul %97, %99, %cst_78 {dimension_numbers = #tpu.dot_dimension_numbers<[1], [0], [0], [1], [0, 0, 1, 1], [], []>} : vector<256x16xf32>, vector<16x16xf32>, vector<256x16xf32> -> vector<256x16xf32>
    %101 = arith.addf %95, %100 : vector<256x16xf32>
    %c1_79 = arith.constant 1 : index
    %c2_80 = arith.constant 2 : index
    %c0_81 = arith.constant 0 : index
    %102 = vector.load %arg12[%c1_79, %c2_80, %c0_81] : memref<18x18x16xf32, #tpu.memory_space<vmem>>, vector<16x16x16xf32>
    %103 = vector.shape_cast %102 : vector<16x16x16xf32> to vector<256x16xf32>
    %c5_82 = arith.constant 5 : index
    %c0_83 = arith.constant 0 : index
    %c0_84 = arith.constant 0 : index
    %104 = vector.load %arg5[%c5_82, %c0_83, %c0_84] : memref<9x16x16xf32, #tpu.memory_space<vmem>>, vector<1x16x16xf32>
    %105 = vector.shape_cast %104 : vector<1x16x16xf32> to vector<16x16xf32>
    %cst_85 = arith.constant dense<0.000000e+00> : vector<256x16xf32>
    %106 = tpu.matmul %103, %105, %cst_85 {dimension_numbers = #tpu.dot_dimension_numbers<[1], [0], [0], [1], [0, 0, 1, 1], [], []>} : vector<256x16xf32>, vector<16x16xf32>, vector<256x16xf32> -> vector<256x16xf32>
    %107 = arith.addf %101, %106 : vector<256x16xf32>
    %c2_86 = arith.constant 2 : index
    %c0_87 = arith.constant 0 : index
    %c0_88 = arith.constant 0 : index
    %108 = vector.load %arg12[%c2_86, %c0_87, %c0_88] : memref<18x18x16xf32, #tpu.memory_space<vmem>>, vector<16x16x16xf32>
    %109 = vector.shape_cast %108 : vector<16x16x16xf32> to vector<256x16xf32>
    %c6_89 = arith.constant 6 : index
    %c0_90 = arith.constant 0 : index
    %c0_91 = arith.constant 0 : index
    %110 = vector.load %arg5[%c6_89, %c0_90, %c0_91] : memref<9x16x16xf32, #tpu.memory_space<vmem>>, vector<1x16x16xf32>
    %111 = vector.shape_cast %110 : vector<1x16x16xf32> to vector<16x16xf32>
    %cst_92 = arith.constant dense<0.000000e+00> : vector<256x16xf32>
    %112 = tpu.matmul %109, %111, %cst_92 {dimension_numbers = #tpu.dot_dimension_numbers<[1], [0], [0], [1], [0, 0, 1, 1], [], []>} : vector<256x16xf32>, vector<16x16xf32>, vector<256x16xf32> -> vector<256x16xf32>
    %113 = arith.addf %107, %112 : vector<256x16xf32>
    %c2_93 = arith.constant 2 : index
    %c1_94 = arith.constant 1 : index
    %c0_95 = arith.constant 0 : index
    %114 = vector.load %arg12[%c2_93, %c1_94, %c0_95] : memref<18x18x16xf32, #tpu.memory_space<vmem>>, vector<16x16x16xf32>
    %115 = vector.shape_cast %114 : vector<16x16x16xf32> to vector<256x16xf32>
    %c7_96 = arith.constant 7 : index
    %c0_97 = arith.constant 0 : index
    %c0_98 = arith.constant 0 : index
    %116 = vector.load %arg5[%c7_96, %c0_97, %c0_98] : memref<9x16x16xf32, #tpu.memory_space<vmem>>, vector<1x16x16xf32>
    %117 = vector.shape_cast %116 : vector<1x16x16xf32> to vector<16x16xf32>
    %cst_99 = arith.constant dense<0.000000e+00> : vector<256x16xf32>
    %118 = tpu.matmul %115, %117, %cst_99 {dimension_numbers = #tpu.dot_dimension_numbers<[1], [0], [0], [1], [0, 0, 1, 1], [], []>} : vector<256x16xf32>, vector<16x16xf32>, vector<256x16xf32> -> vector<256x16xf32>
    %119 = arith.addf %113, %118 : vector<256x16xf32>
    %c2_100 = arith.constant 2 : index
    %c2_101 = arith.constant 2 : index
    %c0_102 = arith.constant 0 : index
    %120 = vector.load %arg12[%c2_100, %c2_101, %c0_102] : memref<18x18x16xf32, #tpu.memory_space<vmem>>, vector<16x16x16xf32>
    %121 = vector.shape_cast %120 : vector<16x16x16xf32> to vector<256x16xf32>
    %c8_103 = arith.constant 8 : index
    %c0_104 = arith.constant 0 : index
    %c0_105 = arith.constant 0 : index
    %122 = vector.load %arg5[%c8_103, %c0_104, %c0_105] : memref<9x16x16xf32, #tpu.memory_space<vmem>>, vector<1x16x16xf32>
    %123 = vector.shape_cast %122 : vector<1x16x16xf32> to vector<16x16xf32>
    %cst_106 = arith.constant dense<0.000000e+00> : vector<256x16xf32>
    %124 = tpu.matmul %121, %123, %cst_106 {dimension_numbers = #tpu.dot_dimension_numbers<[1], [0], [0], [1], [0, 0, 1, 1], [], []>} : vector<256x16xf32>, vector<16x16xf32>, vector<256x16xf32> -> vector<256x16xf32>
    %125 = arith.addf %119, %124 : vector<256x16xf32>
    %c0_107 = arith.constant 0 : index
    %c0_108 = arith.constant 0 : index
    %126 = vector.load %arg6[%c0_107, %c0_108] : memref<1x16xf32, #tpu.memory_space<vmem>>, vector<1x16xf32>
    %127 = vector.broadcast %126 : vector<1x16xf32> to vector<256x16xf32>
    %128 = arith.mulf %125, %127 : vector<256x16xf32>
    %c0_109 = arith.constant 0 : index
    %c0_110 = arith.constant 0 : index
    %129 = vector.load %arg7[%c0_109, %c0_110] : memref<1x16xf32, #tpu.memory_space<vmem>>, vector<1x16xf32>
    %130 = vector.broadcast %129 : vector<1x16xf32> to vector<256x16xf32>
    %131 = arith.addf %128, %130 : vector<256x16xf32>
    %c0_111 = arith.constant 0 : index
    %c0_112 = arith.constant 0 : index
    %132 = vector.load %arg8[%c0_111, %c0_112] : memref<16x16xf32, #tpu.memory_space<vmem>>, vector<16x16xf32>
    %cst_113 = arith.constant dense<0.000000e+00> : vector<256x16xf32>
    %133 = tpu.matmul %58, %132, %cst_113 {dimension_numbers = #tpu.dot_dimension_numbers<[1], [0], [0], [1], [0, 0, 1, 1], [], []>} : vector<256x16xf32>, vector<16x16xf32>, vector<256x16xf32> -> vector<256x16xf32>
    %c0_114 = arith.constant 0 : index
    %c0_115 = arith.constant 0 : index
    %134 = vector.load %arg9[%c0_114, %c0_115] : memref<1x16xf32, #tpu.memory_space<vmem>>, vector<1x16xf32>
    %135 = vector.broadcast %134 : vector<1x16xf32> to vector<256x16xf32>
    %136 = arith.mulf %133, %135 : vector<256x16xf32>
    %c0_116 = arith.constant 0 : index
    %c0_117 = arith.constant 0 : index
    %137 = vector.load %arg10[%c0_116, %c0_117] : memref<1x16xf32, #tpu.memory_space<vmem>>, vector<1x16xf32>
    %138 = vector.broadcast %137 : vector<1x16xf32> to vector<256x16xf32>
    %139 = arith.addf %136, %138 : vector<256x16xf32>
    %140 = arith.addf %131, %139 : vector<256x16xf32>
    %cst_118 = arith.constant 0.000000e+00 : f32
    %141 = vector.broadcast %cst_118 : f32 to vector<256x16xf32>
    %142 = arith.maximumf %140, %141 : vector<256x16xf32>
    %143 = vector.shape_cast %142 : vector<256x16xf32> to vector<16x16x16xf32>
    %c0_119 = arith.constant 0 : index
    %c0_120 = arith.constant 0 : index
    %c0_121 = arith.constant 0 : index
    %c0_122 = arith.constant 0 : index
    %144 = vector.load %arg11[%c0_119, %c0_120, %c0_121, %c0_122] : memref<1x16x16x16xf32, #tpu.memory_space<vmem>>, vector<1x16x16x16xf32>
    %145 = vector.shape_cast %144 : vector<1x16x16x16xf32> to vector<16x16x16xf32>
    %146 = vector.shape_cast %143 : vector<16x16x16xf32> to vector<1x16x16x16xf32>
    tpu.vector_store %arg11[%c0_119, %c0_120, %c0_121, %c0_122], %146 {strides = array<i32>} : memref<1x16x16x16xf32, #tpu.memory_space<vmem>>, vector<1x16x16x16xf32>,
    return
  }
  func.func @transform_0(%arg0: i32) -> (i32, i32, i32, i32) {
    %c0_i32 = arith.constant 0 : i32
    %c0_i32_0 = arith.constant 0 : i32
    %c0_i32_1 = arith.constant 0 : i32
    %c0_i32_2 = arith.constant 0 : i32
    return %arg0, %c0_i32, %c0_i32_0, %c0_i32_1 : i32, i32, i32, i32
  }
  func.func @transform_1(%arg0: i32) -> (i32, i32, i32) {
    %c0_i32 = arith.constant 0 : i32
    %c0_i32_0 = arith.constant 0 : i32
    %c0_i32_1 = arith.constant 0 : i32
    %c0_i32_2 = arith.constant 0 : i32
    return %c0_i32, %c0_i32_0, %c0_i32_1 : i32, i32, i32
  }
  func.func @transform_2(%arg0: i32) -> (i32, i32) {
    %c0_i32 = arith.constant 0 : i32
    %c0_i32_0 = arith.constant 0 : i32
    %c0_i32_1 = arith.constant 0 : i32
    return %c0_i32, %c0_i32_0 : i32, i32
  }
  func.func @transform_3(%arg0: i32) -> (i32, i32) {
    %c0_i32 = arith.constant 0 : i32
    %c0_i32_0 = arith.constant 0 : i32
    %c0_i32_1 = arith.constant 0 : i32
    return %c0_i32, %c0_i32_0 : i32, i32
  }
  func.func @transform_4(%arg0: i32) -> (i32, i32, i32) {
    %c0_i32 = arith.constant 0 : i32
    %c0_i32_0 = arith.constant 0 : i32
    %c0_i32_1 = arith.constant 0 : i32
    %c0_i32_2 = arith.constant 0 : i32
    return %c0_i32, %c0_i32_0, %c0_i32_1 : i32, i32, i32
  }
  func.func @transform_5(%arg0: i32) -> (i32, i32) {
    %c0_i32 = arith.constant 0 : i32
    %c0_i32_0 = arith.constant 0 : i32
    %c0_i32_1 = arith.constant 0 : i32
    return %c0_i32, %c0_i32_0 : i32, i32
  }
  func.func @transform_6(%arg0: i32) -> (i32, i32) {
    %c0_i32 = arith.constant 0 : i32
    %c0_i32_0 = arith.constant 0 : i32
    %c0_i32_1 = arith.constant 0 : i32
    return %c0_i32, %c0_i32_0 : i32, i32
  }
  func.func @transform_7(%arg0: i32) -> (i32, i32) {
    %c0_i32 = arith.constant 0 : i32
    %c0_i32_0 = arith.constant 0 : i32
    %c0_i32_1 = arith.constant 0 : i32
    return %c0_i32, %c0_i32_0 : i32, i32
  }
  func.func @transform_8(%arg0: i32) -> (i32, i32) {
    %c0_i32 = arith.constant 0 : i32
    %c0_i32_0 = arith.constant 0 : i32
    %c0_i32_1 = arith.constant 0 : i32
    return %c0_i32, %c0_i32_0 : i32, i32
  }
  func.func @transform_9(%arg0: i32) -> (i32, i32) {
    %c0_i32 = arith.constant 0 : i32
    %c0_i32_0 = arith.constant 0 : i32
    %c0_i32_1 = arith.constant 0 : i32
    return %c0_i32, %c0_i32_0 : i32, i32
  }
  func.func @transform_10(%arg0: i32) -> (i32, i32, i32, i32) {
    %c0_i32 = arith.constant 0 : i32
    %c0_i32_0 = arith.constant 0 : i32
    %c0_i32_1 = arith.constant 0 : i32
    %c0_i32_2 = arith.constant 0 : i32
    return %arg0, %c0_i32, %c0_i32_0, %c0_i32_1 : i32, i32, i32, i32
  }
}

</mosaic_0001>

<bundles_post_ra>
// kernel: tpu_custom_call.1
= control target key start
LH: loop header
LB: loop body
LE: loop exit
PB: predicated region body
PF: predicated region fallthrough
CT: control target
= control target key end

     0   :  { %15 = vsyncpa [#allocation4], 0  ;;  %s9104_s0 = inlined_call_operand.vmem [shape: f32[2,18,18,16], index: 0, kind: input, shape index: {}]   ;;  %s9105_s1 = inlined_call_operand.vmem [shape: f32[9,16,16], index: 1, kind: input, shape index: {}]   ;;  %s9106_s2 = inlined_call_operand.vmem [shape: f32[1,16], index: 2, kind: input, shape index: {}]   ;;  %s9107_s3 = inlined_call_operand.vmem [shape: f32[1,16], index: 3, kind: input, shape index: {}]   ;;  %s9108_s4 = inlined_call_operand.vmem [shape: f32[9,16,16], index: 4, kind: input, shape index: {}]   ;;  %s9109_s5 = inlined_call_operand.vmem [shape: f32[1,16], index: 5, kind: input, shape index: {}]   ;;  %s9110_s6 = inlined_call_operand.vmem [shape: f32[1,16], index: 6, kind: input, shape index: {}]   ;;  %s9111_s7 = inlined_call_operand.vmem [shape: f32[16,16], index: 7, kind: input, shape index: {}]   ;;  %s9112_s8 = inlined_call_operand.vmem [shape: f32[1,16], index: 8, kind: input, shape index: {}]   ;;  %s9113_s9 = inlined_call_operand.vmem [shape: f32[1,16], index: 9, kind: input, shape index: {}]   ;;  %s9114_s10 = inlined_call_operand.hbm [shape: f32[2,16,16,16], index: 10, kind: output, shape index: {}]  }
   0x1   :  { %17 = vsyncpa [#allocation4 + $0x1], 0  ;;  %s6018_s13 = smov 0   ;;  %s6020_s14 = smov 0  }
   0x2   :  { %s6022_s15 = smov 0   ;;  %s6024_s16 = smov 0  }
   0x3 LB: > { %s6039_s17 = sadd.s32 4294967295, %s5958_s16   ;;  %s5177_s18 = sadd.s32 4294967294, %s5958_s16   ;;  %s5958_s16 = sphi %s6024_s16, %s9529_s16   ;;  %s5954_s15 = sphi %s6022_s15, %s9528_s15   ;;  %s5950_s14 = sphi %s6020_s14, %s9527_s14   ;;  %s5946_s13 = sphi %s6018_s13, %s9526_s13  }
   0x4   : > { %s6043_s19 = sadd.s32 1, %s5958_s16   ;;  %s245_s20 = sadd.s32 1, %s5954_s15 }
   0x5   : > { %s242_s21 = ssub.s32 %s5958_s16, %s6043_s19  ;;  %p255_p0 = scmp.ne.s32.totalorder %s5954_s15, %s5950_s14 }
   0x6   : > { %p243_p1 = scmp.eq.s32.totalorder %s242_s21, 0  ;;  %p256_p2 = scmp.eq.s32.totalorder %s6039_s17, 1 }
   0x7   : > { %p261_p3 = scmp.ne.s32.totalorder %s5950_s14, %s5946_s13  ;;  %p262_p4 = scmp.eq.s32.totalorder %s5177_s18, 1 }
   0x8   : > { %s6054_s22 = scalar_select %p243_p1, %s5954_s15, %s245_s20  }
   0x9   : > { %p6056_p5 = por %p256_p2, %p255_p0  ;;  %p6060_p6 = por %p262_p4, %p261_p3 }
   0xa   : > { %p5180_p7 = scmp.ge.s32.totalorder %s5958_s16, 1  ;;  %p315_p8 = scmp.lt.s32.totalorder %s5958_s16, 3 }
   0xc   : > { %p316_p9 = pnand %p5180_p7, %p315_p8 }
   0xe   : > { %319 = sbr.rel (%p316_p9) target bundleno = 1519 (0x5ef), region = 60 }
  0x13   : > { %v5184_v0 = vld [vmem:[%s9105_s1 + $0x18] sm:$0xff]  ;;  %v5183_v1 = vld [vmem:[%s9105_s1 + $0x10] sm:$0xff]  ;;  %p353_p10 = scmp.lt.s32.totalorder %s6039_s17, 1  ;;  %v413_v2 = vld [vmem:[%s9105_s1 + $0x8] sm:$0xff]  ;;  %vm462_vm0 = vcmask 1046528   ;;  %vm546_vm1 = vcmask 130048  }
  0x14   : > { %625 = vmatpush.msra.mxu0 %v5184_v0  ;;  %5829 = vmatpush.msra.mxu3 %v5184_v0  ;;  %v5250_v3 = vld [vmem:[%s9105_s1 + $0x28] sm:$0xff]  ;;  %v5249_v4 = vld [vmem:[%s9105_s1 + $0x20] sm:$0xff]  ;;  %vm901_vm2 = vcmask 1045504   ;;  %vm2238_vm3 = vcmask 123904   ;;  %s350_s27 = sand.u32 1, %s5950_s14   ;;  %s5828_s30 = sshll.u32 %s6039_s17, 8 }
  0x15   : > { %v412_v5 = vld [vmem:[%s9105_s1] sm:$0xff]  ;;  %s354_s26 = scalar_select %p353_p10, %s6039_s17, 1  ;;  %1063 = vmatpush.msra.mxu2 %v5250_v3  ;;  %802 = vmatpush.msra.mxu1 %v413_v2  ;;  %v5318_v6 = vld [vmem:[%s9105_s1 + $0x48] sm:$0xff] }
  0x16   : > { %626 = vmatpush.msra.mxu0 %v5183_v1  ;;  %5830 = vmatpush.msra.mxu3 %v5183_v1  ;;  %s5181_s28 = sshll.u32 %s350_s27, 8  ;;  %s5111_s18 = scalar_lea.hbm %s9114_s10, %s5828_s30 }
  0x17   : > { %s5835_s29 = smul.u32 432, %s354_s26  ;;  %1064 = vmatpush.msra.mxu2 %v5249_v4  ;;  %803 = vmatpush.msra.mxu1 %v412_v5  ;;  %s5114_s17 = sshll.u32 %s5111_s18, 4  ;;  %s5115_s17 = int_to_ptr.hbm [resolvable:$true] %s5114_s17 }
  0x18   : > { %5831 = vmatpush.msrb.mxu3 %v413_v2  ;;  %1375 = vmatpush.msrb.mxu0 %v5318_v6  ;;  %s5100_s21 = scalar_lea.sflag [#allocation4], %s350_s27  ;;  %s5910_s25 = sshra.s32 %s5115_s17, 4  ;;  %s5911_s25 = int_to_ptr.hbm [resolvable:$true] %s5910_s25 }
  0x19   : > { %s6092_s12 = scalar_lea.vmem %s9104_s0, %s5835_s29  ;;  %s8755_s29 = scalar_lea.vmem [#allocation3], %s5181_s28 }
  0x1a   : > { %5832 = vmatpush.msrb.mxu3 %v412_v5  ;;  %v358_v7 = vld [vmem:[%s6092_s12] sm:$0xff]  ;;  %v359_v8 = vld [vmem:[%s6092_s12 + $0x8] sm:$0xff]  ;;  %v360_v17 = vld [vmem:[%s6092_s12 + $0x10] sm:$0x3]  ;;  %s5112_s20 = sshll.u32 %s8755_s29, 4  ;;  %s5912_s26 = scalar_lea.hbm %s5911_s25, 256  ;;  %s5113_s20 = int_to_ptr.vmem [resolvable:$true] %s5112_s20 }
  0x1b   : > { %v6097_v9 = vld [vmem:[%s6092_s12 + $0x120] sm:$0xff]  ;;  %v463_v10 = vrot.slane %v358_v7, 1  ;;  %v464_v11 = vrot.slane %v359_v8, 1  ;;  %v6100_v12 = vld [vmem:[%s6092_s12 + $0x128] sm:$0xff]  ;;  %v902_v14 = vrot.slane %v358_v7, 2  ;;  %5217 = vmatmul.msk.f32.vlgmr.msra.gmra.mxu1 %vm546_vm1, %v358_v7  ;;  %v903_v16 = vrot.slane %v359_v8, 2  ;;  %p5913_p11 = scmp.ne.s32.totalorder %s5911_s25, %s5912_s26  ;;  %p5917_p0 = scmp.lt.s32.totalorder %s5911_s25, %s9114_s10 }
  0x1c   : > { %v523_v13 = vrot.slane %v6097_v9, 1  ;;  %v524_v15 = vrot.slane %v6100_v12, 1  ;;  %v6108_v19 = vld [vmem:[%s6092_s12 + $0x130] sm:$0x3]  ;;  %v466_v22 = vrot.slane %v360_v17, 1  ;;  %v905_v24 = vrot.slane %v360_v17, 2 }
  0x1d   : > { %v465_v18 = vsel %vm462_vm0, %v463_v10, %v464_v11  ;;  %v904_v21 = vsel %vm901_vm2, %v902_v14, %v903_v16  ;;  %v526_v23 = vrot.slane %v6108_v19, 1  ;;  %v6126_v28 = vld [vmem:[%s6092_s12 + $0x18] sm:$0xff]  ;;  %v6129_v29 = vld [vmem:[%s6092_s12 + $0x20] sm:$0xff]  ;;  %v363_v41 = vld [vmem:[%s6092_s12 + $0x28] sm:$0x3]  ;;  %p5914_p12 = pnand %p5913_p11, %p6056_p5  ;;  %s5916_s11 = scalar_lea.hbm %s9114_s10, 512 }
  0x1e   : > { %5185 = vmatmul.msk.f32.vlgmr.msra.gmra.mxu0 %vm546_vm1, %v465_v18  ;;  %v6112_v20 = vsel %vm462_vm0, %v523_v13, %v524_v15  ;;  %5251 = vmatmul.msk.f32.vlgmr.msra.gmra.mxu2 %vm546_vm1, %v904_v21  ;;  %v467_v25 = vsel %vm462_vm0, %v464_v11, %v466_v22  ;;  %v906_v27 = vsel %vm901_vm2, %v903_v16, %v905_v24  ;;  %v6132_v30 = vld [vmem:[%s6092_s12 + $0x138] sm:$0xff]  ;;  %v6135_v31 = vld [vmem:[%s6092_s12 + $0x140] sm:$0xff]  ;;  %v468_v32 = vrot.slane %v6126_v28, 1  ;;  %v6160_v42 = vld [vmem:[%s6092_s12 + $0x148] sm:$0x3]  ;;  %p5918_p1 = scmp.lt.s32.totalorder %s5916_s11, %s5912_s26 }
  0x1f   : > { %9238 = vst [vmem:[#allocation6_spill] sm:$0xff] %v6112_v20  ;;  %5209 = vmatmul.msk.f32.vlgmr.msra.gmra.mxu3 %vm546_vm1, %v6112_v20  ;;  %v6122_v26 = vsel %vm462_vm0, %v524_v15, %v526_v23  ;;  %v469_v33 = vrot.slane %v6129_v29, 1  ;;  %v528_v34 = vrot.slane %v6132_v30, 1  ;;  %v529_v35 = vrot.slane %v6135_v31, 1  ;;  %v6181_v49 = vld [vmem:[%s6092_s12 + $0x30] sm:$0xff]  ;;  %v6184_v50 = vld [vmem:[%s6092_s12 + $0x38] sm:$0xff]  ;;  %p5915_p13 = pneg %p5914_p12 }
  0x20   : > { %5833 = vmatpush.msra.mxu3 %v5250_v3  ;;  %9239 = vst [vmem:[#allocation7_spill] sm:$0xff] %v6122_v26  ;;  %v907_v36 = vrot.slane %v6126_v28, 2  ;;  %v908_v37 = vrot.slane %v6129_v29, 2  ;;  %v471_v43 = vrot.slane %v363_v41, 1  ;;  %v531_v44 = vrot.slane %v6160_v42, 1  ;;  %v6187_v51 = vld [vmem:[%s6092_s12 + $0x150] sm:$0xff]  ;;  %p5919_p2 = por %p5918_p1, %p5917_p0 }
  0x21   : > { %v6148_v38 = vsel %vm462_vm0, %v468_v32, %v469_v33  ;;  %v6153_v39 = vsel %vm462_vm0, %v528_v34, %v529_v35  ;;  %v910_v45 = vrot.slane %v363_v41, 2  ;;  %v6190_v52 = vld [vmem:[%s6092_s12 + $0x158] sm:$0xff]  ;;  %v473_v53 = vrot.slane %v6181_v49, 1  ;;  %v366_v62 = vld [vmem:[%s6092_s12 + $0x40] sm:$0x3]  ;;  %v6238_v6 = vld [vmem:[%s6092_s12 + $0x48] sm:$0xff] }
  0x22   : > { %5834 = vmatpush.msra.mxu3 %v5249_v4  ;;  %9240 = vst [vmem:[#allocation8_spill] sm:$0xff] %v6148_v38  ;;  %v6156_v40 = vsel %vm901_vm2, %v907_v36, %v908_v37  ;;  %v6170_v46 = vsel %vm462_vm0, %v469_v33, %v471_v43  ;;  %v6175_v47 = vsel %vm462_vm0, %v529_v35, %v531_v44  ;;  %v474_v54 = vrot.slane %v6184_v50, 1  ;;  %v6217_v63 = vld [vmem:[%s6092_s12 + $0x160] sm:$0x3]  ;;  %v6241_v7 = vld [vmem:[%s6092_s12 + $0x50] sm:$0xff]  ;;  %p5920_p3 = pnand %p5919_p2, %p5915_p13 }
  0x23   : > { %5218 = vmatmul.msk.f32.gmra.mxu1 %vm546_vm1, %v359_v8  ;;  %9241 = vst [vmem:[#allocation9_spill] sm:$0xff] %v6153_v39  ;;  %v6178_v48 = vsel %vm901_vm2, %v908_v37, %v910_v45  ;;  %v533_v55 = vrot.slane %v6187_v51, 1  ;;  %v534_v56 = vrot.slane %v6190_v52, 1  ;;  %v912_v57 = vrot.slane %v6181_v49, 2  ;;  %v6244_v8 = vld [vmem:[%s6092_s12 + $0x168] sm:$0xff]  ;;  %v6247_v10 = vld [vmem:[%s6092_s12 + $0x170] sm:$0xff] }
  0x24   : > { %9242 = vst [vmem:[#allocation10_spill] sm:$0xff] %v6170_v46  ;;  %v913_v58 = vrot.slane %v6184_v50, 2  ;;  %v6205_v59 = vsel %vm462_vm0, %v473_v53, %v474_v54  ;;  %v476_v0 = vrot.slane %v366_v62, 1  ;;  %v536_v1 = vrot.slane %v6217_v63, 1  ;;  %v369_v23 = vld [vmem:[%s6092_s12 + $0x58] sm:$0x3] }
  0x25   : > { %9243 = vst [vmem:[#allocation11_spill] sm:$0xff] %v6175_v47  ;;  %v6210_v60 = vsel %vm462_vm0, %v533_v55, %v534_v56  ;;  %v915_v2 = vrot.slane %v366_v62, 2  ;;  %v478_v11 = vrot.slane %v6238_v6, 1  ;;  %v479_v13 = vrot.slane %v6241_v7, 1  ;;  %v6274_v24 = vld [vmem:[%s6092_s12 + $0x178] sm:$0x3] }
  0x26   : > { %5186 = vmatmul.msk.f32.gmra.mxu0 %vm546_vm1, %v467_v25  ;;  %5252 = vmatmul.msk.f32.gmra.mxu2 %vm546_vm1, %v906_v27  ;;  %9244 = vst [vmem:[#allocation12_spill] sm:$0xff] %v6205_v59  ;;  %v6213_v61 = vsel %vm901_vm2, %v912_v57, %v913_v58  ;;  %v6227_v3 = vsel %vm462_vm0, %v474_v54, %v476_v0  ;;  %v538_v14 = vrot.slane %v6244_v8, 1  ;;  %v539_v15 = vrot.slane %v6247_v10, 1  ;;  %v6295_v36 = vld [vmem:[%s6092_s12 + $0x60] sm:$0xff]  ;;  %v6298_v37 = vld [vmem:[%s6092_s12 + $0x68] sm:$0xff]  ;;  %v6334_v0 = vld [vmem:[%s6092_s12 + $0x78] sm:$0xff] }
  0x27   : > { %5210 = vmatmul.msk.f32.gmra.mxu3 %vm546_vm1, %v6122_v26  ;;  %9245 = vst [vmem:[#allocation13_spill] sm:$0xff] %v6210_v60  ;;  %v6232_v4 = vsel %vm462_vm0, %v534_v56, %v536_v1  ;;  %v6235_v5 = vsel %vm901_vm2, %v913_v58, %v915_v2  ;;  %v917_v16 = vrot.slane %v6238_v6, 2  ;;  %v918_v17 = vrot.slane %v6241_v7, 2  ;;  %v372_v55 = vld [vmem:[%s6092_s12 + $0x70] sm:$0x3]  ;;  %v6337_v1 = vld [vmem:[%s6092_s12 + $0x80] sm:$0xff] }
  0x28   : > { %9246 = vst [vmem:[#allocation14_spill] sm:$0xff] %v6227_v3  ;;  %v6262_v18 = vsel %vm462_vm0, %v478_v11, %v479_v13  ;;  %v6267_v21 = vsel %vm462_vm0, %v538_v14, %v539_v15  ;;  %v481_v25 = vrot.slane %v369_v23, 1  ;;  %v541_v27 = vrot.slane %v6274_v24, 1 }
  0x29   : > { %9247 = vst [vmem:[#allocation15_spill] sm:$0xff] %v6232_v4  ;;  %v6270_v22 = vsel %vm901_vm2, %v917_v16, %v918_v17  ;;  %v920_v32 = vrot.slane %v369_v23, 2  ;;  %v483_v41 = vrot.slane %v6295_v36, 1  ;;  %v484_v43 = vrot.slane %v6298_v37, 1  ;;  %v375_v23 = vld [vmem:[%s6092_s12 + $0x88] sm:$0x3] }
  0x2a   : > { %9248 = vst [vmem:[#allocation16_spill] sm:$0xff] %v6262_v18  ;;  %v6284_v33 = vsel %vm462_vm0, %v479_v13, %v481_v25  ;;  %v6289_v34 = vsel %vm462_vm0, %v539_v15, %v541_v27  ;;  %v922_v44 = vrot.slane %v6295_v36, 2  ;;  %v923_v45 = vrot.slane %v6298_v37, 2  ;;  %v5317_v13 = vld [vmem:[%s9105_s1 + $0x40] sm:$0xff] }
  0x2b   : > { %5219 = vmatmul.msk.f32.gmra.mxu1 %vm546_vm1, %v6126_v28  ;;  %9249 = vst [vmem:[#allocation17_spill] sm:$0xff] %v6267_v21  ;;  %v6292_v35 = vsel %vm901_vm2, %v918_v17, %v920_v32  ;;  %v6311_v53 = vsel %vm462_vm0, %v483_v41, %v484_v43  ;;  %v486_v56 = vrot.slane %v372_v55, 1  ;;  %v925_v57 = vrot.slane %v372_v55, 2  ;;  %1376 = vmatpush.msrb.mxu0 %v5317_v13  ;;  %v378_v13 = vld [vmem:[%s6092_s12 + $0xa0] sm:$0x3] }
  0x2c   : > { %9250 = vst [vmem:[#allocation18_spill] sm:$0xff] %v6284_v33  ;;  %v6316_v54 = vsel %vm901_vm2, %v922_v44, %v923_v45  ;;  %v488_v2 = vrot.slane %v6334_v0, 1  ;;  %v489_v11 = vrot.slane %v6337_v1, 1  ;;  %v927_v14 = vrot.slane %v6334_v0, 2  ;;  %v6379_v44 = vld [vmem:[%s6092_s12 + $0x98] sm:$0xff] }
  0x2d   : > { %9251 = vst [vmem:[#allocation19_spill] sm:$0xff] %v6289_v34  ;;  %v6326_v58 = vsel %vm462_vm0, %v484_v43, %v486_v56  ;;  %v6331_v62 = vsel %vm901_vm2, %v923_v45, %v925_v57  ;;  %v928_v15 = vrot.slane %v6337_v1, 2  ;;  %v491_v25 = vrot.slane %v375_v23, 1  ;;  %v6376_v43 = vld [vmem:[%s6092_s12 + $0x90] sm:$0xff] }
  0x2e   : > { %5187 = vmatmul.msk.f32.gmra.mxu0 %vm546_vm1, %v6148_v38  ;;  %5253 = vmatmul.msk.f32.gmra.mxu2 %vm546_vm1, %v6156_v40  ;;  %9252 = vst [vmem:[#allocation20_spill] sm:$0xff] %v6311_v53  ;;  %v6353_v16 = vsel %vm462_vm0, %v488_v2, %v489_v11  ;;  %v930_v27 = vrot.slane %v375_v23, 2  ;;  %v493_v45 = vrot.slane %v6376_v43, 1  ;;  %v494_v55 = vrot.slane %v6379_v44, 1 }
  0x2f   : > { %5211 = vmatmul.msk.f32.gmra.mxu3 %vm546_vm1, %v6153_v39  ;;  %9253 = vst [vmem:[#allocation21_spill] sm:$0xff] %v6326_v58  ;;  %v6358_v17 = vsel %vm901_vm2, %v927_v14, %v928_v15  ;;  %v6368_v32 = vsel %vm462_vm0, %v489_v11, %v491_v25  ;;  %v932_v56 = vrot.slane %v6376_v43, 2  ;;  %v933_v57 = vrot.slane %v6379_v44, 2 }
  0x30   : > { %9254 = vst [vmem:[#allocation22_spill] sm:$0xff] %v6353_v16  ;;  %v6373_v41 = vsel %vm901_vm2, %v928_v15, %v930_v27  ;;  %v6392_v2 = vsel %vm462_vm0, %v493_v45, %v494_v55  ;;  %v496_v14 = vrot.slane %v378_v13, 1  ;;  %v5284_v15 = vld [vmem:[%s9105_s1 + $0x38] sm:$0xff]  ;;  %v935_v23 = vrot.slane %v378_v13, 2  ;;  %v5386_v27 = vld [vmem:[%s9105_s1 + $0x68] sm:$0xff] }
  0x31   : > { %9255 = vst [vmem:[#allocation23_spill] sm:$0xff] %v6368_v32  ;;  %v6397_v11 = vsel %vm901_vm2, %v932_v56, %v933_v57  ;;  %v6421_v56 = vld [vmem:[%s6092_s12 + $0xa8] sm:$0xff]  ;;  %1686 = vmatpush.msrb.mxu2 %v5386_v27  ;;  %v5352_v13 = vld [vmem:[%s9105_s1 + $0x58] sm:$0xff] }
  0x32   : > { %9256 = vst [vmem:[#allocation24_spill] sm:$0xff] %v6392_v2  ;;  %v6410_v25 = vsel %vm462_vm0, %v494_v55, %v496_v14  ;;  %v6418_v45 = vsel %vm901_vm2, %v933_v57, %v935_v23  ;;  %v498_v55 = vrot.slane %v6421_v56, 1  ;;  %v937_v14 = vrot.slane %v6421_v56, 2  ;;  %1532 = vmatpush.msrb.mxu1 %v5352_v13 }
  0x33   : > { %5220 = vmatmul.msk.f32.gmra.mxu1 %vm546_vm1, %v6129_v29  ;;  %9257 = vst [vmem:[#allocation25_spill] sm:$0xff] %v6410_v25 }
  0x36   : > { %5188 = vmatmul.msk.f32.gmra.mxu0 %vm546_vm1, %v6170_v46  ;;  %5254 = vmatmul.msk.f32.gmra.mxu2 %vm546_vm1, %v6178_v48 }
  0x37   : > { %5212 = vmatmul.msk.f32.gmra.mxu3 %vm546_vm1, %v6175_v47  ;;  %v6466_v47 = vld [vmem:[%s6092_s12 + $0xc8] sm:$0xff] }
  0x38   : > { %9264 = vst [vmem:[#allocation32_spill] sm:$0xff] %v6466_v47  ;;  %v943_v39 = vrot.slane %v6466_v47, 2 }
  0x3b   : > { %5221 = vmatmul.msk.f32.gmra.mxu1 %vm546_vm1, %v6181_v49 }
  0x3e   : > { %5189 = vmatmul.msk.f32.gmra.mxu0 %vm546_vm1, %v6205_v59  ;;  %5255 = vmatmul.msk.f32.gmra.mxu2 %vm546_vm1, %v6213_v61 }
  0x3f   : > { %5213 = vmatmul.msk.f32.gmra.mxu3 %vm546_vm1, %v6210_v60  ;;  %v6463_v60 = vld [vmem:[%s6092_s12 + $0xc0] sm:$0xff] }
  0x40   : > { %9263 = vst [vmem:[#allocation31_spill] sm:$0xff] %v6463_v60 }
  0x43   : > { %5222 = vmatmul.msk.f32.gmra.mxu1 %vm546_vm1, %v6184_v50 }
  0x46   : > { %5190 = vmatmul.msk.f32.gmra.mxu0 %vm546_vm1, %v6227_v3  ;;  %5256 = vmatmul.msk.f32.gmra.mxu2 %vm546_vm1, %v6235_v5 }
  0x47   : > { %5214 = vmatmul.msk.f32.gmra.mxu3 %vm546_vm1, %v6232_v4 }
  0x4b   : > { %5223 = vmatmul.msk.f32.gmra.mxu1 %vm546_vm1, %v6238_v6 }
  0x4e   : > { %5191 = vmatmul.msk.f32.gmra.mxu0 %vm546_vm1, %v6262_v18  ;;  %5257 = vmatmul.msk.f32.gmra.mxu2 %vm546_vm1, %v6270_v22 }
  0x4f   : > { %5215 = vmatmul.msk.f32.gmra.mxu3 %vm546_vm1, %v6267_v21  ;;  %v381_v21 = vld [vmem:[%s6092_s12 + $0xb8] sm:$0x3] }
  0x50   : > { %v501_v13 = vrot.slane %v381_v21, 1  ;;  %v940_v4 = vrot.slane %v381_v21, 2  ;;  %v503_v21 = vrot.slane %v6463_v60, 1 }
  0x53   : > { %5224 = vmatmul.msk.f32.gmra.mxu1 %vm546_vm1, %v6241_v7 }
  0x56   : > { %5192 = vmatmul.msk.f32.gmra.mxu0 %vm546_vm1, %v6284_v33  ;;  %5258 = vmatmul.msk.f32.gmra.mxu2 %vm546_vm1, %v6292_v35 }
  0x57   : > { %5216 = vmatmul.msk.f32.gmra.mxu3 %vm546_vm1, %v6289_v34  ;;  %v6424_v34 = vld [vmem:[%s6092_s12 + $0xb0] sm:$0xff] }
  0x58   : > { %9258 = vst [vmem:[#allocation26_spill] sm:$0xff] %v6424_v34  ;;  %v499_v57 = vrot.slane %v6424_v34, 1 }
  0x5a   : > { %v6440_v23 = vsel %vm462_vm0, %v498_v55, %v499_v57  ;;  %v6455_v55 = vsel %vm462_vm0, %v499_v57, %v501_v13  ;;  %v504_v57 = vrot.slane %v6466_v47, 1  ;;  %v942_v13 = vrot.slane %v6463_v60, 2 }
  0x5b   : > { %5225 = vmatmul.msk.f32.gmra.mxu1 %vm546_vm1, %v6295_v36  ;;  %9259 = vst [vmem:[#allocation27_spill] sm:$0xff] %v6440_v23 }
  0x5c   : > { %9261 = vst [vmem:[#allocation29_spill] sm:$0xff] %v6455_v55 }
  0x5e   : > { %5193 = vmatmul.msk.f32.gmra.mxu0 %vm546_vm1, %v6311_v53  ;;  %5259 = vmatmul.msk.f32.gmra.mxu2 %vm546_vm1, %v6316_v54 }
  0x5f   : > { %5241 = vmatmul.msk.f32.vlgmr.msrb.gmra.mxu3 %vm546_vm1, %v6097_v9 }
  0x60   : > { %1217 = vmatpush.msrb.mxu3 %v5284_v15  ;;  %v938_v15 = vrot.slane %v6424_v34, 2 }
  0x62   : > { %v6445_v27 = vsel %vm901_vm2, %v937_v14, %v938_v15  ;;  %v6460_v14 = vsel %vm901_vm2, %v938_v15, %v940_v4  ;;  %v962_v4 = vrot.slane %v6097_v9, 2  ;;  %v963_v15 = vrot.slane %v6100_v12, 2  ;;  %v384_v9 = vld [vmem:[%s6092_s12 + $0xd0] sm:$0x3] }
  0x63   : > { %5226 = vmatmul.msk.f32.gmra.mxu1 %vm546_vm1, %v6298_v37  ;;  %9260 = vst [vmem:[#allocation28_spill] sm:$0xff] %v6445_v27 }
  0x64   : > { %9262 = vst [vmem:[#allocation30_spill] sm:$0xff] %v6460_v14 }
  0x66   : > { %5194 = vmatmul.msk.f32.gmra.mxu0 %vm546_vm1, %v6326_v58  ;;  %5260 = vmatmul.msk.f32.gmra.mxu2 %vm546_vm1, %v6331_v62 }
  0x67   : > { %5242 = vmatmul.msk.f32.gmra.mxu3 %vm546_vm1, %v6100_v12 }
  0x6b   : > { %5227 = vmatmul.msk.f32.gmra.mxu1 %vm546_vm1, %v6334_v0 }
  0x6e   : > { %5195 = vmatmul.msk.f32.gmra.mxu0 %vm546_vm1, %v6353_v16  ;;  %5261 = vmatmul.msk.f32.gmra.mxu2 %vm546_vm1, %v6358_v17 }
  0x6f   : > { %5243 = vmatmul.msk.f32.gmra.mxu3 %vm546_vm1, %v6132_v30 }
  0x73   : > { %5228 = vmatmul.msk.f32.gmra.mxu1 %vm546_vm1, %v6337_v1 }
  0x76   : > { %5196 = vmatmul.msk.f32.gmra.mxu0 %vm546_vm1, %v6368_v32  ;;  %5262 = vmatmul.msk.f32.gmra.mxu2 %vm546_vm1, %v6373_v41 }
  0x77   : > { %5244 = vmatmul.msk.f32.gmra.mxu3 %vm546_vm1, %v6135_v31 }
  0x7b   : > { %5229 = vmatmul.msk.f32.gmra.mxu1 %vm546_vm1, %v6376_v43 }
  0x7e   : > { %5197 = vmatmul.msk.f32.gmra.mxu0 %vm546_vm1, %v6392_v2  ;;  %5263 = vmatmul.msk.f32.gmra.mxu2 %vm546_vm1, %v6397_v11 }
  0x7f   : > { %5245 = vmatmul.msk.f32.gmra.mxu3 %vm546_vm1, %v6187_v51 }
  0x83   : > { %5230 = vmatmul.msk.f32.gmra.mxu1 %vm546_vm1, %v6379_v44 }
  0x86   : > { %5198 = vmatmul.msk.f32.gmra.mxu0 %vm546_vm1, %v6410_v25  ;;  %5264 = vmatmul.msk.f32.gmra.mxu2 %vm546_vm1, %v6418_v45 }
  0x87   : > { %5246 = vmatmul.msk.f32.gmra.mxu3 %vm546_vm1, %v6190_v52 }
  0x8b   : > { %5231 = vmatmul.msk.f32.gmra.mxu1 %vm546_vm1, %v6421_v56 }
  0x8e   : > { %5199 = vmatmul.msk.f32.gmra.mxu0 %vm546_vm1, %v6440_v23  ;;  %5265 = vmatmul.msk.f32.gmra.mxu2 %vm546_vm1, %v6445_v27  ;;  %v6489_v23 = vsel %vm901_vm2, %v942_v13, %v943_v39  ;;  %v965_v13 = vrot.slane %v6108_v19, 2 }
  0x8f   : > { %5247 = vmatmul.msk.f32.gmra.mxu3 %vm546_vm1, %v6244_v8  ;;  %9267 = vst [vmem:[#allocation35_spill] sm:$0xff] %v6489_v23 }
  0x93   : > { %5232 = vmatmul.msk.f32.gmra.mxu1 %vm546_vm1, %v6424_v34 }
  0x96   : > { %5200 = vmatmul.msk.f32.gmra.mxu0 %vm546_vm1, %v6455_v55  ;;  %5266 = vmatmul.msk.f32.gmra.mxu2 %vm546_vm1, %v6460_v14  ;;  %v6481_v55 = vsel %vm462_vm0, %v503_v21, %v504_v57  ;;  %v6486_v14 = vsel %vm901_vm2, %v962_v4, %v963_v15  ;;  %v506_v21 = vrot.slane %v384_v9, 1  ;;  %v5283_v4 = vld [vmem:[%s9105_s1 + $0x30] sm:$0xff] }
  0x97   : > { %5248 = vmatmul.msk.f32.gmra.mxu3 %vm546_vm1, %v6247_v10  ;;  %9265 = vst [vmem:[#allocation33_spill] sm:$0xff] %v6481_v55 }
  0x98   : > { %v805_v26 = vpop.f32.mrf.mxu1  ;;  %9266 = vst [vmem:[#allocation34_spill] sm:$0xff] %v6486_v14  ;;  %1218 = vmatpush.msrb.mxu3 %v5283_v4 }
  0x9b   : > { %v628_v20 = vpop.f32.mrf.mxu0  ;;  %5233 = vmatmul.msk.f32.gmra.mxu1 %vm546_vm1, %v6463_v60  ;;  %v945_v60 = vrot.slane %v384_v9, 2  ;;  %v6521_v9 = vld [vmem:[%s6092_s12 + $0xe0] sm:$0xff] }
  0x9c   : > { %v806_v12 = vadd.f32 %v805_v26, %v628_v20  ;;  %v6512_v20 = vsel %vm901_vm2, %v963_v15, %v965_v13  ;;  %v6518_v26 = vld [vmem:[%s6092_s12 + $0xd8] sm:$0xff]  ;;  %v968_v15 = vrot.slane %v6135_v31, 2 }
  0x9d   : > { %9270 = vst [vmem:[#allocation38_spill] sm:$0xff] %v6512_v20  ;;  %v6515_v19 = vsel %vm901_vm2, %v943_v39, %v945_v60  ;;  %v509_v39 = vrot.slane %v6521_v9, 1  ;;  %v967_v60 = vrot.slane %v6132_v30, 2 }
  0x9e   : > { %5201 = vmatmul.msk.f32.gmra.mxu0 %vm546_vm1, %v6481_v55  ;;  %5267 = vmatmul.msk.f32.gmra.mxu2 %vm546_vm1, %v6489_v23  ;;  %v6507_v23 = vsel %vm462_vm0, %v504_v57, %v506_v21  ;;  %9271 = vst [vmem:[#allocation39_spill] sm:$0xff] %v6515_v19  ;;  %v508_v57 = vrot.slane %v6518_v26, 1  ;;  %v948_v21 = vrot.slane %v6521_v9, 2 }
  0x9f   : > { %5275 = vmatmul.msk.f32.vlgmr.msra.gmra.mxu3 %vm546_vm1, %v6486_v14  ;;  %9269 = vst [vmem:[#allocation37_spill] sm:$0xff] %v6507_v23  ;;  %v6545_v30 = vsel %vm901_vm2, %v967_v60, %v968_v15 }
  0xa0   : > { %v808_v27 = vpop.f32.mrf.mxu1  ;;  %9272 = vst [vmem:[#allocation40_spill] sm:$0xff] %v6518_v26 }
  0xa1   : > { %v1066_v34 = vpop.f32.mrf.mxu2  ;;  %9275 = vst [vmem:[#allocation43_spill] sm:$0xff] %v6545_v30 }
  0xa2   : > { %v6502_v55 = vpop.f32.mrf.mxu3  ;;  %v6504_v25 = vadd.f32 %v1066_v34, %v806_v12  ;;  %v947_v12 = vrot.slane %v6518_v26, 2 }
  0xa3   : > { %v631_v14 = vpop.f32.mrf.mxu0  ;;  %5234 = vmatmul.msk.f32.gmra.mxu1 %vm546_vm1, %v6466_v47 }
  0xa4   : > { %9268 = vst [vmem:[#allocation36_spill] sm:$0xff] %v6504_v25  ;;  %v809_v34 = vadd.f32 %v808_v27, %v631_v14  ;;  %v6540_v27 = vsel %vm462_vm0, %v508_v57, %v509_v39  ;;  %v6548_v31 = vsel %vm901_vm2, %v947_v12, %v948_v21  ;;  %v387_v14 = vld [vmem:[%s6092_s12 + $0xe8] sm:$0x3]  ;;  %v970_v57 = vrot.slane %v6160_v42, 2  ;;  %v6574_v42 = vld [vmem:[%s6092_s12 + $0xf0] sm:$0xff] }
  0xa5   : > { %9274 = vst [vmem:[#allocation42_spill] sm:$0xff] %v6540_v27  ;;  %v950_v60 = vrot.slane %v387_v14, 2 }
  0xa6   : > { %5202 = vmatmul.msk.f32.gmra.mxu0 %vm546_vm1, %v6507_v23  ;;  %5268 = vmatmul.msk.f32.gmra.mxu2 %vm546_vm1, %v6515_v19  ;;  %9276 = vst [vmem:[#allocation44_spill] sm:$0xff] %v6548_v31 }
  0xa7   : > { %5276 = vmatmul.msk.f32.gmra.mxu3 %vm546_vm1, %v6512_v20  ;;  %9281 = vst [vmem:[#allocation49_spill] sm:$0xff] %v6574_v42 }
  0xa8   : > { %v811_v4 = vpop.f32.mrf.mxu1 }
  0xa9   : > { %v1069_v20 = vpop.f32.mrf.mxu2 }
  0xaa   : > { %v6535_v13 = vpop.f32.mrf.mxu3  ;;  %v6537_v23 = vadd.f32 %v1069_v20, %v809_v34  ;;  %v511_v34 = vrot.slane %v387_v14, 1  ;;  %v973_v14 = vrot.slane %v6190_v52, 2 }
  0xab   : > { %v634_v25 = vpop.f32.mrf.mxu0  ;;  %5235 = vmatmul.msk.f32.gmra.mxu1 %vm546_vm1, %v6518_v26 }
  0xac   : > { %9273 = vst [vmem:[#allocation41_spill] sm:$0xff] %v6537_v23  ;;  %v812_v20 = vadd.f32 %v811_v4, %v634_v25  ;;  %v6571_v25 = vsel %vm901_vm2, %v948_v21, %v950_v60  ;;  %v6577_v4 = vld [vmem:[%s6092_s12 + $0xf8] sm:$0xff]  ;;  %v972_v21 = vrot.slane %v6187_v51, 2 }
  0xad   : > { %9280 = vst [vmem:[#allocation48_spill] sm:$0xff] %v6571_v25 }
  0xae   : > { %5203 = vmatmul.msk.f32.gmra.mxu0 %vm546_vm1, %v6540_v27  ;;  %5269 = vmatmul.msk.f32.gmra.mxu2 %vm546_vm1, %v6548_v31  ;;  %v6563_v27 = vsel %vm462_vm0, %v509_v39, %v511_v34  ;;  %9282 = vst [vmem:[#allocation50_spill] sm:$0xff] %v6577_v4  ;;  %v513_v39 = vrot.slane %v6574_v42, 1  ;;  %v953_v34 = vrot.slane %v6577_v4, 2  ;;  %v6601_v51 = vsel %vm901_vm2, %v972_v21, %v973_v14 }
  0xaf   : > { %5277 = vmatmul.msk.f32.gmra.mxu3 %vm546_vm1, %v6545_v30  ;;  %9278 = vst [vmem:[#allocation46_spill] sm:$0xff] %v6563_v27  ;;  %v6568_v30 = vsel %vm901_vm2, %v968_v15, %v970_v57  ;;  %v514_v15 = vrot.slane %v6577_v4, 1  ;;  %v975_v21 = vrot.slane %v6217_v63, 2 }
  0xb0   : > { %v814_v23 = vpop.f32.mrf.mxu1  ;;  %9279 = vst [vmem:[#allocation47_spill] sm:$0xff] %v6568_v30 }
  0xb1   : > { %v1072_v19 = vpop.f32.mrf.mxu2  ;;  %9285 = vst [vmem:[#allocation53_spill] sm:$0xff] %v6601_v51  ;;  %v6630_v63 = vsel %vm901_vm2, %v973_v14, %v975_v21  ;;  %v977_v21 = vrot.slane %v6244_v8, 2 }
  0xb2   : > { %v6558_v12 = vpop.f32.mrf.mxu3  ;;  %v6560_v47 = vadd.f32 %v1072_v19, %v812_v20  ;;  %v952_v20 = vrot.slane %v6574_v42, 2  ;;  %9289 = vst [vmem:[#allocation57_spill] sm:$0xff] %v6630_v63 }
  0xb3   : > { %v637_v26 = vpop.f32.mrf.mxu0  ;;  %5236 = vmatmul.msk.f32.gmra.mxu1 %vm546_vm1, %v6521_v9 }
  0xb4   : > { %9277 = vst [vmem:[#allocation45_spill] sm:$0xff] %v6560_v47  ;;  %v815_v19 = vadd.f32 %v814_v23, %v637_v26  ;;  %v6596_v23 = vsel %vm462_vm0, %v513_v39, %v514_v15  ;;  %v6604_v52 = vsel %vm901_vm2, %v952_v20, %v953_v34  ;;  %v390_v26 = vld [vmem:[%s6092_s12 + $0x100] sm:$0x3]  ;;  %v5420_v39 = vld [vmem:[%s9105_s1 + $0x78] sm:$0xff] }
  0xb5   : > { %9284 = vst [vmem:[#allocation52_spill] sm:$0xff] %v6596_v23  ;;  %v955_v20 = vrot.slane %v390_v26, 2  ;;  %1844 = vmatpush.msra.mxu3 %v5420_v39  ;;  %v6636_v39 = vld [vmem:[%s6092_s12 + $0x108] sm:$0xff] }
  0xb6   : > { %5204 = vmatmul.msk.f32.gmra.mxu0 %vm546_vm1, %v6563_v27  ;;  %5270 = vmatmul.msk.f32.gmra.mxu2 %vm546_vm1, %v6571_v25  ;;  %9286 = vst [vmem:[#allocation54_spill] sm:$0xff] %v6604_v52  ;;  %v518_v14 = vrot.slane %v6636_v39, 1 }
  0xb7   : > { %5278 = vmatmul.msk.f32.gmra.mxu3 %vm546_vm1, %v6568_v30  ;;  %9291 = vst [vmem:[#allocation59_spill] sm:$0xff] %v6636_v39 }
  0xb8   : > { %v817_v57 = vpop.f32.mrf.mxu1 }
  0xb9   : > { %v1075_v30 = vpop.f32.mrf.mxu2 }
  0xba   : > { %v6591_v60 = vpop.f32.mrf.mxu3  ;;  %v6593_v27 = vadd.f32 %v1075_v30, %v815_v19  ;;  %v516_v19 = vrot.slane %v390_v26, 1  ;;  %v6633_v26 = vsel %vm901_vm2, %v953_v34, %v955_v20  ;;  %v978_v20 = vrot.slane %v6247_v10, 2 }
  0xbb   : > { %v640_v47 = vpop.f32.mrf.mxu0  ;;  %5237 = vmatmul.msk.f32.gmra.mxu1 %vm546_vm1, %v6574_v42  ;;  %9290 = vst [vmem:[#allocation58_spill] sm:$0xff] %v6633_v26 }
  0xbc   : > { %9283 = vst [vmem:[#allocation51_spill] sm:$0xff] %v6593_v27  ;;  %v818_v30 = vadd.f32 %v817_v57, %v640_v47  ;;  %v6622_v47 = vsel %vm462_vm0, %v514_v15, %v516_v19  ;;  %v5385_v57 = vld [vmem:[%s9105_s1 + $0x60] sm:$0xff]  ;;  %v5351_v19 = vld [vmem:[%s9105_s1 + $0x50] sm:$0xff]  ;;  %v6669_v8 = vsel %vm901_vm2, %v977_v21, %v978_v20 }
  0xbd   : > { %9288 = vst [vmem:[#allocation56_spill] sm:$0xff] %v6622_v47  ;;  %1687 = vmatpush.msrb.mxu2 %v5385_v57  ;;  %v957_v57 = vrot.slane %v6636_v39, 2  ;;  %1533 = vmatpush.msrb.mxu1 %v5351_v19 }
  0xbe   : > { %5205 = vmatmul.msk.f32.gmra.mxu0 %vm546_vm1, %v6596_v23  ;;  %5271 = vmatmul.msk.f32.gmra.mxu2 %vm546_vm1, %v6604_v52  ;;  %9294 = vst [vmem:[#allocation62_spill] sm:$0xff] %v6669_v8 }
  0xbf   : > { %5279 = vmatmul.msk.f32.gmra.mxu3 %vm546_vm1, %v6601_v51 }
  0xc0   : > { %v820_v27 = vpop.f32.mrf.mxu1 }
  0xc1   : > { %v1078_v25 = vpop.f32.mrf.mxu2 }
  0xc2   : > { %v6617_v23 = vpop.f32.mrf.mxu3  ;;  %v6619_v42 = vadd.f32 %v1078_v25, %v818_v30  ;;  %v6639_v25 = vld [vmem:[%s6092_s12 + $0x110] sm:$0xff]  ;;  %v5454_v30 = vld [vmem:[%s9105_s1 + $0x88] sm:$0xff] }
  0xc3   : > { %v643_v51 = vpop.f32.mrf.mxu0  ;;  %5238 = vmatmul.msk.f32.gmra.mxu1 %vm546_vm1, %v6577_v4  ;;  %v519_v34 = vrot.slane %v6639_v25, 1  ;;  %2001 = vmatpush.msra.mxu0 %v5454_v30  ;;  %v393_v30 = vld [vmem:[%s6092_s12 + $0x118] sm:$0x3] }
  0xc4   : > { %9287 = vst [vmem:[#allocation55_spill] sm:$0xff] %v6619_v42  ;;  %v821_v15 = vadd.f32 %v820_v27, %v643_v51  ;;  %v958_v27 = vrot.slane %v6639_v25, 2  ;;  %v960_v19 = vrot.slane %v393_v30, 2 }
  0xc5   : > { %v6664_v52 = vsel %vm462_vm0, %v518_v14, %v519_v34  ;;  %v980_v14 = vrot.slane %v6274_v24, 2 }
  0xc6   : > { %5206 = vmatmul.msk.f32.gmra.mxu0 %vm546_vm1, %v6622_v47  ;;  %5272 = vmatmul.msk.f32.gmra.mxu2 %vm546_vm1, %v6633_v26  ;;  %9293 = vst [vmem:[#allocation61_spill] sm:$0xff] %v6664_v52  ;;  %v6672_v10 = vsel %vm901_vm2, %v957_v57, %v958_v27 }
  0xc7   : > { %5280 = vmatmul.msk.f32.gmra.mxu3 %vm546_vm1, %v6630_v63  ;;  %9295 = vst [vmem:[#allocation63_spill] sm:$0xff] %v6672_v10 }
  0xc8   : > { %v823_v51 = vpop.f32.mrf.mxu1 }
  0xc9   : > { %v1081_v42 = vpop.f32.mrf.mxu2 }
  0xca   : > { %v6659_v63 = vpop.f32.mrf.mxu3  ;;  %v6661_v26 = vadd.f32 %v1081_v42, %v821_v15  ;;  %v521_v15 = vrot.slane %v393_v30, 1 }
  0xcb   : > { %v646_v47 = vpop.f32.mrf.mxu0  ;;  %5239 = vmatmul.msk.f32.gmra.mxu1 %vm546_vm1, %v6636_v39 }
  0xcc   : > { %9292 = vst [vmem:[#allocation60_spill] sm:$0xff] %v6661_v26  ;;  %v824_v42 = vadd.f32 %v823_v51, %v646_v47  ;;  %v6695_v47 = vsel %vm901_vm2, %v958_v27, %v960_v19 }
  0xce   : > { %5207 = vmatmul.msk.f32.gmra.mxu0 %vm546_vm1, %v6664_v52  ;;  %5273 = vmatmul.msk.f32.gmra.mxu2 %vm546_vm1, %v6672_v10  ;;  %v6687_v52 = vsel %vm462_vm0, %v519_v34, %v521_v15 }
  0xcf   : > { %5281 = vmatmul.msk.f32.gmra.mxu3 %vm546_vm1, %v6669_v8  ;;  %9296 = vst [vmem:[#allocation64_spill] sm:$0xff] %v6687_v52  ;;  %v6692_v8 = vsel %vm901_vm2, %v978_v20, %v980_v14 }
  0xd0   : > { %v826_v21 = vpop.f32.mrf.mxu1  ;;  %9297 = vst [vmem:[#allocation65_spill] sm:$0xff] %v6692_v8 }
  0xd1   : > { %v1084_v57 = vpop.f32.mrf.mxu2 }
  0xd2   : > { %v6682_v26 = vpop.f32.mrf.mxu3  ;;  %v6684_v4 = vadd.f32 %v1084_v57, %v824_v42 }
  0xd3   : > { %v649_v39 = vpop.f32.mrf.mxu0  ;;  %5240 = vmatmul.msk.f32.gmra.mxu1 %vm546_vm1, %v6639_v25 }
  0xd4   : > { %v827_v24 = vadd.f32 %v826_v21, %v649_v39 }
  0xd6   : > { %5208 = vmatmul.msk.f32.gmra.mxu0 %vm546_vm1, %v6687_v52  ;;  %5274 = vmatmul.msk.f32.gmra.mxu2 %vm546_vm1, %v6695_v47 }
  0xd7   : > { %5282 = vmatmul.msk.f32.gmra.mxu3 %vm546_vm1, %v6692_v8 }
  0xd8   : > { %v829_v34 = vpop.f32.mrf.mxu1 }
  0xd9   : > { %v1087_v30 = vpop.f32.mrf.mxu2 }
  0xda   : > { %v6703_v51 = vpop.f32.mrf.mxu3  ;;  %v6705_v20 = vadd.f32 %v1087_v30, %v827_v24 }
  0xdb   : > { %v652_v42 = vpop.f32.mrf.mxu0  ;;  %5353 = vmatmul.msk.f32.vlgmr.msrb.gmra.mxu1 %vm546_vm1, %v6156_v40 }
  0xdc   : > { %v830_v27 = vadd.f32 %v829_v34, %v652_v42 }
  0xde   : > { %5319 = vmatmul.msk.f32.vlgmr.msrb.gmra.mxu0 %vm546_vm1, %v6148_v38  ;;  %5387 = vmatmul.msk.f32.vlgmr.msrb.gmra.mxu2 %vm546_vm1, %v6181_v49 }
  0xdf   : > { %5285 = vmatmul.msk.f32.vlgmr.msrb.gmra.mxu3 %vm546_vm1, %v6126_v28 }
  0xe0   : > { %v832_v39 = vpop.f32.mrf.mxu1 }
  0xe1   : > { %v1090_v14 = vpop.f32.mrf.mxu2 }
  0xe2   : > { %v877_v15 = vpop.f32.mrf.mxu3  ;;  %v6718_v57 = vadd.f32 %v1090_v14, %v830_v27 }
  0xe3   : > { %v6716_v19 = vadd.f32 %v877_v15, %v6502_v55  ;;  %v655_v21 = vpop.f32.mrf.mxu0  ;;  %5354 = vmatmul.msk.f32.gmra.mxu1 %vm546_vm1, %v6178_v48 }
  0xe4   : > { %v833_v28 = vadd.f32 %v832_v39, %v655_v21 }
  0xe6   : > { %5320 = vmatmul.msk.f32.gmra.mxu0 %vm546_vm1, %v6170_v46  ;;  %5388 = vmatmul.msk.f32.gmra.mxu2 %vm546_vm1, %v6184_v50 }
  0xe7   : > { %5286 = vmatmul.msk.f32.gmra.mxu3 %vm546_vm1, %v6129_v29 }
  0xe8   : > { %v835_v40 = vpop.f32.mrf.mxu1 }
  0xe9   : > { %v1093_v55 = vpop.f32.mrf.mxu2 }
  0xea   : > { %v880_v24 = vpop.f32.mrf.mxu3  ;;  %v6731_v42 = vadd.f32 %v1093_v55, %v833_v28 }
  0xeb   : > { %v6729_v34 = vadd.f32 %v880_v24, %v6535_v13  ;;  %v658_v30 = vpop.f32.mrf.mxu0  ;;  %5355 = vmatmul.msk.f32.gmra.mxu1 %vm546_vm1, %v6213_v61 }
  0xec   : > { %v836_v29 = vadd.f32 %v835_v40, %v658_v30 }
  0xee   : > { %5321 = vmatmul.msk.f32.gmra.mxu0 %vm546_vm1, %v6205_v59  ;;  %5389 = vmatmul.msk.f32.gmra.mxu2 %vm546_vm1, %v6238_v6 }
  0xef   : > { %5287 = vmatmul.msk.f32.gmra.mxu3 %vm546_vm1, %v6181_v49 }
  0xf0   : > { %v838_v48 = vpop.f32.mrf.mxu1 }
  0xf1   : > { %v1096_v13 = vpop.f32.mrf.mxu2 }
  0xf2   : > { %v883_v27 = vpop.f32.mrf.mxu3  ;;  %v6744_v14 = vadd.f32 %v1096_v13, %v836_v29 }
  0xf3   : > { %v6742_v39 = vadd.f32 %v883_v27, %v6558_v12  ;;  %v661_v15 = vpop.f32.mrf.mxu0  ;;  %5356 = vmatmul.msk.f32.gmra.mxu1 %vm546_vm1, %v6235_v5 }
  0xf4   : > { %v839_v49 = vadd.f32 %v838_v48, %v661_v15 }
  0xf6   : > { %5322 = vmatmul.msk.f32.gmra.mxu0 %vm546_vm1, %v6227_v3  ;;  %5390 = vmatmul.msk.f32.gmra.mxu2 %vm546_vm1, %v6241_v7 }
  0xf7   : > { %5288 = vmatmul.msk.f32.gmra.mxu3 %vm546_vm1, %v6184_v50 }
  0xf8   : > { %v841_v21 = vpop.f32.mrf.mxu1 }
  0xf9   : > { %v1099_v12 = vpop.f32.mrf.mxu2 }
  0xfa   : > { %v886_v28 = vpop.f32.mrf.mxu3  ;;  %v6757_v55 = vadd.f32 %v1099_v12, %v839_v49 }
  0xfb   : > { %v6755_v40 = vadd.f32 %v886_v28, %v6591_v60  ;;  %v664_v24 = vpop.f32.mrf.mxu0  ;;  %5357 = vmatmul.msk.f32.gmra.mxu1 %vm546_vm1, %v6270_v22 }
  0xfc   : > { %v842_v50 = vadd.f32 %v841_v21, %v664_v24 }
  0xfe   : > { %5323 = vmatmul.msk.f32.gmra.mxu0 %vm546_vm1, %v6262_v18  ;;  %5391 = vmatmul.msk.f32.gmra.mxu2 %vm546_vm1, %v6295_v36 }
  0xff   : > { %5289 = vmatmul.msk.f32.gmra.mxu3 %vm546_vm1, %v6238_v6 }
 0x100   : > { %v844_v30 = vpop.f32.mrf.mxu1 }
 0x101   : > { %v1102_v60 = vpop.f32.mrf.mxu2 }
 0x102   : > { %v889_v29 = vpop.f32.mrf.mxu3  ;;  %v6770_v13 = vadd.f32 %v1102_v60, %v842_v50 }
 0x103   : > { %v6768_v48 = vadd.f32 %v889_v29, %v6617_v23  ;;  %v667_v27 = vpop.f32.mrf.mxu0  ;;  %5358 = vmatmul.msk.f32.gmra.mxu1 %vm546_vm1, %v6292_v35 }
 0x104   : > { %v845_v6 = vadd.f32 %v844_v30, %v667_v27 }
 0x106   : > { %5324 = vmatmul.msk.f32.gmra.mxu0 %vm546_vm1, %v6284_v33  ;;  %5392 = vmatmul.msk.f32.gmra.mxu2 %vm546_vm1, %v6298_v37 }
 0x107   : > { %5290 = vmatmul.msk.f32.gmra.mxu3 %vm546_vm1, %v6241_v7 }
 0x108   : > { %v847_v15 = vpop.f32.mrf.mxu1 }
 0x109   : > { %v1105_v23 = vpop.f32.mrf.mxu2 }
 0x10a   : > { %v892_v49 = vpop.f32.mrf.mxu3  ;;  %v6783_v12 = vadd.f32 %v1105_v23, %v845_v6 }
 0x10b   : > { %v6781_v21 = vadd.f32 %v892_v49, %v6659_v63  ;;  %v670_v28 = vpop.f32.mrf.mxu0  ;;  %5359 = vmatmul.msk.f32.gmra.mxu1 %vm546_vm1, %v6316_v54 }
 0x10c   : > { %v848_v7 = vadd.f32 %v847_v15, %v670_v28 }
 0x10e   : > { %5325 = vmatmul.msk.f32.gmra.mxu0 %vm546_vm1, %v6311_v53  ;;  %5393 = vmatmul.msk.f32.gmra.mxu2 %vm546_vm1, %v6334_v0 }
 0x10f   : > { %5291 = vmatmul.msk.f32.gmra.mxu3 %vm546_vm1, %v6295_v36 }
 0x110   : > { %v850_v24 = vpop.f32.mrf.mxu1 }
 0x111   : > { %v1108_v63 = vpop.f32.mrf.mxu2 }
 0x112   : > { %v895_v50 = vpop.f32.mrf.mxu3  ;;  %v6796_v60 = vadd.f32 %v1108_v63, %v848_v7 }
 0x113   : > { %v6794_v30 = vadd.f32 %v895_v50, %v6682_v26  ;;  %v673_v29 = vpop.f32.mrf.mxu0  ;;  %5360 = vmatmul.msk.f32.gmra.mxu1 %vm546_vm1, %v6331_v62 }
 0x114   : > { %v851_v36 = vadd.f32 %v850_v24, %v673_v29 }
 0x116   : > { %5326 = vmatmul.msk.f32.gmra.mxu0 %vm546_vm1, %v6326_v58  ;;  %5394 = vmatmul.msk.f32.gmra.mxu2 %vm546_vm1, %v6337_v1 }
 0x117   : > { %5292 = vmatmul.msk.f32.gmra.mxu3 %vm546_vm1, %v6298_v37 }
 0x118   : > { %v853_v27 = vpop.f32.mrf.mxu1 }
 0x119   : > { %v1111_v26 = vpop.f32.mrf.mxu2 }
 0x11a   : > { %v898_v6 = vpop.f32.mrf.mxu3  ;;  %v6809_v23 = vadd.f32 %v1111_v26, %v851_v36 }
 0x11b   : > { %v6807_v15 = vadd.f32 %v898_v6, %v6703_v51  ;;  %v676_v49 = vpop.f32.mrf.mxu0  ;;  %5361 = vmatmul.msk.f32.gmra.mxu1 %vm546_vm1, %v6358_v17 }
 0x11c   : > { %v854_v37 = vadd.f32 %v853_v27, %v676_v49 }
 0x11e   : > { %5327 = vmatmul.msk.f32.gmra.mxu0 %vm546_vm1, %v6353_v16  ;;  %5395 = vmatmul.msk.f32.gmra.mxu2 %vm546_vm1, %v6376_v43 }
 0x11f   : > { %5293 = vmatmul.msk.f32.gmra.mxu3 %vm546_vm1, %v6334_v0 }
 0x120   : > { %v856_v28 = vpop.f32.mrf.mxu1 }
 0x121   : > { %v1114_v51 = vpop.f32.mrf.mxu2 }
 0x122   : > { %v1138_v7 = vpop.f32.mrf.mxu3  ;;  %v6822_v63 = vadd.f32 %v1114_v51, %v854_v37 }
 0x123   : > { %v6820_v24 = vadd.f32 %v1138_v7, %v6716_v19  ;;  %v679_v50 = vpop.f32.mrf.mxu0  ;;  %5362 = vmatmul.msk.f32.gmra.mxu1 %vm546_vm1, %v6373_v41 }
 0x124   : > { %v857_v0 = vadd.f32 %v856_v28, %v679_v50  ;;  %v9300_v50 = vld [vmem:[#allocation25_spill] sm:$0xff] }
 0x126   : > { %5328 = vmatmul.msk.f32.gmra.mxu0 %vm546_vm1, %v6368_v32  ;;  %5396 = vmatmul.msk.f32.gmra.mxu2 %vm546_vm1, %v6379_v44 }
 0x127   : > { %5294 = vmatmul.msk.f32.gmra.mxu3 %vm546_vm1, %v6337_v1 }
 0x128   : > { %v859_v29 = vpop.f32.mrf.mxu1 }
 0x129   : > { %v1117_v19 = vpop.f32.mrf.mxu2 }
 0x12a   : > { %v1141_v36 = vpop.f32.mrf.mxu3  ;;  %v6835_v26 = vadd.f32 %v1117_v19, %v857_v0  ;;  %v9301_v0 = vld [vmem:[#allocation26_spill] sm:$0xff] }
 0x12b   : > { %v6833_v27 = vadd.f32 %v1141_v36, %v6729_v34  ;;  %v682_v6 = vpop.f32.mrf.mxu0  ;;  %5363 = vmatmul.msk.f32.gmra.mxu1 %vm546_vm1, %v6397_v11 }
 0x12c   : > { %v860_v1 = vadd.f32 %v859_v29, %v682_v6 }
 0x12d   : > { %9298 = vst [vmem:[#allocation66_spill] sm:$0xff] %v6833_v27 }
 0x12e   : > { %5329 = vmatmul.msk.f32.gmra.mxu0 %vm546_vm1, %v6392_v2  ;;  %5397 = vmatmul.msk.f32.gmra.mxu2 %vm546_vm1, %v6421_v56 }
 0x12f   : > { %5295 = vmatmul.msk.f32.gmra.mxu3 %vm546_vm1, %v6376_v43 }
 0x130   : > { %v862_v49 = vpop.f32.mrf.mxu1 }
 0x131   : > { %v1120_v34 = vpop.f32.mrf.mxu2 }
 0x132   : > { %v1144_v37 = vpop.f32.mrf.mxu3  ;;  %v6848_v51 = vadd.f32 %v1120_v34, %v860_v1  ;;  %v9304_v34 = vld [vmem:[#allocation27_spill] sm:$0xff] }
 0x133   : > { %v6846_v28 = vadd.f32 %v1144_v37, %v6742_v39  ;;  %v685_v7 = vpop.f32.mrf.mxu0  ;;  %5364 = vmatmul.msk.f32.gmra.mxu1 %vm546_vm1, %v6418_v45  ;;  %v9303_v37 = vld [vmem:[#allocation28_spill] sm:$0xff] }
 0x134   : > { %v863_v43 = vadd.f32 %v862_v49, %v685_v7  ;;  %v9305_v49 = vld [vmem:[#allocation31_spill] sm:$0xff] }
 0x135   : > { %9299 = vst [vmem:[#allocation67_spill] sm:$0xff] %v6846_v28 }
 0x136   : > { %5330 = vmatmul.msk.f32.gmra.mxu0 %vm546_vm1, %v9300_v50  ;;  %5398 = vmatmul.msk.f32.gmra.mxu2 %vm546_vm1, %v9301_v0 }
 0x137   : > { %5296 = vmatmul.msk.f32.gmra.mxu3 %vm546_vm1, %v6379_v44 }
 0x138   : > { %v865_v29 = vpop.f32.mrf.mxu1 }
 0x139   : > { %v1123_v39 = vpop.f32.mrf.mxu2 }
 0x13a   : > { %v1147_v36 = vpop.f32.mrf.mxu3  ;;  %v6861_v1 = vadd.f32 %v1123_v39, %v863_v43 }
 0x13b   : > { %v6859_v19 = vadd.f32 %v1147_v36, %v6755_v40  ;;  %v688_v6 = vpop.f32.mrf.mxu0  ;;  %5365 = vmatmul.msk.f32.gmra.mxu1 %vm546_vm1, %v9303_v37  ;;  %v5419_v40 = vld [vmem:[%s9105_s1 + $0x70] sm:$0xff] }
 0x13c   : > { %v866_v44 = vadd.f32 %v865_v29, %v688_v6  ;;  %1845 = vmatpush.msra.mxu3 %v5419_v40  ;;  %v9308_v29 = vld [vmem:[#allocation29_spill] sm:$0xff] }
 0x13d   : > { %9302 = vst [vmem:[#allocation26_spill] sm:$0xff] %v6859_v19  ;;  %v9307_v19 = vld [vmem:[#allocation30_spill] sm:$0xff] }
 0x13e   : > { %5331 = vmatmul.msk.f32.gmra.mxu0 %vm546_vm1, %v9304_v34  ;;  %5399 = vmatmul.msk.f32.gmra.mxu2 %vm546_vm1, %v9305_v49 }
 0x13f   : > { %5297 = vmatmul.msk.f32.gmra.mxu3 %vm546_vm1, %v6421_v56  ;;  %v2357_v56 = vld [vmem:[%s9108_s4 + $0x8] sm:$0xff] }
 0x140   : > { %v868_v7 = vpop.f32.mrf.mxu1  ;;  %2712 = vmatpush.msra.mxu2 %v2357_v56 }
 0x141   : > { %v1126_v36 = vpop.f32.mrf.mxu2 }
 0x142   : > { %v1150_v43 = vpop.f32.mrf.mxu3  ;;  %v6877_v38 = vadd.f32 %v1126_v36, %v866_v44  ;;  %v5453_v44 = vld [vmem:[%s9105_s1 + $0x80] sm:$0xff] }
 0x143   : > { %v6875_v39 = vadd.f32 %v1150_v43, %v6768_v48  ;;  %v691_v46 = vpop.f32.mrf.mxu0  ;;  %5366 = vmatmul.msk.f32.gmra.mxu1 %vm546_vm1, %v9307_v19  ;;  %v9309_v48 = vld [vmem:[#allocation32_spill] sm:$0xff]  ;;  %2002 = vmatpush.msra.mxu0 %v5453_v44  ;;  %v5488_v43 = vld [vmem:[%s9108_s4 + $0x18] sm:$0xff] }
 0x144   : > { %v869_v6 = vadd.f32 %v868_v7, %v691_v46  ;;  %2503 = vmatpush.msra.mxu1 %v5488_v43  ;;  %v9311_v7 = vld [vmem:[#allocation35_spill] sm:$0xff]  ;;  %v9313_v19 = vld [vmem:[#allocation40_spill] sm:$0xff] }
 0x145   : > { %9306 = vst [vmem:[#allocation31_spill] sm:$0xff] %v6875_v39 }
 0x146   : > { %5332 = vmatmul.msk.f32.gmra.mxu0 %vm546_vm1, %v9308_v29  ;;  %5400 = vmatmul.msk.f32.gmra.mxu2 %vm546_vm1, %v9309_v48  ;;  %v9312_v29 = vld [vmem:[#allocation33_spill] sm:$0xff] }
 0x147   : > { %5298 = vmatmul.msk.f32.gmra.mxu3 %vm546_vm1, %v9301_v0 }
 0x148   : > { %v871_v40 = vpop.f32.mrf.mxu1 }
 0x149   : > { %v1129_v56 = vpop.f32.mrf.mxu2 }
 0x14a   : > { %v1153_v36 = vpop.f32.mrf.mxu3  ;;  %v6899_v0 = vadd.f32 %v1129_v56, %v869_v6 }
 0x14b   : > { %v6897_v39 = vadd.f32 %v1153_v36, %v6781_v21  ;;  %v694_v46 = vpop.f32.mrf.mxu0  ;;  %5367 = vmatmul.msk.f32.gmra.mxu1 %vm546_vm1, %v9311_v7 }
 0x14c   : > { %v872_v44 = vadd.f32 %v871_v40, %v694_v46 }
 0x14d   : > { %9310 = vst [vmem:[#allocation32_spill] sm:$0xff] %v6897_v39  ;;  %v9315_v39 = vld [vmem:[#allocation39_spill] sm:$0xff] }
 0x14e   : > { %5333 = vmatmul.msk.f32.gmra.mxu0 %vm546_vm1, %v9312_v29  ;;  %5401 = vmatmul.msk.f32.gmra.mxu2 %vm546_vm1, %v9313_v19  ;;  %v9316_v29 = vld [vmem:[#allocation37_spill] sm:$0xff] }
 0x14f   : > { %5299 = vmatmul.msk.f32.gmra.mxu3 %vm546_vm1, %v9305_v49 }
 0x150   : > { %v874_v43 = vpop.f32.mrf.mxu1 }
 0x151   : > { %v1132_v21 = vpop.f32.mrf.mxu2 }
 0x152   : > { %v1156_v28 = vpop.f32.mrf.mxu3  ;;  %v6912_v56 = vadd.f32 %v1132_v21, %v872_v44 }
 0x153   : > { %v6910_v36 = vadd.f32 %v1156_v28, %v6794_v30  ;;  %v697_v6 = vpop.f32.mrf.mxu0  ;;  %5368 = vmatmul.msk.f32.gmra.mxu1 %vm546_vm1, %v9315_v39 }
 0x154   : > { %v875_v49 = vadd.f32 %v874_v43, %v697_v6 }
 0x155   : > { %9314 = vst [vmem:[#allocation40_spill] sm:$0xff] %v6910_v36  ;;  %v9318_v36 = vld [vmem:[#allocation42_spill] sm:$0xff] }
 0x156   : > { %5334 = vmatmul.msk.f32.gmra.mxu0 %vm546_vm1, %v9316_v29  ;;  %5402 = vmatmul.msk.f32.gmra.mxu2 %vm546_vm1, %v6521_v9 }
 0x157   : > { %5300 = vmatmul.msk.f32.gmra.mxu3 %vm546_vm1, %v9309_v48  ;;  %v9319_v48 = vld [vmem:[#allocation49_spill] sm:$0xff] }
 0x158   : > { %v1535_v40 = vpop.f32.mrf.mxu1 }
 0x159   : > { %v1135_v30 = vpop.f32.mrf.mxu2 }
 0x15a   : > { %v1159_v46 = vpop.f32.mrf.mxu3  ;;  %v6925_v21 = vadd.f32 %v1135_v30, %v875_v49  ;;  %v9321_v49 = vld [vmem:[#allocation48_spill] sm:$0xff] }
 0x15b   : > { %v6923_v28 = vadd.f32 %v1159_v46, %v6807_v15  ;;  %v1378_v44 = vpop.f32.mrf.mxu0  ;;  %5369 = vmatmul.msk.f32.gmra.mxu1 %vm546_vm1, %v6548_v31  ;;  %v9320_v15 = vld [vmem:[#allocation36_spill] sm:$0xff]  ;;  %v9322_v31 = vld [vmem:[#allocation46_spill] sm:$0xff] }
 0x15d   : > { %9317 = vst [vmem:[#allocation68_spill] sm:$0xff] %v6923_v28 }
 0x15e   : > { %5335 = vmatmul.msk.f32.gmra.mxu0 %vm546_vm1, %v9318_v36  ;;  %5403 = vmatmul.msk.f32.gmra.mxu2 %vm546_vm1, %v9319_v48 }
 0x15f   : > { %5301 = vmatmul.msk.f32.gmra.mxu3 %vm546_vm1, %v9313_v19  ;;  %v9323_v19 = vld [vmem:[#allocation50_spill] sm:$0xff] }
 0x160   : > { %v1538_v43 = vpop.f32.mrf.mxu1 }
 0x161   : > { %v1689_v29 = vpop.f32.mrf.mxu2 }
 0x162   : > { %v1220_v6 = vpop.f32.mrf.mxu3 }
 0x163   : > { %v1316_v46 = vadd.f32 %v1220_v6, %v9320_v15  ;;  %v1381_v28 = vpop.f32.mrf.mxu0  ;;  %5370 = vmatmul.msk.f32.gmra.mxu1 %vm546_vm1, %v9321_v49  ;;  %v9325_v15 = vld [vmem:[#allocation41_spill] sm:$0xff]  ;;  %v9326_v49 = vld [vmem:[#allocation54_spill] sm:$0xff] }
 0x165   : > { %v1474_v30 = vadd.f32 %v1378_v44, %v1316_v46  ;;  %v9327_v46 = vld [vmem:[#allocation52_spill] sm:$0xff] }
 0x166   : > { %5336 = vmatmul.msk.f32.gmra.mxu0 %vm546_vm1, %v9322_v31  ;;  %5404 = vmatmul.msk.f32.gmra.mxu2 %vm546_vm1, %v9323_v19  ;;  %v9330_v31 = vld [vmem:[#allocation58_spill] sm:$0xff] }
 0x167   : > { %v1631_v36 = vadd.f32 %v1535_v40, %v1474_v30  ;;  %5302 = vmatmul.msk.f32.gmra.mxu3 %vm546_vm1, %v6521_v9  ;;  %v9328_v9 = vld [vmem:[#allocation59_spill] sm:$0xff] }
 0x168   : > { %v1541_v7 = vpop.f32.mrf.mxu1 }
 0x169   : > { %v6944_v39 = vadd.f32 %v1689_v29, %v1631_v36  ;;  %v1692_v6 = vpop.f32.mrf.mxu2 }
 0x16a   : > { %v1223_v34 = vpop.f32.mrf.mxu3 }
 0x16b   : > { %9324 = vst [vmem:[#allocation49_spill] sm:$0xff] %v6944_v39  ;;  %v1317_v37 = vadd.f32 %v1223_v34, %v9325_v15  ;;  %v1384_v27 = vpop.f32.mrf.mxu0  ;;  %5371 = vmatmul.msk.f32.gmra.mxu1 %vm546_vm1, %v9326_v49  ;;  %v9329_v34 = vld [vmem:[#allocation45_spill] sm:$0xff] }
 0x16d   : > { %v1475_v44 = vadd.f32 %v1381_v28, %v1317_v37 }
 0x16e   : > { %5337 = vmatmul.msk.f32.gmra.mxu0 %vm546_vm1, %v9327_v46  ;;  %5405 = vmatmul.msk.f32.gmra.mxu2 %vm546_vm1, %v9328_v9  ;;  %v9331_v46 = vld [vmem:[#allocation56_spill] sm:$0xff] }
 0x16f   : > { %v1632_v40 = vadd.f32 %v1538_v43, %v1475_v44  ;;  %5303 = vmatmul.msk.f32.gmra.mxu3 %vm546_vm1, %v9319_v48 }
 0x170   : > { %v1544_v37 = vpop.f32.mrf.mxu1 }
 0x171   : > { %v6955_v29 = vadd.f32 %v1692_v6, %v1632_v40  ;;  %v1695_v30 = vpop.f32.mrf.mxu2  ;;  %v9333_v40 = vld [vmem:[#allocation51_spill] sm:$0xff] }
 0x172   : > { %v1226_v36 = vpop.f32.mrf.mxu3 }
 0x173   : > { %v1318_v15 = vadd.f32 %v1226_v36, %v9329_v34  ;;  %v1387_v39 = vpop.f32.mrf.mxu0  ;;  %5372 = vmatmul.msk.f32.gmra.mxu1 %vm546_vm1, %v9330_v31 }
 0x175   : > { %v1476_v28 = vadd.f32 %v1384_v27, %v1318_v15  ;;  %v9334_v15 = vld [vmem:[#allocation61_spill] sm:$0xff] }
 0x176   : > { %5338 = vmatmul.msk.f32.gmra.mxu0 %vm546_vm1, %v9331_v46  ;;  %5406 = vmatmul.msk.f32.gmra.mxu2 %vm546_vm1, %v6639_v25 }
 0x177   : > { %v1633_v48 = vadd.f32 %v1541_v7, %v1476_v28  ;;  %5304 = vmatmul.msk.f32.gmra.mxu3 %vm546_vm1, %v9323_v19 }
 0x178   : > { %v1547_v7 = vpop.f32.mrf.mxu1 }
 0x179   : > { %v6966_v43 = vadd.f32 %v1695_v30, %v1633_v48  ;;  %v1698_v44 = vpop.f32.mrf.mxu2  ;;  %v5884_v30 = vld [vmem:[%s6092_s12 + $0x120] sm:$0xff] }
 0x17a   : > { %v1229_v6 = vpop.f32.mrf.mxu3 }
 0x17b   : > { %9332 = vst [vmem:[#allocation36_spill] sm:$0xff] %v6966_v43  ;;  %v1319_v36 = vadd.f32 %v1229_v6, %v9333_v40  ;;  %v1390_v34 = vpop.f32.mrf.mxu0  ;;  %5373 = vmatmul.msk.f32.gmra.mxu1 %vm546_vm1, %v6672_v10  ;;  %v9336_v40 = vld [vmem:[#allocation55_spill] sm:$0xff] }
 0x17d   : > { %v1477_v27 = vadd.f32 %v1387_v39, %v1319_v36 }
 0x17e   : > { %5339 = vmatmul.msk.f32.gmra.mxu0 %vm546_vm1, %v9334_v15  ;;  %5407 = vmatmul.msk.f32.gmra.mxu2 %vm546_vm1, %v5884_v30 }
 0x17f   : > { %v1634_v19 = vadd.f32 %v1544_v37, %v1477_v27  ;;  %5305 = vmatmul.msk.f32.gmra.mxu3 %vm546_vm1, %v9328_v9  ;;  %v5885_v9 = vld [vmem:[%s6092_s12 + $0x128] sm:$0xff] }
 0x181   : > { %v6977_v28 = vadd.f32 %v1698_v44, %v1634_v19  ;;  %v1701_v6 = vpop.f32.mrf.mxu2  ;;  %v1550_v44 = vpop.f32.mrf.mxu1 }
 0x182   : > { %v1232_v48 = vpop.f32.mrf.mxu3 }
 0x183   : > { %9335 = vst [vmem:[#allocation50_spill] sm:$0xff] %v6977_v28  ;;  %v1320_v43 = vadd.f32 %v1232_v48, %v9336_v40  ;;  %v1393_v10 = vpop.f32.mrf.mxu0  ;;  %5374 = vmatmul.msk.f32.gmra.mxu1 %vm546_vm1, %v6695_v47  ;;  %v9338_v48 = vld [vmem:[#allocation60_spill] sm:$0xff] }
 0x185   : > { %v1478_v39 = vadd.f32 %v1390_v34, %v1320_v43  ;;  %v9339_v43 = vld [vmem:[#allocation34_spill] sm:$0xff] }
 0x186   : > { %5340 = vmatmul.msk.f32.gmra.mxu0 %vm546_vm1, %v6687_v52  ;;  %5408 = vmatmul.msk.f32.gmra.mxu2 %vm546_vm1, %v5885_v9  ;;  %v9340_v52 = vld [vmem:[#allocation6_spill] sm:$0xff] }
 0x187   : > { %v1635_v37 = vadd.f32 %v1547_v7, %v1478_v39  ;;  %5306 = vmatmul.msk.f32.gmra.mxu3 %vm546_vm1, %v6639_v25  ;;  %v5886_v7 = vld [vmem:[%s6092_s12 + $0x138] sm:$0xff] }
 0x189   : > { %v6988_v36 = vadd.f32 %v1701_v6, %v1635_v37  ;;  %v1704_v19 = vpop.f32.mrf.mxu2  ;;  %v1553_v37 = vpop.f32.mrf.mxu1 }
 0x18a   : > { %v1235_v27 = vpop.f32.mrf.mxu3 }
 0x18b   : > { %9337 = vst [vmem:[#allocation41_spill] sm:$0xff] %v6988_v36  ;;  %v1321_v40 = vadd.f32 %v1235_v27, %v9338_v48  ;;  %v1396_v28 = vpop.f32.mrf.mxu0  ;;  %5375 = vmatmul.msk.f32.gmra.mxu1 %vm546_vm1, %v9339_v43  ;;  %v9342_v36 = vld [vmem:[#allocation38_spill] sm:$0xff] }
 0x18d   : > { %v1479_v34 = vadd.f32 %v1393_v10, %v1321_v40 }
 0x18e   : > { %5341 = vmatmul.msk.f32.gmra.mxu0 %vm546_vm1, %v9340_v52  ;;  %5409 = vmatmul.msk.f32.gmra.mxu2 %vm546_vm1, %v5886_v7  ;;  %v9343_v52 = vld [vmem:[#allocation7_spill] sm:$0xff] }
 0x18f   : > { %v1636_v25 = vadd.f32 %v1550_v44, %v1479_v34  ;;  %5307 = vmatmul.msk.f32.gmra.mxu3 %vm546_vm1, %v5884_v30  ;;  %v5887_v44 = vld [vmem:[%s6092_s12 + $0x140] sm:$0xff] }
 0x191   : > { %v6998_v6 = vadd.f32 %v1704_v19, %v1636_v25  ;;  %v1707_v10 = vpop.f32.mrf.mxu2 }
 0x192   : > { %v1238_v39 = vpop.f32.mrf.mxu3 }
 0x193   : > { %9341 = vst [vmem:[#allocation54_spill] sm:$0xff] %v6998_v6  ;;  %v1322_v27 = vadd.f32 %v1238_v39, %v6684_v4  ;;  %v1399_v48 = vpop.f32.mrf.mxu0  ;;  %5376 = vmatmul.msk.f32.gmra.mxu1 %vm546_vm1, %v9342_v36  ;;  %v9345_v39 = vld [vmem:[#allocation43_spill] sm:$0xff]  ;;  %v9346_v6 = vld [vmem:[#allocation9_spill] sm:$0xff] }
 0x195   : > { %v1480_v40 = vadd.f32 %v1396_v28, %v1322_v27  ;;  %v1556_v28 = vpop.f32.mrf.mxu1 }
 0x196   : > { %5342 = vmatmul.msk.f32.gmra.mxu0 %vm546_vm1, %v9343_v52  ;;  %5410 = vmatmul.msk.f32.gmra.mxu2 %vm546_vm1, %v5887_v44 }
 0x197   : > { %v1637_v30 = vadd.f32 %v1553_v37, %v1480_v40  ;;  %5308 = vmatmul.msk.f32.gmra.mxu3 %vm546_vm1, %v5885_v9  ;;  %v5888_v40 = vld [vmem:[%s6092_s12 + $0x150] sm:$0xff] }
 0x199   : > { %v7008_v19 = vadd.f32 %v1707_v10, %v1637_v30  ;;  %v1710_v37 = vpop.f32.mrf.mxu2 }
 0x19a   : > { %v1241_v34 = vpop.f32.mrf.mxu3 }
 0x19b   : > { %9344 = vst [vmem:[#allocation59_spill] sm:$0xff] %v7008_v19  ;;  %v1323_v4 = vadd.f32 %v1241_v34, %v6705_v20  ;;  %v1402_v25 = vpop.f32.mrf.mxu0  ;;  %5377 = vmatmul.msk.f32.gmra.mxu1 %vm546_vm1, %v9345_v39  ;;  %v9347_v19 = vld [vmem:[#allocation47_spill] sm:$0xff] }
 0x19d   : > { %v1481_v27 = vadd.f32 %v1399_v48, %v1323_v4  ;;  %v9349_v4 = vld [vmem:[#allocation11_spill] sm:$0xff] }
 0x19e   : > { %5343 = vmatmul.msk.f32.gmra.mxu0 %vm546_vm1, %v9346_v6  ;;  %5411 = vmatmul.msk.f32.gmra.mxu2 %vm546_vm1, %v5888_v40 }
 0x19f   : > { %v1638_v9 = vadd.f32 %v1556_v28, %v1481_v27  ;;  %5309 = vmatmul.msk.f32.gmra.mxu3 %vm546_vm1, %v5886_v7  ;;  %v5889_v7 = vld [vmem:[%s6092_s12 + $0x158] sm:$0xff] }
 0x1a1   : > { %v7018_v10 = vadd.f32 %v1710_v37, %v1638_v9 }
 0x1a2   : > { %v1244_v20 = vpop.f32.mrf.mxu3 }
 0x1a3   : > { %v1324_v30 = vadd.f32 %v1244_v20, %v6718_v57  ;;  %v1405_v34 = vpop.f32.mrf.mxu0  ;;  %5378 = vmatmul.msk.f32.gmra.mxu1 %vm546_vm1, %v9347_v19  ;;  %v9350_v57 = vld [vmem:[#allocation53_spill] sm:$0xff] }
 0x1a5   : > { %v7023_v48 = vadd.f32 %v1402_v25, %v1324_v30  ;;  %v9352_v25 = vld [vmem:[#allocation13_spill] sm:$0xff] }
 0x1a6   : > { %5344 = vmatmul.msk.f32.gmra.mxu0 %vm546_vm1, %v9349_v4  ;;  %5412 = vmatmul.msk.f32.gmra.mxu2 %vm546_vm1, %v5889_v7 }
 0x1a7   : > { %9348 = vst [vmem:[#allocation45_spill] sm:$0xff] %v7023_v48  ;;  %5310 = vmatmul.msk.f32.gmra.mxu3 %vm546_vm1, %v5887_v44  ;;  %v5890_v44 = vld [vmem:[%s6092_s12 + $0x168] sm:$0xff] }
 0x1aa   : > { %v1247_v28 = vpop.f32.mrf.mxu3 }
 0x1ab   : > { %v1325_v27 = vadd.f32 %v1247_v28, %v6731_v42  ;;  %v1408_v37 = vpop.f32.mrf.mxu0  ;;  %5379 = vmatmul.msk.f32.gmra.mxu1 %vm546_vm1, %v9350_v57  ;;  %v9353_v42 = vld [vmem:[#allocation57_spill] sm:$0xff] }
 0x1ad   : > { %v7033_v9 = vadd.f32 %v1405_v34, %v1325_v27  ;;  %v9355_v34 = vld [vmem:[#allocation15_spill] sm:$0xff] }
 0x1ae   : > { %5345 = vmatmul.msk.f32.gmra.mxu0 %vm546_vm1, %v9352_v25  ;;  %5413 = vmatmul.msk.f32.gmra.mxu2 %vm546_vm1, %v5890_v44 }
 0x1af   : > { %9351 = vst [vmem:[#allocation58_spill] sm:$0xff] %v7033_v9  ;;  %5311 = vmatmul.msk.f32.gmra.mxu3 %vm546_vm1, %v5888_v40  ;;  %v5891_v40 = vld [vmem:[%s6092_s12 + $0x170] sm:$0xff] }
 0x1b2   : > { %v1250_v20 = vpop.f32.mrf.mxu3 }
 0x1b3   : > { %v1326_v30 = vadd.f32 %v1250_v20, %v6744_v14  ;;  %v1411_v48 = vpop.f32.mrf.mxu0  ;;  %5380 = vmatmul.msk.f32.gmra.mxu1 %vm546_vm1, %v9353_v42  ;;  %v9356_v14 = vld [vmem:[#allocation62_spill] sm:$0xff]  ;;  %v406_v20 = vld [vmem:[%s6092_s12 + $0x180] sm:$0xff] }
 0x1b5   : > { %v7043_v28 = vadd.f32 %v1408_v37, %v1326_v30  ;;  %v9358_v37 = vld [vmem:[#allocation17_spill] sm:$0xff] }
 0x1b6   : > { %5346 = vmatmul.msk.f32.gmra.mxu0 %vm546_vm1, %v9355_v34  ;;  %5414 = vmatmul.msk.f32.gmra.mxu2 %vm546_vm1, %v5891_v40  ;;  %v407_v34 = vld [vmem:[%s6092_s12 + $0x188] sm:$0xff] }
 0x1b7   : > { %9354 = vst [vmem:[#allocation51_spill] sm:$0xff] %v7043_v28  ;;  %5312 = vmatmul.msk.f32.gmra.mxu3 %vm546_vm1, %v5889_v7 }
 0x1ba   : > { %v1253_v27 = vpop.f32.mrf.mxu3 }
 0x1bb   : > { %v1327_v9 = vadd.f32 %v1253_v27, %v6757_v55  ;;  %v1414_v25 = vpop.f32.mrf.mxu0  ;;  %5381 = vmatmul.msk.f32.gmra.mxu1 %vm546_vm1, %v9356_v14  ;;  %v2356_v55 = vld [vmem:[%s9108_s4] sm:$0xff]  ;;  %v9360_v27 = vld [vmem:[#allocation19_spill] sm:$0xff] }
 0x1bc   : > { %2713 = vmatpush.msra.mxu2 %v2356_v55 }
 0x1bd   : > { %v7054_v42 = vadd.f32 %v1411_v48, %v1327_v9  ;;  %v1506_v48 = vrot.slane %v406_v20, 2  ;;  %v1507_v9 = vrot.slane %v407_v34, 2 }
 0x1be   : > { %5347 = vmatmul.msk.f32.gmra.mxu0 %vm546_vm1, %v9358_v37  ;;  %5415 = vmatmul.msk.f32.gmra.mxu2 %vm546_vm1, %v406_v20 }
 0x1bf   : > { %9357 = vst [vmem:[#allocation55_spill] sm:$0xff] %v7054_v42  ;;  %5313 = vmatmul.msk.f32.gmra.mxu3 %vm546_vm1, %v5890_v44  ;;  %v5487_v42 = vld [vmem:[%s9108_s4 + $0x10] sm:$0xff] }
 0x1c0   : > { %2504 = vmatpush.msra.mxu1 %v5487_v42 }
 0x1c2   : > { %v1256_v7 = vpop.f32.mrf.mxu3 }
 0x1c3   : > { %v1328_v30 = vadd.f32 %v1256_v7, %v6770_v13  ;;  %v1417_v28 = vpop.f32.mrf.mxu0  ;;  %5382 = vmatmul.msk.f32.gmra.mxu1 %vm546_vm1, %v6692_v8  ;;  %v1349_v13 = vrot.slane %v406_v20, 1  ;;  %v1350_v7 = vrot.slane %v407_v34, 1  ;;  %v7074_v8 = vsel %vm901_vm2, %v1506_v48, %v1507_v9 }
 0x1c4   : > { %9361 = vst [vmem:[#allocation34_spill] sm:$0xff] %v7074_v8 }
 0x1c5   : > { %v7067_v44 = vadd.f32 %v1414_v25, %v1328_v30 }
 0x1c6   : > { %5348 = vmatmul.msk.f32.gmra.mxu0 %vm546_vm1, %v9360_v27  ;;  %5416 = vmatmul.msk.f32.gmra.mxu2 %vm546_vm1, %v407_v34  ;;  %v7087_v27 = vld [vmem:[%s6092_s12 + $0x198] sm:$0xff] }
 0x1c7   : > { %9359 = vst [vmem:[#allocation60_spill] sm:$0xff] %v7067_v44  ;;  %5314 = vmatmul.msk.f32.gmra.mxu3 %vm546_vm1, %v5891_v40  ;;  %v7081_v44 = vsel %vm462_vm0, %v1349_v13, %v1350_v7  ;;  %v408_v40 = vld [vmem:[%s6092_s12 + $0x190] sm:$0x3] }
 0x1c8   : > { %9362 = vst [vmem:[#allocation38_spill] sm:$0xff] %v7081_v44  ;;  %v1509_v48 = vrot.slane %v408_v40, 2 }
 0x1ca   : > { %v1259_v55 = vpop.f32.mrf.mxu3  ;;  %v7097_v42 = vsel %vm901_vm2, %v1507_v9, %v1509_v48 }
 0x1cb   : > { %v1329_v25 = vadd.f32 %v1259_v55, %v6783_v12  ;;  %v1420_v30 = vpop.f32.mrf.mxu0  ;;  %5383 = vmatmul.msk.f32.gmra.mxu1 %vm546_vm1, %v7074_v8  ;;  %v1352_v12 = vrot.slane %v408_v40, 1 }
 0x1cd   : > { %v7089_v37 = vadd.f32 %v1417_v28, %v1329_v25  ;;  %v7101_v14 = vsel %vm462_vm0, %v1350_v7, %v1352_v12  ;;  %v7106_v28 = vld [vmem:[%s6092_s12 + $0x1a0] sm:$0xff] }
 0x1ce   : > { %5349 = vmatmul.msk.f32.gmra.mxu0 %vm546_vm1, %v7081_v44  ;;  %5417 = vmatmul.msk.f32.gmra.mxu2 %vm546_vm1, %v7087_v27  ;;  %9363 = vst [vmem:[#allocation43_spill] sm:$0xff] %v7101_v14 }
 0x1cf   : > { %5315 = vmatmul.msk.f32.gmra.mxu3 %vm546_vm1, %v406_v20 }
 0x1d2   : > { %v1262_v13 = vpop.f32.mrf.mxu3 }
 0x1d3   : > { %v1330_v55 = vadd.f32 %v1262_v13, %v6796_v60  ;;  %v1423_v8 = vpop.f32.mrf.mxu0  ;;  %5384 = vmatmul.msk.f32.gmra.mxu1 %vm546_vm1, %v7097_v42 }
 0x1d5   : > { %v7108_v20 = vadd.f32 %v1420_v30, %v1330_v55 }
 0x1d6   : > { %5350 = vmatmul.msk.f32.gmra.mxu0 %vm546_vm1, %v7101_v14  ;;  %5418 = vmatmul.msk.f32.gmra.mxu2 %vm546_vm1, %v7106_v28 }
 0x1d7   : > { %5316 = vmatmul.msk.f32.gmra.mxu3 %vm546_vm1, %v407_v34 }
 0x1da   : > { %v1265_v60 = vpop.f32.mrf.mxu3 }
 0x1db   : > { %v1331_v9 = vadd.f32 %v1265_v60, %v6809_v23  ;;  %v1426_v7 = vpop.f32.mrf.mxu0 }
 0x1dd   : > { %v7116_v25 = vadd.f32 %v1423_v8, %v1331_v9 }
 0x1de   : > { %5455 = vmatmul.msk.f32.vlgmr.msra.gmra.mxu0 %vm546_vm1, %v6213_v61 }
 0x1df   : > { %5421 = vmatmul.msk.f32.vlgmr.msra.gmra.mxu3 %vm546_vm1, %v6205_v59  ;;  %v5656_v59 = vld [vmem:[%s9108_s4 + $0x58] sm:$0xff] }
 0x1e0   : > { %3784 = vmatpush.msrb.mxu2 %v5656_v59  ;;  %v9388_v59 = vld [vmem:[#allocation40_spill] sm:$0xff] }
 0x1e2   : > { %v1268_v30 = vpop.f32.mrf.mxu3 }
 0x1e3   : > { %v1332_v40 = vadd.f32 %v1268_v30, %v6822_v63  ;;  %v1429_v48 = vpop.f32.mrf.mxu0  ;;  %v7136_v63 = vpop.f32.mrf.mxu1 }
 0x1e5   : > { %v7123_v34 = vadd.f32 %v1426_v7, %v1332_v40 }
 0x1e6   : > { %5456 = vmatmul.msk.f32.gmra.mxu0 %vm546_vm1, %v6235_v5 }
 0x1e7   : > { %5422 = vmatmul.msk.f32.gmra.mxu3 %vm546_vm1, %v6227_v3 }
 0x1ea   : > { %v1271_v8 = vpop.f32.mrf.mxu3 }
 0x1eb   : > { %v1333_v23 = vadd.f32 %v1271_v8, %v6835_v26  ;;  %v1432_v12 = vpop.f32.mrf.mxu0  ;;  %v7145_v26 = vpop.f32.mrf.mxu2 }
 0x1ed   : > { %v7130_v61 = vadd.f32 %v1429_v48, %v1333_v23 }
 0x1ee   : > { %5457 = vmatmul.msk.f32.gmra.mxu0 %vm546_vm1, %v6270_v22  ;;  %v7147_v22 = vpop.f32.mrf.mxu1 }
 0x1ef   : > { %5423 = vmatmul.msk.f32.gmra.mxu3 %vm546_vm1, %v6262_v18  ;;  %v9382_v18 = vld [vmem:[#allocation39_spill] sm:$0xff] }
 0x1f2   : > { %v1274_v13 = vpop.f32.mrf.mxu3 }
 0x1f3   : > { %v1334_v5 = vadd.f32 %v1274_v13, %v6848_v51  ;;  %v1435_v55 = vpop.f32.mrf.mxu0 }
 0x1f5   : > { %v7139_v60 = vadd.f32 %v1432_v12, %v1334_v5 }
 0x1f6   : > { %5458 = vmatmul.msk.f32.gmra.mxu0 %vm546_vm1, %v6292_v35  ;;  %v7156_v35 = vpop.f32.mrf.mxu2  ;;  %v7159_v23 = vpop.f32.mrf.mxu1 }
 0x1f7   : > { %5424 = vmatmul.msk.f32.gmra.mxu3 %vm546_vm1, %v6284_v33  ;;  %v5960_v33 = vmov 0.0  }
 0x1f8   : > { %2240 = vst.msk [vmem:[#allocation2 + $0x18] sm:$0xff] %vm546_vm1, %v5960_v33 }
 0x1f9   : > { %2241 = vst.msk [vmem:[#allocation2 + $0x20] sm:$0xff] %vm546_vm1, %v5960_v33 }
 0x1fa   : > { %v1277_v9 = vpop.f32.mrf.mxu3  ;;  %2236 = vst.msk [vmem:[#allocation2] sm:$0xff] %vm546_vm1, %v5960_v33 }
 0x1fb   : > { %v1335_v7 = vadd.f32 %v1277_v9, %v6861_v1  ;;  %v1438_v30 = vpop.f32.mrf.mxu0  ;;  %2237 = vst.msk [vmem:[#allocation2 + $0x8] sm:$0xff] %vm546_vm1, %v5960_v33 }
 0x1fc   : > { %2243 = vst.msk [vmem:[#allocation2 + $0x30] sm:$0xff] %vm546_vm1, %v5960_v33 }
 0x1fd   : > { %v7150_v40 = vadd.f32 %v1435_v55, %v1335_v7  ;;  %2244 = vst.msk [vmem:[#allocation2 + $0x38] sm:$0xff] %vm546_vm1, %v5960_v33 }
 0x1fe   : > { %5459 = vmatmul.msk.f32.gmra.mxu0 %vm546_vm1, %v6316_v54  ;;  %v7168_v5 = vpop.f32.mrf.mxu2  ;;  %2246 = vst.msk [vmem:[#allocation2 + $0x48] sm:$0xff] %vm546_vm1, %v5960_v33 }
 0x1ff   : > { %5425 = vmatmul.msk.f32.gmra.mxu3 %vm546_vm1, %v6311_v53  ;;  %2247 = vst.msk [vmem:[#allocation2 + $0x50] sm:$0xff] %vm546_vm1, %v5960_v33 }
 0x200   : > { %2249 = vst.msk [vmem:[#allocation2 + $0x60] sm:$0xff] %vm546_vm1, %v5960_v33 }
 0x201   : > { %2250 = vst.msk [vmem:[#allocation2 + $0x68] sm:$0xff] %vm546_vm1, %v5960_v33 }
 0x202   : > { %v1280_v51 = vpop.f32.mrf.mxu3  ;;  %2252 = vst.msk [vmem:[#allocation2 + $0x78] sm:$0xff] %vm546_vm1, %v5960_v33 }
 0x203   : > { %v1336_v48 = vadd.f32 %v1280_v51, %v6877_v38  ;;  %v1441_v8 = vpop.f32.mrf.mxu0  ;;  %v7172_v38 = vpop.f32.mrf.mxu1  ;;  %2253 = vst.msk [vmem:[#allocation2 + $0x80] sm:$0xff] %vm546_vm1, %v5960_v33 }
 0x204   : > { %2255 = vst.msk [vmem:[#allocation2 + $0x90] sm:$0xff] %vm546_vm1, %v5960_v33 }
 0x205   : > { %v7161_v12 = vadd.f32 %v1438_v30, %v1336_v48  ;;  %2256 = vst.msk [vmem:[#allocation2 + $0x98] sm:$0xff] %vm546_vm1, %v5960_v33 }
 0x206   : > { %5460 = vmatmul.msk.f32.gmra.mxu0 %vm546_vm1, %v6331_v62  ;;  %2258 = vst.msk [vmem:[#allocation2 + $0xa8] sm:$0xff] %vm546_vm1, %v5960_v33 }
 0x207   : > { %5426 = vmatmul.msk.f32.gmra.mxu3 %vm546_vm1, %v6326_v58  ;;  %2259 = vst.msk [vmem:[#allocation2 + $0xb0] sm:$0xff] %vm546_vm1, %v5960_v33 }
 0x208   : > { %2261 = vst.msk [vmem:[#allocation2 + $0xc0] sm:$0xff] %vm546_vm1, %v5960_v33 }
 0x209   : > { %2262 = vst.msk [vmem:[#allocation2 + $0xc8] sm:$0xff] %vm546_vm1, %v5960_v33 }
 0x20a   : > { %v1283_v54 = vpop.f32.mrf.mxu3  ;;  %2264 = vst.msk [vmem:[#allocation2 + $0xd8] sm:$0xff] %vm546_vm1, %v5960_v33 }
 0x20b   : > { %v1337_v1 = vadd.f32 %v1283_v54, %v6899_v0  ;;  %v1444_v13 = vpop.f32.mrf.mxu0  ;;  %v7181_v0 = vpop.f32.mrf.mxu2  ;;  %2265 = vst.msk [vmem:[#allocation2 + $0xe0] sm:$0xff] %vm546_vm1, %v5960_v33 }
 0x20c   : > { %v7187_v51 = vpop.f32.mrf.mxu1  ;;  %2267 = vst.msk [vmem:[#allocation2 + $0xf0] sm:$0xff] %vm546_vm1, %v5960_v33 }
 0x20d   : > { %v7170_v55 = vadd.f32 %v1441_v8, %v1337_v1  ;;  %2268 = vst.msk [vmem:[#allocation2 + $0xf8] sm:$0xff] %vm546_vm1, %v5960_v33 }
 0x20e   : > { %5461 = vmatmul.msk.f32.gmra.mxu0 %vm546_vm1, %v6358_v17  ;;  %2270 = vst.msk [vmem:[#allocation2 + $0x108] sm:$0xff] %vm546_vm1, %v5960_v33 }
 0x20f   : > { %9364 = vst [vmem:[#allocation47_spill] sm:$0xff] %v7170_v55  ;;  %5427 = vmatmul.msk.f32.gmra.mxu3 %vm546_vm1, %v6353_v16 }
 0x210   : > { %2271 = vst.msk [vmem:[#allocation2 + $0x110] sm:$0xff] %vm546_vm1, %v5960_v33 }
 0x211   : > { %2273 = vst.msk [vmem:[#allocation2 + $0x120] sm:$0xff] %vm546_vm1, %v5960_v33 }
 0x212   : > { %v1286_v62 = vpop.f32.mrf.mxu3  ;;  %2274 = vst.msk [vmem:[#allocation2 + $0x128] sm:$0xff] %vm546_vm1, %v5960_v33 }
 0x213   : > { %v1338_v9 = vadd.f32 %v1286_v62, %v6912_v56  ;;  %v1447_v7 = vpop.f32.mrf.mxu0  ;;  %v7196_v56 = vpop.f32.mrf.mxu2  ;;  %2276 = vst.msk [vmem:[#allocation2 + $0x138] sm:$0xff] %vm546_vm1, %v5960_v33 }
 0x214   : > { %2277 = vst.msk [vmem:[#allocation2 + $0x140] sm:$0xff] %vm546_vm1, %v5960_v33 }
 0x215   : > { %v7179_v30 = vadd.f32 %v1444_v13, %v1338_v9  ;;  %2279 = vst.msk [vmem:[#allocation2 + $0x150] sm:$0xff] %vm546_vm1, %v5960_v33 }
 0x216   : > { %5462 = vmatmul.msk.f32.gmra.mxu0 %vm546_vm1, %v6373_v41  ;;  %v7198_v41 = vpop.f32.mrf.mxu1  ;;  %2280 = vst.msk [vmem:[#allocation2 + $0x158] sm:$0xff] %vm546_vm1, %v5960_v33 }
 0x217   : > { %9365 = vst [vmem:[#allocation53_spill] sm:$0xff] %v7179_v30  ;;  %5428 = vmatmul.msk.f32.gmra.mxu3 %vm546_vm1, %v6368_v32 }
 0x218   : > { %2282 = vst.msk [vmem:[#allocation2 + $0x168] sm:$0xff] %vm546_vm1, %v5960_v33 }
 0x219   : > { %2283 = vst.msk [vmem:[#allocation2 + $0x170] sm:$0xff] %vm546_vm1, %v5960_v33 }
 0x21a   : > { %v1289_v17 = vpop.f32.mrf.mxu3  ;;  %2285 = vst.msk [vmem:[#allocation2 + $0x180] sm:$0xff] %vm546_vm1, %v5960_v33 }
 0x21b   : > { %v1339_v48 = vadd.f32 %v1289_v17, %v6925_v21  ;;  %v1450_v8 = vpop.f32.mrf.mxu0  ;;  %2286 = vst.msk [vmem:[#allocation2 + $0x188] sm:$0xff] %vm546_vm1, %v5960_v33 }
 0x21c   : > { %2288 = vst.msk [vmem:[#allocation2 + $0x198] sm:$0xff] %vm546_vm1, %v5960_v33 }
 0x21d   : > { %v7190_v54 = vadd.f32 %v1447_v7, %v1339_v48  ;;  %v9368_v7 = vld [vmem:[#allocation66_spill] sm:$0xff]  ;;  %2289 = vst.msk [vmem:[#allocation2 + $0x1a0] sm:$0xff] %vm546_vm1, %v5960_v33 }
 0x21e   : > { %5463 = vmatmul.msk.f32.gmra.mxu0 %vm546_vm1, %v6397_v11  ;;  %v7207_v11 = vpop.f32.mrf.mxu2  ;;  %2242 = vst.msk [vmem:[#allocation2 + $0x28] sm:$0x3] %vm2238_vm3, %v5960_v33 }
 0x21f   : > { %9366 = vst [vmem:[#allocation69_spill] sm:$0xff] %v7190_v54  ;;  %5429 = vmatmul.msk.f32.gmra.mxu3 %vm546_vm1, %v6392_v2  ;;  %v7210_v2 = vpop.f32.mrf.mxu1 }
 0x220   : > { %2239 = vst.msk [vmem:[#allocation2 + $0x10] sm:$0x3] %vm2238_vm3, %v5960_v33 }
 0x221   : > { %2245 = vst.msk [vmem:[#allocation2 + $0x40] sm:$0x3] %vm2238_vm3, %v5960_v33 }
 0x222   : > { %v1292_v1 = vpop.f32.mrf.mxu3  ;;  %2248 = vst.msk [vmem:[#allocation2 + $0x58] sm:$0x3] %vm2238_vm3, %v5960_v33 }
 0x223   : > { %v1340_v13 = vadd.f32 %v1292_v1, %v6820_v24  ;;  %v1453_v62 = vpop.f32.mrf.mxu0  ;;  %v9370_v24 = vld [vmem:[#allocation28_spill] sm:$0xff]  ;;  %v9372_v1 = vld [vmem:[#allocation67_spill] sm:$0xff]  ;;  %2251 = vst.msk [vmem:[#allocation2 + $0x70] sm:$0x3] %vm2238_vm3, %v5960_v33 }
 0x224   : > { %2254 = vst.msk [vmem:[#allocation2 + $0x88] sm:$0x3] %vm2238_vm3, %v5960_v33 }
 0x225   : > { %v7201_v9 = vadd.f32 %v1450_v8, %v1340_v13  ;;  %v9371_v8 = vld [vmem:[#allocation27_spill] sm:$0xff]  ;;  %2257 = vst.msk [vmem:[#allocation2 + $0xa0] sm:$0x3] %vm2238_vm3, %v5960_v33 }
 0x226   : > { %5464 = vmatmul.msk.f32.gmra.mxu0 %vm546_vm1, %v6418_v45  ;;  %v7219_v16 = vpop.f32.mrf.mxu2  ;;  %2260 = vst.msk [vmem:[#allocation2 + $0xb8] sm:$0x3] %vm2238_vm3, %v5960_v33 }
 0x227   : > { %9367 = vst [vmem:[#allocation70_spill] sm:$0xff] %v7201_v9  ;;  %5430 = vmatmul.msk.f32.gmra.mxu3 %vm546_vm1, %v9300_v50 }
 0x228   : > { %2263 = vst.msk [vmem:[#allocation2 + $0xd0] sm:$0x3] %vm2238_vm3, %v5960_v33 }
 0x229   : > { %2266 = vst.msk [vmem:[#allocation2 + $0xe8] sm:$0x3] %vm2238_vm3, %v5960_v33 }
 0x22a   : > { %v1295_v21 = vpop.f32.mrf.mxu3  ;;  %2269 = vst.msk [vmem:[#allocation2 + $0x100] sm:$0x3] %vm2238_vm3, %v5960_v33 }
 0x22b   : > { %v1341_v17 = vadd.f32 %v1295_v21, %v9368_v7  ;;  %v1456_v48 = vpop.f32.mrf.mxu0  ;;  %v7223_v21 = vpop.f32.mrf.mxu1  ;;  %v9374_v7 = vld [vmem:[#allocation30_spill] sm:$0xff]  ;;  %2272 = vst.msk [vmem:[#allocation2 + $0x118] sm:$0x3] %vm2238_vm3, %v5960_v33 }
 0x22c   : > { %2275 = vst.msk [vmem:[#allocation2 + $0x130] sm:$0x3] %vm2238_vm3, %v5960_v33 }
 0x22d   : > { %v7212_v32 = vadd.f32 %v1453_v62, %v1341_v17  ;;  %v9375_v62 = vld [vmem:[#allocation29_spill] sm:$0xff]  ;;  %2278 = vst.msk [vmem:[#allocation2 + $0x148] sm:$0x3] %vm2238_vm3, %v5960_v33 }
 0x22e   : > { %5465 = vmatmul.msk.f32.gmra.mxu0 %vm546_vm1, %v9370_v24  ;;  %v9376_v24 = vld [vmem:[#allocation26_spill] sm:$0xff]  ;;  %2281 = vst.msk [vmem:[#allocation2 + $0x160] sm:$0x3] %vm2238_vm3, %v5960_v33 }
 0x22f   : > { %9369 = vst [vmem:[#allocation66_spill] sm:$0xff] %v7212_v32  ;;  %5431 = vmatmul.msk.f32.gmra.mxu3 %vm546_vm1, %v9371_v8 }
 0x230   : > { %2284 = vst.msk [vmem:[#allocation2 + $0x178] sm:$0x3] %vm2238_vm3, %v5960_v33 }
 0x231   : > { %2287 = vst.msk [vmem:[#allocation2 + $0x190] sm:$0x3] %vm2238_vm3, %v5960_v33 }
 0x232   : > { %v1298_v45 = vpop.f32.mrf.mxu3  ;;  %2290 = vst.msk [vmem:[#allocation2 + $0x1a8] sm:$0x3] %vm2238_vm3, %v5960_v33 }
 0x233   : > { %v1342_v13 = vadd.f32 %v1298_v45, %v9372_v1  ;;  %v1459_v50 = vpop.f32.mrf.mxu0  ;;  %v7238_v45 = vpop.f32.mrf.mxu2  ;;  %v9378_v1 = vld [vmem:[#allocation35_spill] sm:$0xff] }
 0x235   : > { %v7221_v58 = vadd.f32 %v1456_v48, %v1342_v13  ;;  %v9379_v13 = vld [vmem:[#allocation33_spill] sm:$0xff] }
 0x236   : > { %5466 = vmatmul.msk.f32.gmra.mxu0 %vm546_vm1, %v9374_v7  ;;  %v5554_v7 = vld [vmem:[%s9108_s4 + $0x28] sm:$0xff] }
 0x237   : > { %9373 = vst [vmem:[#allocation28_spill] sm:$0xff] %v7221_v58  ;;  %5432 = vmatmul.msk.f32.gmra.mxu3 %vm546_vm1, %v9375_v62  ;;  %v2358_v62 = vld [vmem:[#allocation2 + $0x1] sm:$0xff]  ;;  %v7388_v58 = vld [vmem:[%s9107_s3] ss:$0 sm:$0xff] }
 0x238   : > { %2956 = vmatpush.msrb.mxu3 %v5554_v7  ;;  %v2324_v7 = vld [vmem:[#allocation2] sm:$0xff]  ;;  %5489 = vmatmul.msk.f32.vlgmr.msra.gmra.mxu1 %vm546_vm1, %v2358_v62  ;;  %v2325_v62 = vld [vmem:[#allocation2 + $0x8] sm:$0xff] }
 0x239   : > { %5521 = vmatmul.msk.f32.vlgmr.msra.gmra.mxu2 %vm546_vm1, %v2324_v7 }
 0x23a   : > { %v1301_v17 = vpop.f32.mrf.mxu3 }
 0x23b   : > { %v1343_v53 = vadd.f32 %v1301_v17, %v9376_v24  ;;  %v1462_v8 = vpop.f32.mrf.mxu0  ;;  %v9380_v17 = vld [vmem:[#allocation31_spill] sm:$0xff] }
 0x23d   : > { %v7234_v48 = vadd.f32 %v1459_v50, %v1343_v53  ;;  %v7251_v53 = vpop.f32.mrf.mxu1 }
 0x23e   : > { %5467 = vmatmul.msk.f32.gmra.mxu0 %vm546_vm1, %v9378_v1 }
 0x23f   : > { %9377 = vst [vmem:[#allocation67_spill] sm:$0xff] %v7234_v48  ;;  %5433 = vmatmul.msk.f32.gmra.mxu3 %vm546_vm1, %v9379_v13 }
 0x241   : > { %5522 = vmatmul.msk.f32.gmra.mxu2 %vm546_vm1, %v2325_v62 }
 0x242   : > { %v1304_v50 = vpop.f32.mrf.mxu3 }
 0x243   : > { %v1344_v24 = vadd.f32 %v1304_v50, %v9380_v17  ;;  %v1465_v1 = vpop.f32.mrf.mxu0  ;;  %v9383_v50 = vld [vmem:[#allocation37_spill] sm:$0xff] }
 0x245   : > { %v7264_v13 = vadd.f32 %v1462_v8, %v1344_v24  ;;  %v7278_v8 = vpop.f32.mrf.mxu2  ;;  %v9384_v24 = vld [vmem:[#allocation32_spill] sm:$0xff] }
 0x246   : > { %5468 = vmatmul.msk.f32.gmra.mxu0 %vm546_vm1, %v9382_v18  ;;  %v7284_v18 = vpop.f32.mrf.mxu1 }
 0x247   : > { %9381 = vst [vmem:[#allocation30_spill] sm:$0xff] %v7264_v13  ;;  %5434 = vmatmul.msk.f32.gmra.mxu3 %vm546_vm1, %v9383_v50  ;;  %v9386_v13 = vld [vmem:[#allocation44_spill] sm:$0xff] }
 0x24a   : > { %v1307_v17 = vpop.f32.mrf.mxu3 }
 0x24b   : > { %v1345_v7 = vadd.f32 %v1307_v17, %v9384_v24  ;;  %v1468_v50 = vpop.f32.mrf.mxu0  ;;  %v5588_v17 = vld [vmem:[%s9108_s4 + $0x38] sm:$0xff]  ;;  %v5622_v24 = vld [vmem:[%s9108_s4 + $0x48] sm:$0xff] }
 0x24c   : > { %3232 = vmatpush.msrb.mxu0 %v5588_v17  ;;  %3508 = vmatpush.msrb.mxu1 %v5622_v24 }
 0x24d   : > { %v7293_v3 = vadd.f32 %v1465_v1, %v1345_v7  ;;  %v9387_v1 = vld [vmem:[#allocation42_spill] sm:$0xff]  ;;  %v7319_v62 = vpop.f32.mrf.mxu2 }
 0x24e   : > { %5469 = vmatmul.msk.f32.gmra.mxu0 %vm546_vm1, %v9386_v13  ;;  %v7326_v17 = vpop.f32.mrf.mxu1 }
 0x24f   : > { %9385 = vst [vmem:[#allocation26_spill] sm:$0xff] %v7293_v3  ;;  %5435 = vmatmul.msk.f32.gmra.mxu3 %vm546_vm1, %v9387_v1  ;;  %v9390_v3 = vld [vmem:[#allocation48_spill] sm:$0xff] }
 0x252   : > { %v1310_v13 = vpop.f32.mrf.mxu3 }
 0x253   : > { %v1346_v7 = vadd.f32 %v1310_v13, %v9388_v59  ;;  %v1471_v1 = vpop.f32.mrf.mxu0  ;;  %v9391_v13 = vld [vmem:[#allocation46_spill] sm:$0xff] }
 0x255   : > { %v7330_v24 = vadd.f32 %v1468_v50, %v1346_v7 }
 0x256   : > { %5470 = vmatmul.msk.f32.gmra.mxu0 %vm546_vm1, %v9390_v3  ;;  %v9392_v3 = vld [vmem:[#allocation68_spill] sm:$0xff]  ;;  %v7359_v48 = vpop.f32.mrf.mxu1 }
 0x257   : > { %9389 = vst [vmem:[#allocation35_spill] sm:$0xff] %v7330_v24  ;;  %5436 = vmatmul.msk.f32.gmra.mxu3 %vm546_vm1, %v9391_v13  ;;  %v7351_v13 = vpop.f32.mrf.mxu2 }
 0x25a   : > { %v1313_v50 = vpop.f32.mrf.mxu3 }
 0x25b   : > { %v1347_v59 = vadd.f32 %v1313_v50, %v9392_v3  ;;  %v2004_v7 = vpop.f32.mrf.mxu0  ;;  %v9394_v50 = vld [vmem:[#allocation52_spill] sm:$0xff] }
 0x25d   : > { %v7355_v24 = vadd.f32 %v1471_v1, %v1347_v59  ;;  %v7379_v59 = vld [vmem:[%s9106_s2] ss:$0 sm:$0xff] }
 0x25e   : > { %5471 = vmatmul.msk.f32.gmra.mxu0 %vm546_vm1, %v9326_v49  ;;  %v9395_v49 = vld [vmem:[#allocation49_spill] sm:$0xff] }
 0x25f   : > { %9393 = vst [vmem:[#allocation31_spill] sm:$0xff] %v7355_v24  ;;  %5437 = vmatmul.msk.f32.gmra.mxu3 %vm546_vm1, %v9394_v50 }
 0x262   : > { %v1847_v1 = vpop.f32.mrf.mxu3 }
 0x263   : > { %v1943_v3 = vadd.f32 %v1847_v1, %v9395_v49  ;;  %v2007_v50 = vpop.f32.mrf.mxu0  ;;  %v7392_v1 = vpop.f32.mrf.mxu2 }
 0x265   : > { %v2100_v24 = vadd.f32 %v2004_v7, %v1943_v3  ;;  %v2359_v7 = vld [vmem:[#allocation2 + $0x9] sm:$0xff]  ;;  %v7403_v3 = vpop.f32.mrf.mxu1 }
 0x266   : > { %5472 = vmatmul.msk.f32.gmra.mxu0 %vm546_vm1, %v9330_v31  ;;  %9396 = vst [vmem:[#allocation39_spill] sm:$0xff] %v7403_v3  ;;  %5490 = vmatmul.msk.f32.gmra.mxu1 %vm546_vm1, %v2359_v7  ;;  %v9397_v7 = vld [vmem:[#allocation63_spill] sm:$0xff] }
 0x267   : > { %v2136_v49 = vmul.f32 %v7379_v59, %v2100_v24  ;;  %5438 = vmatmul.msk.f32.gmra.mxu3 %vm546_vm1, %v9331_v46 }
 0x269   : > { %v2172_v31 = vadd.f32 %v7388_v58, %v2136_v49 }
 0x26a   : > { %v1850_v24 = vpop.f32.mrf.mxu3 }
 0x26b   : > { %v2204_v46 = vmax.f32 %v2172_v31, 0.0  ;;  %v1944_v32 = vadd.f32 %v1850_v24, %v6955_v29  ;;  %v2010_v9 = vpop.f32.mrf.mxu0  ;;  %v7428_v29 = vpop.f32.mrf.mxu2 }
 0x26c   : > { %9398 = vst [vmem:[#allocation32_spill] sm:$0xff] %v7428_v29 }
 0x26d   : > { %2292 = vst.msk [vmem:[#allocation2 + $0x19] sm:$0xff] %vm546_vm1, %v2204_v46  ;;  %v2101_v49 = vadd.f32 %v2007_v50, %v1944_v32  ;;  %v7435_v46 = vpop.f32.mrf.mxu1 }
 0x26e   : > { %5473 = vmatmul.msk.f32.gmra.mxu0 %vm546_vm1, %v9397_v7  ;;  %9399 = vst [vmem:[#allocation44_spill] sm:$0xff] %v7435_v46 }
 0x26f   : > { %v2137_v31 = vmul.f32 %v7379_v59, %v2101_v49  ;;  %5439 = vmatmul.msk.f32.gmra.mxu3 %vm546_vm1, %v9334_v15  ;;  %v9400_v49 = vld [vmem:[#allocation36_spill] sm:$0xff] }
 0x271   : > { %v2173_v32 = vadd.f32 %v7388_v58, %v2137_v31  ;;  %v9401_v31 = vld [vmem:[#allocation64_spill] sm:$0xff] }
 0x272   : > { %v1853_v50 = vpop.f32.mrf.mxu3 }
 0x273   : > { %v2205_v24 = vmax.f32 %v2173_v32, 0.0  ;;  %v1945_v7 = vadd.f32 %v1853_v50, %v9400_v49  ;;  %v2013_v54 = vpop.f32.mrf.mxu0  ;;  %v7450_v50 = vpop.f32.mrf.mxu2 }
 0x274   : > { %v2360_v30 = vld [vmem:[#allocation2 + $0x19] sm:$0xff] }
 0x275   : > { %v7438_v55 = vld [vmem:[#allocation2 + $0x18] sm:$0xff]  ;;  %2293 = vst.msk [vmem:[#allocation2 + $0x21] sm:$0xff] %vm546_vm1, %v2205_v24  ;;  %v2102_v15 = vadd.f32 %v2010_v9, %v1945_v7  ;;  %5491 = vmatmul.msk.f32.gmra.mxu1 %vm546_vm1, %v2360_v30  ;;  %v9402_v9 = vld [vmem:[#allocation50_spill] sm:$0xff]  ;;  %v7453_v46 = vpop.f32.mrf.mxu1 }
 0x276   : > { %5523 = vmatmul.msk.f32.gmra.mxu2 %vm546_vm1, %v7438_v55  ;;  %5474 = vmatmul.msk.f32.gmra.mxu0 %vm546_vm1, %v6695_v47  ;;  %9403 = vst [vmem:[#allocation40_spill] sm:$0xff] %v7453_v46 }
 0x277   : > { %v2138_v33 = vmul.f32 %v7379_v59, %v2102_v15  ;;  %5440 = vmatmul.msk.f32.gmra.mxu3 %vm546_vm1, %v9401_v31  ;;  %v9405_v31 = vld [vmem:[#allocation41_spill] sm:$0xff] }
 0x279   : > { %v2174_v32 = vadd.f32 %v7388_v58, %v2138_v33  ;;  %v9404_v33 = vld [vmem:[#allocation6_spill] sm:$0xff] }
 0x27a   : > { %v1856_v49 = vpop.f32.mrf.mxu3 }
 0x27b   : > { %v2206_v24 = vmax.f32 %v2174_v32, 0.0  ;;  %v1946_v7 = vadd.f32 %v1856_v49, %v9402_v9  ;;  %v2016_v30 = vpop.f32.mrf.mxu0 }
 0x27c   : > { %v2361_v29 = vld [vmem:[#allocation2 + $0x21] sm:$0xff] }
 0x27d   : > { %v7455_v3 = vld [vmem:[#allocation2 + $0x20] sm:$0xff]  ;;  %2294 = vst.msk [vmem:[#allocation2 + $0x31] sm:$0xff] %vm546_vm1, %v2206_v24  ;;  %v2103_v47 = vadd.f32 %v2013_v54, %v1946_v7  ;;  %5492 = vmatmul.msk.f32.gmra.mxu1 %vm546_vm1, %v2361_v29  ;;  %v7468_v7 = vpop.f32.mrf.mxu2 }
 0x27e   : > { %5524 = vmatmul.msk.f32.gmra.mxu2 %vm546_vm1, %v7455_v3  ;;  %5475 = vmatmul.msk.f32.gmra.mxu0 %vm546_vm1, %v9339_v43 }
 0x27f   : > { %v2139_v15 = vmul.f32 %v7379_v59, %v2103_v47  ;;  %5441 = vmatmul.msk.f32.gmra.mxu3 %vm546_vm1, %v9404_v33  ;;  %v7476_v47 = vpop.f32.mrf.mxu1 }
 0x280   : > { %9406 = vst [vmem:[#allocation48_spill] sm:$0xff] %v7476_v47 }
 0x281   : > { %v2175_v32 = vadd.f32 %v7388_v58, %v2139_v15 }
 0x282   : > { %v1859_v49 = vpop.f32.mrf.mxu3 }
 0x283   : > { %v2207_v9 = vmax.f32 %v2175_v32, 0.0  ;;  %v1947_v24 = vadd.f32 %v1859_v49, %v9405_v31  ;;  %v2019_v54 = vpop.f32.mrf.mxu0 }
 0x284   : > { %v2362_v29 = vld [vmem:[#allocation2 + $0x31] sm:$0xff] }
 0x285   : > { %v7470_v46 = vld [vmem:[#allocation2 + $0x30] sm:$0xff]  ;;  %2295 = vst.msk [vmem:[#allocation2 + $0x39] sm:$0xff] %vm546_vm1, %v2207_v9  ;;  %v2104_v43 = vadd.f32 %v2016_v30, %v1947_v24  ;;  %5493 = vmatmul.msk.f32.gmra.mxu1 %vm546_vm1, %v2362_v29 }
 0x286   : > { %5525 = vmatmul.msk.f32.gmra.mxu2 %vm546_vm1, %v7470_v46  ;;  %5476 = vmatmul.msk.f32.gmra.mxu0 %vm546_vm1, %v9342_v36  ;;  %v9407_v30 = vld [vmem:[#allocation54_spill] sm:$0xff]  ;;  %v7491_v36 = vpop.f32.mrf.mxu2 }
 0x287   : > { %v2140_v31 = vmul.f32 %v7379_v59, %v2104_v43  ;;  %5442 = vmatmul.msk.f32.gmra.mxu3 %vm546_vm1, %v9343_v52 }
 0x289   : > { %v2176_v15 = vadd.f32 %v7388_v58, %v2140_v31  ;;  %v7498_v31 = vpop.f32.mrf.mxu1 }
 0x28a   : > { %v1862_v32 = vpop.f32.mrf.mxu3 }
 0x28b   : > { %v2208_v49 = vmax.f32 %v2176_v15, 0.0  ;;  %v1948_v9 = vadd.f32 %v1862_v32, %v9407_v30  ;;  %v2022_v24 = vpop.f32.mrf.mxu0 }
 0x28c   : > { %v2363_v29 = vld [vmem:[#allocation2 + $0x39] sm:$0xff] }
 0x28d   : > { %v7485_v33 = vld [vmem:[#allocation2 + $0x38] sm:$0xff]  ;;  %2296 = vst.msk [vmem:[#allocation2 + $0x49] sm:$0xff] %vm546_vm1, %v2208_v49  ;;  %v2105_v47 = vadd.f32 %v2019_v54, %v1948_v9  ;;  %5494 = vmatmul.msk.f32.gmra.mxu1 %vm546_vm1, %v2363_v29 }
 0x28e   : > { %5526 = vmatmul.msk.f32.gmra.mxu2 %vm546_vm1, %v7485_v33  ;;  %5477 = vmatmul.msk.f32.gmra.mxu0 %vm546_vm1, %v9345_v39  ;;  %v9408_v49 = vld [vmem:[#allocation59_spill] sm:$0xff] }
 0x28f   : > { %v2141_v43 = vmul.f32 %v7379_v59, %v2105_v47  ;;  %5443 = vmatmul.msk.f32.gmra.mxu3 %vm546_vm1, %v9346_v6 }
 0x291   : > { %v2177_v15 = vadd.f32 %v7388_v58, %v2141_v43  ;;  %v7513_v43 = vpop.f32.mrf.mxu2 }
 0x292   : > { %v1865_v54 = vpop.f32.mrf.mxu3  ;;  %9409 = vst [vmem:[#allocation68_spill] sm:$0xff] %v7513_v43 }
 0x293   : > { %v2209_v32 = vmax.f32 %v2177_v15, 0.0  ;;  %v1949_v30 = vadd.f32 %v1865_v54, %v9408_v49  ;;  %v2025_v9 = vpop.f32.mrf.mxu0  ;;  %v7516_v54 = vpop.f32.mrf.mxu1 }
 0x294   : > { %v2364_v29 = vld [vmem:[#allocation2 + $0x49] sm:$0xff]  ;;  %9410 = vst [vmem:[#allocation49_spill] sm:$0xff] %v7516_v54 }
 0x295   : > { %v7502_v52 = vld [vmem:[#allocation2 + $0x48] sm:$0xff]  ;;  %2297 = vst.msk [vmem:[#allocation2 + $0x51] sm:$0xff] %vm546_vm1, %v2209_v32  ;;  %v2106_v39 = vadd.f32 %v2022_v24, %v1949_v30  ;;  %5495 = vmatmul.msk.f32.gmra.mxu1 %vm546_vm1, %v2364_v29 }
 0x296   : > { %5527 = vmatmul.msk.f32.gmra.mxu2 %vm546_vm1, %v7502_v52  ;;  %5478 = vmatmul.msk.f32.gmra.mxu0 %vm546_vm1, %v9347_v19  ;;  %v9411_v19 = vld [vmem:[#allocation45_spill] sm:$0xff] }
 0x297   : > { %v2142_v47 = vmul.f32 %v7379_v59, %v2106_v39  ;;  %5444 = vmatmul.msk.f32.gmra.mxu3 %vm546_vm1, %v9349_v4  ;;  %v1639_v39 = vadd.f32 %v7136_v63, %v9411_v19 }
 0x299   : > { %v2178_v15 = vadd.f32 %v7388_v58, %v2142_v47  ;;  %v9412_v47 = vld [vmem:[#allocation13_spill] sm:$0xff] }
 0x29a   : > { %v1868_v24 = vpop.f32.mrf.mxu3 }
 0x29b   : > { %v2210_v32 = vmax.f32 %v2178_v15, 0.0  ;;  %v1950_v49 = vadd.f32 %v1868_v24, %v7018_v10  ;;  %v2028_v30 = vpop.f32.mrf.mxu0  ;;  %v1793_v15 = vadd.f32 %v7145_v26, %v1639_v39  ;;  %v7534_v24 = vpop.f32.mrf.mxu2  ;;  %v9415_v26 = vld [vmem:[#allocation57_spill] sm:$0xff] }
 0x29c   : > { %v2365_v29 = vld [vmem:[#allocation2 + $0x51] sm:$0xff]  ;;  %v7536_v19 = vpop.f32.mrf.mxu1 }
 0x29d   : > { %v7519_v6 = vld [vmem:[#allocation2 + $0x50] sm:$0xff]  ;;  %2298 = vst.msk [vmem:[#allocation2 + $0x61] sm:$0xff] %vm546_vm1, %v2210_v32  ;;  %v2107_v4 = vadd.f32 %v2025_v9, %v1950_v49  ;;  %5496 = vmatmul.msk.f32.gmra.mxu1 %vm546_vm1, %v2365_v29 }
 0x29e   : > { %5528 = vmatmul.msk.f32.gmra.mxu2 %vm546_vm1, %v7519_v6  ;;  %5479 = vmatmul.msk.f32.gmra.mxu0 %vm546_vm1, %v9350_v57  ;;  %9413 = vst [vmem:[#allocation63_spill] sm:$0xff] %v7536_v19  ;;  %v9414_v57 = vld [vmem:[#allocation58_spill] sm:$0xff] }
 0x29f   : > { %v2143_v10 = vmul.f32 %v7379_v59, %v2107_v4  ;;  %5445 = vmatmul.msk.f32.gmra.mxu3 %vm546_vm1, %v9412_v47  ;;  %v1640_v4 = vadd.f32 %v7147_v22, %v9414_v57 }
 0x2a1   : > { %v2179_v63 = vadd.f32 %v7388_v58, %v2143_v10  ;;  %v9416_v10 = vld [vmem:[#allocation15_spill] sm:$0xff] }
 0x2a2   : > { %v1871_v9 = vpop.f32.mrf.mxu3 }
 0x2a3   : > { %v2211_v32 = vmax.f32 %v2179_v63, 0.0  ;;  %v1951_v49 = vadd.f32 %v1871_v9, %v1793_v15  ;;  %v2031_v29 = vpop.f32.mrf.mxu0  ;;  %v1794_v15 = vadd.f32 %v7156_v35, %v1640_v4  ;;  %v1818_v63 = vrot.slane %v7087_v27, 1  ;;  %v9418_v35 = vld [vmem:[#allocation51_spill] sm:$0xff] }
 0x2a4   : > { %v2366_v54 = vld [vmem:[#allocation2 + $0x61] sm:$0xff]  ;;  %v9217_v9 = vrot.slane %v7106_v28, 2  ;;  %v1641_v4 = vadd.f32 %v7159_v23, %v9418_v35 }
 0x2a5   : > { %v7538_v43 = vld [vmem:[#allocation2 + $0x60] sm:$0xff]  ;;  %2299 = vst.msk [vmem:[#allocation2 + $0x69] sm:$0xff] %vm546_vm1, %v2211_v32  ;;  %v2108_v47 = vadd.f32 %v2028_v30, %v1951_v49  ;;  %5497 = vmatmul.msk.f32.gmra.mxu1 %vm546_vm1, %v2366_v54  ;;  %v1975_v30 = vrot.slane %v7087_v27, 2  ;;  %v9216_v54 = vrot.slane %v7106_v28, 1  ;;  %v7567_v27 = vpop.f32.mrf.mxu1 }
 0x2a6   : > { %5529 = vmatmul.msk.f32.gmra.mxu2 %vm546_vm1, %v7538_v43  ;;  %5480 = vmatmul.msk.f32.gmra.mxu0 %vm546_vm1, %v9415_v26  ;;  %9419 = vst [vmem:[#allocation50_spill] sm:$0xff] %v7567_v27 }
 0x2a7   : > { %v2144_v39 = vmul.f32 %v7379_v59, %v2108_v47  ;;  %5446 = vmatmul.msk.f32.gmra.mxu3 %vm546_vm1, %v9416_v10  ;;  %v7557_v47 = vpop.f32.mrf.mxu2  ;;  %v7579_v23 = vsel %vm901_vm2, %v1975_v30, %v9217_v9 }
 0x2a8   : > { %9417 = vst [vmem:[#allocation36_spill] sm:$0xff] %v7557_v47  ;;  %v9422_v47 = vld [vmem:[#allocation55_spill] sm:$0xff] }
 0x2a9   : > { %v2180_v22 = vadd.f32 %v7388_v58, %v2144_v39  ;;  %v1642_v30 = vadd.f32 %v7172_v38, %v9422_v47 }
 0x2aa   : > { %v1874_v32 = vpop.f32.mrf.mxu3 }
 0x2ab   : > { %v2212_v49 = vmax.f32 %v2180_v22, 0.0  ;;  %v1952_v57 = vadd.f32 %v1874_v32, %v1794_v15  ;;  %v2034_v26 = vpop.f32.mrf.mxu0  ;;  %v9420_v15 = vld [vmem:[#allocation62_spill] sm:$0xff]  ;;  %v7574_v22 = vsel %vm462_vm0, %v1818_v63, %v9216_v54  ;;  %v1795_v32 = vadd.f32 %v7168_v5, %v1641_v4  ;;  %v9423_v4 = vld [vmem:[#allocation65_spill] sm:$0xff] }
 0x2ac   : > { %v2367_v19 = vld [vmem:[#allocation2 + $0x69] sm:$0xff]  ;;  %v1796_v38 = vadd.f32 %v7181_v0, %v1642_v30  ;;  %v5553_v0 = vld [vmem:[%s9108_s4 + $0x20] sm:$0xff] }
 0x2ad   : > { %v7559_v10 = vld [vmem:[#allocation2 + $0x68] sm:$0xff]  ;;  %2300 = vst.msk [vmem:[#allocation2 + $0x79] sm:$0xff] %vm546_vm1, %v2212_v49  ;;  %v2109_v39 = vadd.f32 %v2031_v29, %v1952_v57  ;;  %5498 = vmatmul.msk.f32.gmra.mxu1 %vm546_vm1, %v2367_v19  ;;  %v5587_v30 = vld [vmem:[%s9108_s4 + $0x30] sm:$0xff]  ;;  %2957 = vmatpush.msrb.mxu3 %v5553_v0 }
 0x2ae   : > { %5530 = vmatmul.msk.f32.gmra.mxu2 %vm546_vm1, %v7559_v10  ;;  %5481 = vmatmul.msk.f32.gmra.mxu0 %vm546_vm1, %v9420_v15  ;;  %v9421_v19 = vld [vmem:[#allocation17_spill] sm:$0xff] }
 0x2af   : > { %v2145_v29 = vmul.f32 %v7379_v59, %v2109_v39  ;;  %5447 = vmatmul.msk.f32.gmra.mxu3 %vm546_vm1, %v9421_v19  ;;  %v7594_v5 = vpop.f32.mrf.mxu2  ;;  %v9425_v19 = vld [vmem:[#allocation60_spill] sm:$0xff]  ;;  %3233 = vmatpush.msrb.mxu0 %v5587_v30 }
 0x2b1   : > { %v2181_v49 = vadd.f32 %v7388_v58, %v2145_v29 }
 0x2b2   : > { %v1877_v57 = vpop.f32.mrf.mxu3 }
 0x2b3   : > { %v2213_v35 = vmax.f32 %v2181_v49, 0.0  ;;  %v1953_v15 = vadd.f32 %v1877_v57, %v1795_v32  ;;  %v2037_v27 = vpop.f32.mrf.mxu0  ;;  %v9424_v32 = vld [vmem:[#allocation19_spill] sm:$0xff]  ;;  %v7601_v49 = vpop.f32.mrf.mxu1 }
 0x2b4   : > { %v2368_v63 = vld [vmem:[#allocation2 + $0x79] sm:$0xff] }
 0x2b5   : > { %v7586_v54 = vld [vmem:[#allocation2 + $0x78] sm:$0xff]  ;;  %2301 = vst.msk [vmem:[#allocation2 + $0x81] sm:$0xff] %vm546_vm1, %v2213_v35  ;;  %v2110_v39 = vadd.f32 %v2034_v26, %v1953_v15  ;;  %5499 = vmatmul.msk.f32.gmra.mxu1 %vm546_vm1, %v2368_v63 }
 0x2b6   : > { %5531 = vmatmul.msk.f32.gmra.mxu2 %vm546_vm1, %v7586_v54  ;;  %5482 = vmatmul.msk.f32.gmra.mxu0 %vm546_vm1, %v9423_v4  ;;  %v1643_v4 = vadd.f32 %v7187_v51, %v9425_v19 }
 0x2b7   : > { %v2146_v29 = vmul.f32 %v7379_v59, %v2110_v39  ;;  %5448 = vmatmul.msk.f32.gmra.mxu3 %vm546_vm1, %v9424_v32 }
 0x2b8   : > { %v1797_v19 = vadd.f32 %v7196_v56, %v1643_v4 }
 0x2b9   : > { %v2182_v26 = vadd.f32 %v7388_v58, %v2146_v29  ;;  %v9426_v29 = vld [vmem:[#allocation34_spill] sm:$0xff] }
 0x2ba   : > { %v1880_v47 = vpop.f32.mrf.mxu3 }
 0x2bb   : > { %v2214_v57 = vmax.f32 %v2182_v26, 0.0  ;;  %v1954_v35 = vadd.f32 %v1880_v47, %v1796_v38  ;;  %v2040_v15 = vpop.f32.mrf.mxu0  ;;  %v7628_v26 = vpop.f32.mrf.mxu1 }
 0x2bc   : > { %v2369_v63 = vld [vmem:[#allocation2 + $0x81] sm:$0xff] }
 0x2bd   : > { %v7605_v9 = vld [vmem:[#allocation2 + $0x80] sm:$0xff]  ;;  %2302 = vst.msk [vmem:[#allocation2 + $0x91] sm:$0xff] %vm546_vm1, %v2214_v57  ;;  %v2111_v39 = vadd.f32 %v2037_v27, %v1954_v35  ;;  %5500 = vmatmul.msk.f32.gmra.mxu1 %vm546_vm1, %v2369_v63  ;;  %v7624_v27 = vpop.f32.mrf.mxu2 }
 0x2be   : > { %5532 = vmatmul.msk.f32.gmra.mxu2 %vm546_vm1, %v7605_v9  ;;  %5483 = vmatmul.msk.f32.gmra.mxu0 %vm546_vm1, %v9426_v29 }
 0x2bf   : > { %v2147_v51 = vmul.f32 %v7379_v59, %v2111_v39  ;;  %5449 = vmatmul.msk.f32.gmra.mxu3 %vm546_vm1, %v7081_v44  ;;  %v1644_v39 = vadd.f32 %v7198_v41, %v7089_v37 }
 0x2c1   : > { %v2183_v38 = vadd.f32 %v7388_v58, %v2147_v51  ;;  %v1798_v4 = vadd.f32 %v7207_v11, %v1644_v39  ;;  %v5655_v39 = vld [vmem:[%s9108_s4 + $0x50] sm:$0xff] }
 0x2c2   : > { %v1883_v47 = vpop.f32.mrf.mxu3  ;;  %3785 = vmatpush.msrb.mxu2 %v5655_v39 }
 0x2c3   : > { %v2215_v57 = vmax.f32 %v2183_v38, 0.0  ;;  %v1955_v35 = vadd.f32 %v1883_v47, %v1797_v19  ;;  %v2043_v63 = vpop.f32.mrf.mxu0  ;;  %v7647_v47 = vpop.f32.mrf.mxu1 }
 0x2c4   : > { %v2370_v29 = vld [vmem:[#allocation2 + $0x91] sm:$0xff] }
 0x2c5   : > { %v7630_v0 = vld [vmem:[#allocation2 + $0x90] sm:$0xff]  ;;  %2303 = vst.msk [vmem:[#allocation2 + $0x99] sm:$0xff] %vm546_vm1, %v2215_v57  ;;  %v2112_v30 = vadd.f32 %v2040_v15, %v1955_v35  ;;  %5501 = vmatmul.msk.f32.gmra.mxu1 %vm546_vm1, %v2370_v29  ;;  %v7645_v41 = vpop.f32.mrf.mxu2  ;;  %v1645_v29 = vadd.f32 %v7210_v2, %v7108_v20 }
 0x2c6   : > { %5533 = vmatmul.msk.f32.gmra.mxu2 %vm546_vm1, %v7630_v0  ;;  %5484 = vmatmul.msk.f32.gmra.mxu0 %vm546_vm1, %v7097_v42  ;;  %v411_v42 = vld [vmem:[%s6092_s12 + $0x1a8] sm:$0x3] }
 0x2c7   : > { %v2148_v56 = vmul.f32 %v7379_v59, %v2112_v30  ;;  %5450 = vmatmul.msk.f32.gmra.mxu3 %vm546_vm1, %v7101_v14  ;;  %v5621_v30 = vld [vmem:[%s9108_s4 + $0x40] sm:$0xff]  ;;  %v1978_v20 = vrot.slane %v411_v42, 2 }
 0x2c8   : > { %3509 = vmatpush.msrb.mxu1 %v5621_v30 }
 0x2c9   : > { %v2184_v37 = vadd.f32 %v7388_v58, %v2148_v56  ;;  %v1799_v56 = vadd.f32 %v7219_v16, %v1645_v29  ;;  %v1646_v16 = vadd.f32 %v7223_v21, %v7116_v25 }
 0x2ca   : > { %v1886_v15 = vpop.f32.mrf.mxu3 }
 0x2cb   : > { %v2216_v51 = vmax.f32 %v2184_v37, 0.0  ;;  %v1956_v19 = vadd.f32 %v1886_v15, %v1798_v4  ;;  %v2046_v38 = vpop.f32.mrf.mxu0  ;;  %v7687_v30 = vpop.f32.mrf.mxu1 }
 0x2cc   : > { %v2371_v57 = vld [vmem:[#allocation2 + $0x99] sm:$0xff] }
 0x2cd   : > { %v7649_v35 = vld [vmem:[#allocation2 + $0x98] sm:$0xff]  ;;  %2304 = vst.msk [vmem:[#allocation2 + $0xa9] sm:$0xff] %vm546_vm1, %v2216_v51  ;;  %v2113_v11 = vadd.f32 %v2043_v63, %v1956_v19  ;;  %5502 = vmatmul.msk.f32.gmra.mxu1 %vm546_vm1, %v2371_v57  ;;  %v1821_v63 = vrot.slane %v411_v42, 1  ;;  %v9427_v57 = vrot.slane %v7106_v28, 2  ;;  %v7674_v39 = vpop.f32.mrf.mxu2 }
 0x2ce   : > { %5534 = vmatmul.msk.f32.gmra.mxu2 %vm546_vm1, %v7649_v35  ;;  %5485 = vmatmul.msk.f32.gmra.mxu0 %vm546_vm1, %v7579_v23 }
 0x2cf   : > { %v2149_v2 = vmul.f32 %v7379_v59, %v2113_v11  ;;  %5451 = vmatmul.msk.f32.gmra.mxu3 %vm546_vm1, %v7574_v22  ;;  %v1979_v23 = vsel %vm901_vm2, %v9427_v57, %v1978_v20  ;;  %v9428_v22 = vrot.slane %v7106_v28, 1  ;;  %v1800_v28 = vadd.f32 %v7238_v45, %v1646_v16 }
 0x2d1   : > { %v2185_v4 = vadd.f32 %v7388_v58, %v2149_v2  ;;  %v1822_v42 = vsel %vm462_vm0, %v9428_v22, %v1821_v63 }
 0x2d2   : > { %v1889_v37 = vpop.f32.mrf.mxu3 }
 0x2d3   : > { %v2217_v15 = vmax.f32 %v2185_v4, 0.0  ;;  %v1957_v51 = vadd.f32 %v1889_v37, %v1799_v56  ;;  %v2049_v19 = vpop.f32.mrf.mxu0  ;;  %v2811_v37 = vld [vmem:[#allocation2 + $0x2] sm:$0xff]  ;;  %v7706_v57 = vpop.f32.mrf.mxu1 }
 0x2d4   : > { %v2372_v11 = vld [vmem:[#allocation2 + $0xa9] sm:$0xff] }
 0x2d5   : > { %v7676_v14 = vld [vmem:[#allocation2 + $0xa8] sm:$0xff]  ;;  %2305 = vst.msk [vmem:[#allocation2 + $0xb1] sm:$0xff] %vm546_vm1, %v2217_v15  ;;  %v2114_v29 = vadd.f32 %v2046_v38, %v1957_v51  ;;  %5503 = vmatmul.msk.f32.gmra.mxu1 %vm546_vm1, %v2372_v11  ;;  %v1647_v15 = vadd.f32 %v7251_v53, %v7123_v34  ;;  %v7702_v45 = vpop.f32.mrf.mxu2 }
 0x2d6   : > { %5535 = vmatmul.msk.f32.gmra.mxu2 %vm546_vm1, %v7676_v14  ;;  %5486 = vmatmul.msk.f32.gmra.mxu0 %vm546_vm1, %v1979_v23 }
 0x2d7   : > { %v2150_v2 = vmul.f32 %v7379_v59, %v2114_v29  ;;  %5452 = vmatmul.msk.f32.gmra.mxu3 %vm546_vm1, %v1822_v42  ;;  %v1801_v34 = vadd.f32 %v7278_v8, %v1647_v15 }
 0x2d9   : > { %v2186_v25 = vadd.f32 %v7388_v58, %v2150_v2  ;;  %v2812_v2 = vld [vmem:[#allocation2 + $0xa] sm:$0xff] }
 0x2da   : > { %v1892_v21 = vpop.f32.mrf.mxu3 }
 0x2db   : > { %v2218_v20 = vmax.f32 %v2186_v25, 0.0  ;;  %v1958_v38 = vadd.f32 %v1892_v21, %v1800_v28  ;;  %v2052_v63 = vpop.f32.mrf.mxu0 }
 0x2dc   : > { %v2373_v56 = vld [vmem:[#allocation2 + $0xb1] sm:$0xff] }
 0x2dd   : > { %v7694_v4 = vld [vmem:[#allocation2 + $0xb0] sm:$0xff]  ;;  %2306 = vst.msk [vmem:[#allocation2 + $0xc1] sm:$0xff] %vm546_vm1, %v2218_v20  ;;  %v2115_v51 = vadd.f32 %v2049_v19, %v1958_v38  ;;  %5504 = vmatmul.msk.f32.gmra.mxu1 %vm546_vm1, %v2373_v56  ;;  %v7720_v8 = vpop.f32.mrf.mxu2 }
 0x2de   : > { %5536 = vmatmul.msk.f32.gmra.mxu2 %vm546_vm1, %v7694_v4  ;;  %5589 = vmatmul.msk.f32.vlgmr.msrb.gmra.mxu0 %vm546_vm1, %v7438_v55  ;;  %v1648_v55 = vadd.f32 %v7284_v18, %v7130_v61 }
 0x2df   : > { %v2151_v23 = vmul.f32 %v7379_v59, %v2115_v51  ;;  %5555 = vmatmul.msk.f32.vlgmr.msrb.gmra.mxu3 %vm546_vm1, %v2811_v37 }
 0x2e0   : > { %v1802_v61 = vadd.f32 %v7319_v62, %v1648_v55  ;;  %v7738_v62 = vld [vmem:[#allocation2 + $0x1a] sm:$0xff] }
 0x2e1   : > { %v2187_v53 = vadd.f32 %v7388_v58, %v2151_v23 }
 0x2e2   : > { %v1895_v19 = vpop.f32.mrf.mxu3 }
 0x2e3   : > { %v2219_v11 = vmax.f32 %v2187_v53, 0.0  ;;  %v1959_v22 = vadd.f32 %v1895_v19, %v1801_v34  ;;  %v2055_v42 = vpop.f32.mrf.mxu0  ;;  %v7726_v21 = vpop.f32.mrf.mxu1 }
 0x2e4   : > { %v2374_v16 = vld [vmem:[#allocation2 + $0xc1] sm:$0xff] }
 0x2e5   : > { %v7712_v29 = vld [vmem:[#allocation2 + $0xc0] sm:$0xff]  ;;  %2307 = vst.msk [vmem:[#allocation2 + $0xc9] sm:$0xff] %vm546_vm1, %v2219_v11  ;;  %v2116_v28 = vadd.f32 %v2052_v63, %v1959_v22  ;;  %5505 = vmatmul.msk.f32.gmra.mxu1 %vm546_vm1, %v2374_v16  ;;  %v7745_v34 = vpop.f32.mrf.mxu2 }
 0x2e6   : > { %5537 = vmatmul.msk.f32.gmra.mxu2 %vm546_vm1, %v7712_v29  ;;  %5590 = vmatmul.msk.f32.gmra.mxu0 %vm546_vm1, %v7455_v3  ;;  %v1649_v3 = vadd.f32 %v7326_v17, %v7139_v60 }
 0x2e7   : > { %v2152_v25 = vmul.f32 %v7379_v59, %v2116_v28  ;;  %5556 = vmatmul.msk.f32.gmra.mxu3 %vm546_vm1, %v2812_v2 }
 0x2e8   : > { %v1803_v60 = vadd.f32 %v7351_v13, %v1649_v3  ;;  %v7760_v13 = vld [vmem:[#allocation2 + $0x22] sm:$0xff]  ;;  %v9431_v3 = vld [vmem:[#allocation39_spill] sm:$0xff] }
 0x2e9   : > { %v2188_v18 = vadd.f32 %v7388_v58, %v2152_v25 }
 0x2ea   : > { %v1898_v20 = vpop.f32.mrf.mxu3 }
 0x2eb   : > { %v2220_v38 = vmax.f32 %v2188_v18, 0.0  ;;  %v1960_v63 = vadd.f32 %v1898_v20, %v1802_v61  ;;  %v2058_v56 = vpop.f32.mrf.mxu0 }
 0x2ec   : > { %v2375_v37 = vld [vmem:[#allocation2 + $0xc9] sm:$0xff] }
 0x2ed   : > { %v7730_v15 = vld [vmem:[#allocation2 + $0xc8] sm:$0xff]  ;;  %2308 = vst.msk [vmem:[#allocation2 + $0xd9] sm:$0xff] %vm546_vm1, %v2220_v38  ;;  %v2117_v51 = vadd.f32 %v2055_v42, %v1960_v63  ;;  %5506 = vmatmul.msk.f32.gmra.mxu1 %vm546_vm1, %v2375_v37 }
 0x2ee   : > { %5538 = vmatmul.msk.f32.gmra.mxu2 %vm546_vm1, %v7730_v15  ;;  %5591 = vmatmul.msk.f32.gmra.mxu0 %vm546_vm1, %v7470_v46  ;;  %v1650_v46 = vadd.f32 %v7359_v48, %v7150_v40 }
 0x2ef   : > { %v2153_v23 = vmul.f32 %v7379_v59, %v2117_v51  ;;  %5557 = vmatmul.msk.f32.gmra.mxu3 %vm546_vm1, %v7738_v62  ;;  %v1651_v51 = vadd.f32 %v9431_v3, %v7161_v12 }
 0x2f0   : > { %v1804_v48 = vadd.f32 %v7392_v1, %v1650_v46  ;;  %v7782_v1 = vld [vmem:[#allocation2 + $0x32] sm:$0xff] }
 0x2f1   : > { %v2189_v17 = vadd.f32 %v7388_v58, %v2153_v23 }
 0x2f2   : > { %v1901_v53 = vpop.f32.mrf.mxu3  ;;  %v2512_v19 = vpop.f32.mrf.mxu1 }
 0x2f3   : > { %v2221_v11 = vmax.f32 %v2189_v17, 0.0  ;;  %v1961_v22 = vadd.f32 %v1901_v53, %v1803_v60  ;;  %v2061_v42 = vpop.f32.mrf.mxu0  ;;  %v9432_v17 = vld [vmem:[#allocation32_spill] sm:$0xff] }
 0x2f4   : > { %v7749_v16 = vld [vmem:[#allocation2 + $0xd9] sm:$0xff]  ;;  %v1805_v53 = vadd.f32 %v9432_v17, %v1651_v51 }
 0x2f5   : > { %9429 = vst [vmem:[#allocation41_spill] sm:$0xff] %v7749_v16  ;;  %v7751_v2 = vld [vmem:[#allocation2 + $0xd8] sm:$0xff]  ;;  %v2118_v55 = vadd.f32 %v2058_v56, %v1961_v22  ;;  %5507 = vmatmul.msk.f32.gmra.mxu1 %vm546_vm1, %v7749_v16 }
 0x2f6   : > { %2309 = vst.msk [vmem:[#allocation2 + $0xe1] sm:$0xff] %vm546_vm1, %v2221_v11  ;;  %5539 = vmatmul.msk.f32.gmra.mxu2 %vm546_vm1, %v7751_v2  ;;  %5592 = vmatmul.msk.f32.gmra.mxu0 %vm546_vm1, %v7485_v33 }
 0x2f7   : > { %v2154_v28 = vmul.f32 %v7379_v59, %v2118_v55  ;;  %5558 = vmatmul.msk.f32.gmra.mxu3 %vm546_vm1, %v7760_v13 }
 0x2f9   : > { %v2721_v40 = vpop.f32.mrf.mxu2  ;;  %v2190_v25 = vadd.f32 %v7388_v58, %v2154_v28 }
 0x2fa   : > { %v7769_v61 = vadd.f32 %v2721_v40, %v2512_v19  ;;  %v1904_v18 = vpop.f32.mrf.mxu3  ;;  %v2515_v20 = vpop.f32.mrf.mxu1 }
 0x2fb   : > { %v2222_v38 = vmax.f32 %v2190_v25, 0.0  ;;  %v1962_v63 = vadd.f32 %v1904_v18, %v1804_v48  ;;  %v2064_v56 = vpop.f32.mrf.mxu0  ;;  %v9434_v48 = vld [vmem:[#allocation47_spill] sm:$0xff]  ;;  %v9435_v25 = vld [vmem:[#allocation44_spill] sm:$0xff] }
 0x2fc   : > { %v1652_v18 = vadd.f32 %v9435_v25, %v9434_v48 }
 0x2fd   : > { %v7771_v37 = vld [vmem:[#allocation2 + $0xe1] sm:$0xff]  ;;  %2310 = vst.msk [vmem:[#allocation2 + $0xf1] sm:$0xff] %vm546_vm1, %v2222_v38  ;;  %v2119_v23 = vadd.f32 %v2061_v42, %v1962_v63 }
 0x2fe   : > { %9430 = vst [vmem:[#allocation54_spill] sm:$0xff] %v7771_v37  ;;  %v7773_v33 = vld [vmem:[#allocation2 + $0xe0] sm:$0xff]  ;;  %5508 = vmatmul.msk.f32.gmra.mxu1 %vm546_vm1, %v7771_v37  ;;  %5593 = vmatmul.msk.f32.gmra.mxu0 %vm546_vm1, %v7502_v52  ;;  %v1806_v51 = vadd.f32 %v7450_v50, %v1652_v18  ;;  %v7826_v50 = vld [vmem:[#allocation2 + $0x4a] sm:$0xff] }
 0x2ff   : > { %5540 = vmatmul.msk.f32.gmra.mxu2 %vm546_vm1, %v7773_v33  ;;  %v2155_v60 = vmul.f32 %v7379_v59, %v2119_v23  ;;  %5559 = vmatmul.msk.f32.gmra.mxu3 %vm546_vm1, %v7782_v1 }
 0x301   : > { %v2724_v12 = vpop.f32.mrf.mxu2  ;;  %v2191_v19 = vadd.f32 %v7388_v58, %v2155_v60 }
 0x302   : > { %v7791_v11 = vadd.f32 %v2724_v12, %v2515_v20  ;;  %v1907_v22 = vpop.f32.mrf.mxu3  ;;  %v2518_v42 = vpop.f32.mrf.mxu1  ;;  %v7804_v20 = vld [vmem:[#allocation2 + $0x3a] sm:$0xff] }
 0x303   : > { %v2223_v46 = vmax.f32 %v2191_v19, 0.0  ;;  %v1963_v55 = vadd.f32 %v1907_v22, %v1805_v53  ;;  %v2067_v28 = vpop.f32.mrf.mxu0 }
 0x304   : > { %v7793_v40 = vld [vmem:[#allocation2 + $0xf1] sm:$0xff] }
 0x305   : > { %9433 = vst [vmem:[#allocation59_spill] sm:$0xff] %v7793_v40  ;;  %v7795_v52 = vld [vmem:[#allocation2 + $0xf0] sm:$0xff]  ;;  %v2120_v38 = vadd.f32 %v2064_v56, %v1963_v55  ;;  %v9438_v55 = vld [vmem:[#allocation40_spill] sm:$0xff] }
 0x306   : > { %2311 = vst.msk [vmem:[#allocation2 + $0xf9] sm:$0xff] %vm546_vm1, %v2223_v46  ;;  %5509 = vmatmul.msk.f32.gmra.mxu1 %vm546_vm1, %v7793_v40  ;;  %5594 = vmatmul.msk.f32.gmra.mxu0 %vm546_vm1, %v7519_v6  ;;  %v9437_v46 = vld [vmem:[#allocation53_spill] sm:$0xff] }
 0x307   : > { %5541 = vmatmul.msk.f32.gmra.mxu2 %vm546_vm1, %v7795_v52  ;;  %v2156_v63 = vmul.f32 %v7379_v59, %v2120_v38  ;;  %5560 = vmatmul.msk.f32.gmra.mxu3 %vm546_vm1, %v7804_v20  ;;  %v1653_v48 = vadd.f32 %v9438_v55, %v9437_v46  ;;  %v9440_v46 = vld [vmem:[#allocation69_spill] sm:$0xff]  ;;  %v9441_v55 = vld [vmem:[#allocation48_spill] sm:$0xff] }
 0x309   : > { %v2727_v3 = vpop.f32.mrf.mxu2  ;;  %v2192_v56 = vadd.f32 %v7388_v58, %v2156_v63  ;;  %v1807_v38 = vadd.f32 %v7468_v7, %v1653_v48  ;;  %v7848_v7 = vld [vmem:[#allocation2 + $0x52] sm:$0xff] }
 0x30a   : > { %v7813_v23 = vadd.f32 %v2727_v3, %v2518_v42  ;;  %v1910_v60 = vpop.f32.mrf.mxu3  ;;  %v2521_v12 = vpop.f32.mrf.mxu1 }
 0x30b   : > { %v2224_v17 = vmax.f32 %v2192_v56, 0.0  ;;  %v1964_v53 = vadd.f32 %v1910_v60, %v1806_v51  ;;  %v2070_v19 = vpop.f32.mrf.mxu0 }
 0x30d   : > { %v7815_v22 = vld [vmem:[#allocation2 + $0xf9] sm:$0xff]  ;;  %2312 = vst.msk [vmem:[#allocation2 + $0x109] sm:$0xff] %vm546_vm1, %v2224_v17  ;;  %v2121_v25 = vadd.f32 %v2067_v28, %v1964_v53 }
 0x30e   : > { %9436 = vst [vmem:[#allocation45_spill] sm:$0xff] %v7815_v22  ;;  %v7817_v6 = vld [vmem:[#allocation2 + $0xf8] sm:$0xff]  ;;  %5510 = vmatmul.msk.f32.gmra.mxu1 %vm546_vm1, %v7815_v22  ;;  %5595 = vmatmul.msk.f32.gmra.mxu0 %vm546_vm1, %v7538_v43 }
 0x30f   : > { %5542 = vmatmul.msk.f32.gmra.mxu2 %vm546_vm1, %v7817_v6  ;;  %v2157_v42 = vmul.f32 %v7379_v59, %v2121_v25  ;;  %5561 = vmatmul.msk.f32.gmra.mxu3 %vm546_vm1, %v7826_v50  ;;  %v1654_v25 = vadd.f32 %v9441_v55, %v9440_v46 }
 0x311   : > { %v2730_v18 = vpop.f32.mrf.mxu2  ;;  %v2193_v28 = vadd.f32 %v7388_v58, %v2157_v42  ;;  %v1808_v42 = vadd.f32 %v7491_v36, %v1654_v25  ;;  %v7870_v36 = vld [vmem:[#allocation2 + $0x62] sm:$0xff] }
 0x312   : > { %v7835_v63 = vadd.f32 %v2730_v18, %v2521_v12  ;;  %v1913_v3 = vpop.f32.mrf.mxu3  ;;  %v2524_v51 = vpop.f32.mrf.mxu1  ;;  %v9444_v25 = vld [vmem:[#allocation68_spill] sm:$0xff] }
 0x313   : > { %v2225_v56 = vmax.f32 %v2193_v28, 0.0  ;;  %v1965_v60 = vadd.f32 %v1913_v3, %v1807_v38  ;;  %v2073_v17 = vpop.f32.mrf.mxu0 }
 0x314   : > { %v7837_v53 = vld [vmem:[#allocation2 + $0x109] sm:$0xff] }
 0x315   : > { %9439 = vst [vmem:[#allocation58_spill] sm:$0xff] %v7837_v53  ;;  %v7839_v43 = vld [vmem:[#allocation2 + $0x108] sm:$0xff]  ;;  %v2122_v44 = vadd.f32 %v2070_v19, %v1965_v60 }
 0x316   : > { %2313 = vst.msk [vmem:[#allocation2 + $0x111] sm:$0xff] %vm546_vm1, %v2225_v56  ;;  %5511 = vmatmul.msk.f32.gmra.mxu1 %vm546_vm1, %v7837_v53  ;;  %5596 = vmatmul.msk.f32.gmra.mxu0 %vm546_vm1, %v7559_v10 }
 0x317   : > { %5543 = vmatmul.msk.f32.gmra.mxu2 %vm546_vm1, %v7839_v43  ;;  %v2158_v12 = vmul.f32 %v7379_v59, %v2122_v44  ;;  %5562 = vmatmul.msk.f32.gmra.mxu3 %vm546_vm1, %v7848_v7  ;;  %v9443_v44 = vld [vmem:[#allocation70_spill] sm:$0xff] }
 0x318   : > { %v1655_v55 = vadd.f32 %v7498_v31, %v9443_v44 }
 0x319   : > { %v2733_v48 = vpop.f32.mrf.mxu2  ;;  %v2194_v19 = vadd.f32 %v7388_v58, %v2158_v12 }
 0x31a   : > { %v7857_v18 = vadd.f32 %v2733_v48, %v2524_v51  ;;  %v1916_v38 = vpop.f32.mrf.mxu3  ;;  %v2527_v28 = vpop.f32.mrf.mxu1  ;;  %v1809_v12 = vadd.f32 %v9444_v25, %v1655_v55 }
 0x31b   : > { %v2226_v3 = vmax.f32 %v2194_v19, 0.0  ;;  %v1966_v56 = vadd.f32 %v1916_v38, %v1808_v42  ;;  %v2076_v60 = vpop.f32.mrf.mxu0 }
 0x31d   : > { %v7859_v46 = vld [vmem:[#allocation2 + $0x111] sm:$0xff]  ;;  %2314 = vst.msk [vmem:[#allocation2 + $0x121] sm:$0xff] %vm546_vm1, %v2226_v3  ;;  %v2123_v32 = vadd.f32 %v2073_v17, %v1966_v56 }
 0x31e   : > { %9442 = vst [vmem:[#allocation57_spill] sm:$0xff] %v7859_v46  ;;  %v7861_v10 = vld [vmem:[#allocation2 + $0x110] sm:$0xff]  ;;  %5512 = vmatmul.msk.f32.gmra.mxu1 %vm546_vm1, %v7859_v46  ;;  %5597 = vmatmul.msk.f32.gmra.mxu0 %vm546_vm1, %v7586_v54  ;;  %v9447_v46 = vld [vmem:[#allocation49_spill] sm:$0xff] }
 0x31f   : > { %5544 = vmatmul.msk.f32.gmra.mxu2 %vm546_vm1, %v7861_v10  ;;  %v2159_v51 = vmul.f32 %v7379_v59, %v2123_v32  ;;  %5563 = vmatmul.msk.f32.gmra.mxu3 %vm546_vm1, %v7870_v36  ;;  %v9446_v32 = vld [vmem:[#allocation66_spill] sm:$0xff] }
 0x320   : > { %v1656_v53 = vadd.f32 %v9447_v46, %v9446_v32  ;;  %v9450_v32 = vld [vmem:[#allocation63_spill] sm:$0xff] }
 0x321   : > { %v2736_v31 = vpop.f32.mrf.mxu2  ;;  %v2195_v17 = vadd.f32 %v7388_v58, %v2159_v51 }
 0x322   : > { %v7879_v48 = vadd.f32 %v2736_v31, %v2527_v28  ;;  %v1919_v42 = vpop.f32.mrf.mxu3  ;;  %v2530_v19 = vpop.f32.mrf.mxu1  ;;  %v7892_v28 = vld [vmem:[#allocation2 + $0x6a] sm:$0xff]  ;;  %v1810_v51 = vadd.f32 %v7534_v24, %v1656_v53  ;;  %v7914_v24 = vld [vmem:[#allocation2 + $0x7a] sm:$0xff] }
 0x323   : > { %v2227_v38 = vmax.f32 %v2195_v17, 0.0  ;;  %v1967_v3 = vadd.f32 %v1919_v42, %v1809_v12  ;;  %v2079_v56 = vpop.f32.mrf.mxu0 }
 0x324   : > { %v7881_v44 = vld [vmem:[#allocation2 + $0x121] sm:$0xff] }
 0x325   : > { %9445 = vst [vmem:[#allocation51_spill] sm:$0xff] %v7881_v44  ;;  %v7883_v54 = vld [vmem:[#allocation2 + $0x120] sm:$0xff]  ;;  %v2124_v22 = vadd.f32 %v2076_v60, %v1967_v3 }
 0x326   : > { %2315 = vst.msk [vmem:[#allocation2 + $0x129] sm:$0xff] %vm546_vm1, %v2227_v38  ;;  %5513 = vmatmul.msk.f32.gmra.mxu1 %vm546_vm1, %v7881_v44  ;;  %5598 = vmatmul.msk.f32.gmra.mxu0 %vm546_vm1, %v7605_v9 }
 0x327   : > { %5545 = vmatmul.msk.f32.gmra.mxu2 %vm546_vm1, %v7883_v54  ;;  %v2160_v55 = vmul.f32 %v7379_v59, %v2124_v22  ;;  %5564 = vmatmul.msk.f32.gmra.mxu3 %vm546_vm1, %v7892_v28  ;;  %v9449_v22 = vld [vmem:[#allocation28_spill] sm:$0xff] }
 0x328   : > { %v1657_v44 = vadd.f32 %v9450_v32, %v9449_v22 }
 0x329   : > { %v2739_v46 = vpop.f32.mrf.mxu2  ;;  %v2196_v60 = vadd.f32 %v7388_v58, %v2160_v55  ;;  %v9451_v55 = vld [vmem:[#allocation36_spill] sm:$0xff] }
 0x32a   : > { %v7901_v31 = vadd.f32 %v2739_v46, %v2530_v19  ;;  %v1922_v25 = vpop.f32.mrf.mxu3  ;;  %v2533_v12 = vpop.f32.mrf.mxu1  ;;  %v1811_v46 = vadd.f32 %v9451_v55, %v1657_v44  ;;  %v7936_v44 = vld [vmem:[#allocation2 + $0x82] sm:$0xff] }
 0x32b   : > { %v2228_v17 = vmax.f32 %v2196_v60, 0.0  ;;  %v1968_v42 = vadd.f32 %v1922_v25, %v1810_v51  ;;  %v2082_v38 = vpop.f32.mrf.mxu0 }
 0x32d   : > { %v7903_v3 = vld [vmem:[#allocation2 + $0x129] sm:$0xff]  ;;  %2316 = vst.msk [vmem:[#allocation2 + $0x139] sm:$0xff] %vm546_vm1, %v2228_v17  ;;  %v2125_v40 = vadd.f32 %v2079_v56, %v1968_v42 }
 0x32e   : > { %9448 = vst [vmem:[#allocation62_spill] sm:$0xff] %v7903_v3  ;;  %v7905_v9 = vld [vmem:[#allocation2 + $0x128] sm:$0xff]  ;;  %5514 = vmatmul.msk.f32.gmra.mxu1 %vm546_vm1, %v7903_v3  ;;  %5599 = vmatmul.msk.f32.gmra.mxu0 %vm546_vm1, %v7630_v0  ;;  %v9454_v3 = vld [vmem:[#allocation50_spill] sm:$0xff] }
 0x32f   : > { %5546 = vmatmul.msk.f32.gmra.mxu2 %vm546_vm1, %v7905_v9  ;;  %v2161_v53 = vmul.f32 %v7379_v59, %v2125_v40  ;;  %5565 = vmatmul.msk.f32.gmra.mxu3 %vm546_vm1, %v7914_v24  ;;  %v9453_v40 = vld [vmem:[#allocation67_spill] sm:$0xff] }
 0x330   : > { %v1658_v37 = vadd.f32 %v9454_v3, %v9453_v40 }
 0x331   : > { %v2742_v19 = vpop.f32.mrf.mxu2  ;;  %v2197_v56 = vadd.f32 %v7388_v58, %v2161_v53 }
 0x332   : > { %v7923_v51 = vadd.f32 %v2742_v19, %v2533_v12  ;;  %v1925_v60 = vpop.f32.mrf.mxu3  ;;  %v2536_v25 = vpop.f32.mrf.mxu1  ;;  %v1812_v53 = vadd.f32 %v7594_v5, %v1658_v37  ;;  %v7965_v5 = vld [vmem:[%s9106_s2] ss:$0 sm:$0xff] }
 0x333   : > { %v2229_v17 = vmax.f32 %v2197_v56, 0.0  ;;  %v1969_v42 = vadd.f32 %v1925_v60, %v1811_v46  ;;  %v2085_v22 = vpop.f32.mrf.mxu0 }
 0x334   : > { %v7925_v32 = vld [vmem:[#allocation2 + $0x139] sm:$0xff] }
 0x335   : > { %9452 = vst [vmem:[#allocation55_spill] sm:$0xff] %v7925_v32  ;;  %v7927_v0 = vld [vmem:[#allocation2 + $0x138] sm:$0xff]  ;;  %v2126_v16 = vadd.f32 %v2082_v38, %v1969_v42 }
 0x336   : > { %2317 = vst.msk [vmem:[#allocation2 + $0x141] sm:$0xff] %vm546_vm1, %v2229_v17  ;;  %5515 = vmatmul.msk.f32.gmra.mxu1 %vm546_vm1, %v7925_v32  ;;  %5600 = vmatmul.msk.f32.gmra.mxu0 %vm546_vm1, %v7649_v35 }
 0x337   : > { %5547 = vmatmul.msk.f32.gmra.mxu2 %vm546_vm1, %v7927_v0  ;;  %v2162_v12 = vmul.f32 %v7379_v59, %v2126_v16  ;;  %5566 = vmatmul.msk.f32.gmra.mxu3 %vm546_vm1, %v7936_v44  ;;  %v9456_v59 = vld [vmem:[#allocation30_spill] sm:$0xff] }
 0x338   : > { %v1659_v16 = vadd.f32 %v7601_v49, %v9456_v59 }
 0x339   : > { %v2745_v3 = vpop.f32.mrf.mxu2  ;;  %v2198_v38 = vadd.f32 %v7388_v58, %v2162_v12  ;;  %v7958_v58 = vld [vmem:[#allocation2 + $0x92] sm:$0xff] }
 0x33a   : > { %v7945_v19 = vadd.f32 %v2745_v3, %v2536_v25  ;;  %v1928_v55 = vpop.f32.mrf.mxu3  ;;  %v2539_v46 = vpop.f32.mrf.mxu1  ;;  %v1813_v25 = vadd.f32 %v7624_v27, %v1659_v16 }
 0x33b   : > { %v2230_v56 = vmax.f32 %v2198_v38, 0.0  ;;  %v1970_v60 = vadd.f32 %v1928_v55, %v1812_v53  ;;  %v2088_v17 = vpop.f32.mrf.mxu0 }
 0x33d   : > { %v7947_v42 = vld [vmem:[#allocation2 + $0x141] sm:$0xff]  ;;  %2318 = vst.msk [vmem:[#allocation2 + $0x151] sm:$0xff] %vm546_vm1, %v2230_v56  ;;  %v2127_v40 = vadd.f32 %v2085_v22, %v1970_v60  ;;  %v7974_v22 = vld [vmem:[%s9107_s3] ss:$0 sm:$0xff] }
 0x33e   : > { %9455 = vst [vmem:[#allocation65_spill] sm:$0xff] %v7947_v42  ;;  %v7949_v35 = vld [vmem:[#allocation2 + $0x140] sm:$0xff]  ;;  %5516 = vmatmul.msk.f32.gmra.mxu1 %vm546_vm1, %v7947_v42  ;;  %5601 = vmatmul.msk.f32.gmra.mxu0 %vm546_vm1, %v7676_v14 }
 0x33f   : > { %5548 = vmatmul.msk.f32.gmra.mxu2 %vm546_vm1, %v7949_v35  ;;  %v2163_v49 = vmul.f32 %v7965_v5, %v2127_v40  ;;  %5567 = vmatmul.msk.f32.gmra.mxu3 %vm546_vm1, %v7958_v58  ;;  %v9458_v40 = vld [vmem:[#allocation26_spill] sm:$0xff] }
 0x340   : > { %v1660_v27 = vadd.f32 %v7628_v26, %v9458_v40 }
 0x341   : > { %v2748_v37 = vpop.f32.mrf.mxu2  ;;  %v2199_v14 = vadd.f32 %v7974_v22, %v2163_v49  ;;  %v4817_v49 = vld [vmem:[%s9111_s7 + $0x8] sm:$0xff] }
 0x342   : > { %v7977_v12 = vadd.f32 %v2748_v37, %v2539_v46  ;;  %v1931_v3 = vpop.f32.mrf.mxu3  ;;  %v2542_v53 = vpop.f32.mrf.mxu1  ;;  %v5690_v46 = vld [vmem:[%s9108_s4 + $0x68] sm:$0xff]  ;;  %v7996_v37 = vld [vmem:[#allocation2 + $0x9a] sm:$0xff]  ;;  %4832 = vmatpush.msra.mxu2 %v4817_v49 }
 0x343   : > { %v2231_v38 = vmax.f32 %v2199_v14, 0.0  ;;  %v1971_v55 = vadd.f32 %v1931_v3, %v1813_v25  ;;  %v2091_v56 = vpop.f32.mrf.mxu0  ;;  %4061 = vmatpush.msra.mxu3 %v5690_v46  ;;  %v1814_v14 = vadd.f32 %v7645_v41, %v1660_v27  ;;  %v8024_v27 = vld [vmem:[#allocation2 + $0xaa] sm:$0xff] }
 0x344   : > { %v7979_v60 = vld [vmem:[#allocation2 + $0x151] sm:$0xff] }
 0x345   : > { %9457 = vst [vmem:[#allocation60_spill] sm:$0xff] %v7979_v60  ;;  %v7981_v59 = vld [vmem:[#allocation2 + $0x150] sm:$0xff]  ;;  %v2128_v16 = vadd.f32 %v2088_v17, %v1971_v55  ;;  %v5724_v17 = vld [vmem:[%s9108_s4 + $0x78] sm:$0xff] }
 0x346   : > { %2319 = vst.msk [vmem:[#allocation2 + $0x159] sm:$0xff] %vm546_vm1, %v2231_v38  ;;  %5517 = vmatmul.msk.f32.gmra.mxu1 %vm546_vm1, %v7979_v60  ;;  %5602 = vmatmul.msk.f32.gmra.mxu0 %vm546_vm1, %v7694_v4  ;;  %v5758_v4 = vld [vmem:[%s9108_s4 + $0x88] sm:$0xff] }
 0x347   : > { %5549 = vmatmul.msk.f32.gmra.mxu2 %vm546_vm1, %v7981_v59  ;;  %v2164_v26 = vmul.f32 %v7965_v5, %v2128_v16  ;;  %5568 = vmatmul.msk.f32.gmra.mxu3 %vm546_vm1, %v7996_v37 }
 0x348   : > { %4337 = vmatpush.msra.mxu0 %v5724_v17  ;;  %4613 = vmatpush.msra.mxu1 %v5758_v4  ;;  %v9460_v17 = vld [vmem:[#allocation35_spill] sm:$0xff] }
 0x349   : > { %v2751_v25 = vpop.f32.mrf.mxu2  ;;  %v2200_v3 = vadd.f32 %v7974_v22, %v2164_v26  ;;  %v1661_v41 = vadd.f32 %v7647_v47, %v9460_v17 }
 0x34a   : > { %v8008_v38 = vadd.f32 %v2751_v25, %v2542_v53  ;;  %v1934_v55 = vpop.f32.mrf.mxu3  ;;  %v2545_v40 = vpop.f32.mrf.mxu1 }
 0x34b   : > { %v2232_v16 = vmax.f32 %v2200_v3, 0.0  ;;  %v1972_v46 = vadd.f32 %v1934_v55, %v1814_v14  ;;  %v2094_v49 = vpop.f32.mrf.mxu0  ;;  %v1815_v25 = vadd.f32 %v7674_v39, %v1661_v41  ;;  %v8046_v39 = vld [vmem:[#allocation2 + $0xb2] sm:$0xff] }
 0x34d   : > { %v8013_v60 = vld [vmem:[#allocation2 + $0x159] sm:$0xff]  ;;  %2320 = vst.msk [vmem:[#allocation2 + $0x169] sm:$0xff] %vm546_vm1, %v2232_v16  ;;  %v2129_v53 = vadd.f32 %v2091_v56, %v1972_v46 }
 0x34e   : > { %9459 = vst [vmem:[#allocation34_spill] sm:$0xff] %v8013_v60  ;;  %v8015_v42 = vld [vmem:[#allocation2 + $0x158] sm:$0xff]  ;;  %5518 = vmatmul.msk.f32.gmra.mxu1 %vm546_vm1, %v8013_v60  ;;  %5603 = vmatmul.msk.f32.gmra.mxu0 %vm546_vm1, %v7712_v29 }
 0x34f   : > { %5550 = vmatmul.msk.f32.gmra.mxu2 %vm546_vm1, %v8015_v42  ;;  %v2165_v26 = vmul.f32 %v7965_v5, %v2129_v53  ;;  %5569 = vmatmul.msk.f32.gmra.mxu3 %vm546_vm1, %v8024_v27  ;;  %v9462_v53 = vld [vmem:[#allocation31_spill] sm:$0xff] }
 0x350   : > { %v1662_v60 = vadd.f32 %v7687_v30, %v9462_v53 }
 0x351   : > { %v2754_v47 = vpop.f32.mrf.mxu2  ;;  %v2201_v56 = vadd.f32 %v7974_v22, %v2165_v26 }
 0x352   : > { %v8033_v14 = vadd.f32 %v2754_v47, %v2545_v40  ;;  %v1937_v3 = vpop.f32.mrf.mxu3  ;;  %v2548_v4 = vpop.f32.mrf.mxu1  ;;  %v1816_v41 = vadd.f32 %v7702_v45, %v1662_v60  ;;  %v8066_v45 = vld [vmem:[#allocation2 + $0xc2] sm:$0xff] }
 0x353   : > { %v2233_v55 = vmax.f32 %v2201_v56, 0.0  ;;  %v1973_v16 = vadd.f32 %v1937_v3, %v1815_v25  ;;  %v2097_v46 = vpop.f32.mrf.mxu0 }
 0x354   : > { %v8035_v17 = vld [vmem:[#allocation2 + $0x169] sm:$0xff] }
 0x355   : > { %9461 = vst [vmem:[#allocation39_spill] sm:$0xff] %v8035_v17  ;;  %v8037_v29 = vld [vmem:[#allocation2 + $0x168] sm:$0xff]  ;;  %v2130_v32 = vadd.f32 %v2094_v49, %v1973_v16 }
 0x356   : > { %2321 = vst.msk [vmem:[#allocation2 + $0x171] sm:$0xff] %vm546_vm1, %v2233_v55  ;;  %5519 = vmatmul.msk.f32.gmra.mxu1 %vm546_vm1, %v8035_v17  ;;  %5604 = vmatmul.msk.f32.gmra.mxu0 %vm546_vm1, %v7730_v15  ;;  %v8244_v17 = vld [vmem:[#allocation2 + $0x91] sm:$0xff] }
 0x357   : > { %5551 = vmatmul.msk.f32.gmra.mxu2 %vm546_vm1, %v8037_v29  ;;  %v2166_v40 = vmul.f32 %v7965_v5, %v2130_v32  ;;  %5570 = vmatmul.msk.f32.gmra.mxu3 %vm546_vm1, %v8046_v39 }
 0x359   : > { %v2757_v30 = vpop.f32.mrf.mxu2  ;;  %v2202_v49 = vadd.f32 %v7974_v22, %v2166_v40 }
 0x35a   : > { %v8055_v26 = vadd.f32 %v2757_v30, %v2548_v4  ;;  %v1940_v47 = vpop.f32.mrf.mxu3  ;;  %v2551_v25 = vpop.f32.mrf.mxu1 }
 0x35b   : > { %v2234_v56 = vmax.f32 %v2202_v49, 0.0  ;;  %v1974_v3 = vadd.f32 %v1940_v47, %v1816_v41  ;;  %v3235_v55 = vpop.f32.mrf.mxu0 }
 0x35d   : > { %v8057_v16 = vld [vmem:[#allocation2 + $0x171] sm:$0xff]  ;;  %2322 = vst.msk [vmem:[#allocation2 + $0x181] sm:$0xff] %vm546_vm1, %v2234_v56  ;;  %v2131_v32 = vadd.f32 %v2097_v46, %v1974_v3  ;;  %v2716_v46 = vadd.f32 %v7720_v8, %v7706_v57  ;;  %v3363_v3 = vld [vmem:[#allocation2 + $0x19] sm:$0xff] }
 0x35e   : > { %9463 = vst [vmem:[#allocation32_spill] sm:$0xff] %v8057_v16  ;;  %v8059_v15 = vld [vmem:[#allocation2 + $0x170] sm:$0xff]  ;;  %5520 = vmatmul.msk.f32.gmra.mxu1 %vm546_vm1, %v8057_v16  ;;  %5605 = vmatmul.msk.f32.gmra.mxu0 %vm546_vm1, %v7751_v2  ;;  %v8227_v16 = vld [vmem:[#allocation2 + $0x81] sm:$0xff] }
 0x35f   : > { %5552 = vmatmul.msk.f32.gmra.mxu2 %vm546_vm1, %v8059_v15  ;;  %v2167_v60 = vmul.f32 %v7965_v5, %v2131_v32  ;;  %5571 = vmatmul.msk.f32.gmra.mxu3 %vm546_vm1, %v8066_v45  ;;  %v8084_v57 = vld [vmem:[#allocation2 + $0xca] sm:$0xff]  ;;  %v2719_v5 = vadd.f32 %v7745_v34, %v7726_v21 }
 0x361   : > { %v2760_v4 = vpop.f32.mrf.mxu2  ;;  %v2203_v53 = vadd.f32 %v7974_v22, %v2167_v60 }
 0x362   : > { %v8076_v40 = vadd.f32 %v2760_v4, %v2551_v25  ;;  %v2554_v30 = vpop.f32.mrf.mxu1  ;;  %v2959_v41 = vpop.f32.mrf.mxu3  ;;  %v8099_v4 = vld [vmem:[#allocation2 + $0xda] sm:$0xff] }
 0x363   : > { %v2235_v49 = vmax.f32 %v2203_v53, 0.0  ;;  %v3055_v47 = vadd.f32 %v2959_v41, %v2716_v46  ;;  %v3238_v56 = vpop.f32.mrf.mxu0 }
 0x365   : > { %2323 = vst.msk [vmem:[#allocation2 + $0x189] sm:$0xff] %vm546_vm1, %v2235_v49  ;;  %v8082_v2 = vadd.f32 %v3235_v55, %v3055_v47  ;;  %v3364_v55 = vld [vmem:[#allocation2 + $0x21] sm:$0xff]  ;;  %v8108_v49 = vld [vmem:[#allocation2 + $0x31] sm:$0xff] }
 0x366   : > { %5623 = vmatmul.msk.f32.vlgmr.msrb.gmra.mxu1 %vm546_vm1, %v3363_v3  ;;  %5606 = vmatmul.msk.f32.gmra.mxu0 %vm546_vm1, %v7773_v33 }
 0x367   : > { %5657 = vmatmul.msk.f32.vlgmr.msrb.gmra.mxu2 %vm546_vm1, %v7738_v62  ;;  %5572 = vmatmul.msk.f32.gmra.mxu3 %vm546_vm1, %v8084_v57 }
 0x369   : > { %v2763_v8 = vpop.f32.mrf.mxu2 }
 0x36a   : > { %v8092_v22 = vadd.f32 %v2763_v8, %v2554_v30  ;;  %v2557_v25 = vpop.f32.mrf.mxu1  ;;  %v2962_v32 = vpop.f32.mrf.mxu3 }
 0x36b   : > { %v3056_v60 = vadd.f32 %v2962_v32, %v2719_v5  ;;  %v3241_v62 = vpop.f32.mrf.mxu0 }
 0x36d   : > { %v8097_v33 = vadd.f32 %v3238_v56, %v3056_v60 }
 0x36e   : > { %5624 = vmatmul.msk.f32.gmra.mxu1 %vm546_vm1, %v3364_v55  ;;  %5607 = vmatmul.msk.f32.gmra.mxu0 %vm546_vm1, %v7795_v52  ;;  %v8116_v52 = vld [vmem:[#allocation2 + $0xe2] sm:$0xff] }
 0x36f   : > { %5658 = vmatmul.msk.f32.gmra.mxu2 %vm546_vm1, %v7760_v13  ;;  %5573 = vmatmul.msk.f32.gmra.mxu3 %vm546_vm1, %v8099_v4 }
 0x371   : > { %v2766_v21 = vpop.f32.mrf.mxu2 }
 0x372   : > { %v8105_v34 = vadd.f32 %v2766_v21, %v2557_v25  ;;  %v2560_v46 = vpop.f32.mrf.mxu1  ;;  %v2965_v53 = vpop.f32.mrf.mxu3  ;;  %v8125_v25 = vld [vmem:[#allocation2 + $0x39] sm:$0xff] }
 0x373   : > { %v3057_v30 = vadd.f32 %v2965_v53, %v7769_v61  ;;  %v3244_v41 = vpop.f32.mrf.mxu0 }
 0x375   : > { %v8114_v13 = vadd.f32 %v3241_v62, %v3057_v30 }
 0x376   : > { %5625 = vmatmul.msk.f32.gmra.mxu1 %vm546_vm1, %v8108_v49  ;;  %5608 = vmatmul.msk.f32.gmra.mxu0 %vm546_vm1, %v7817_v6  ;;  %v8133_v6 = vld [vmem:[#allocation2 + $0xf2] sm:$0xff] }
 0x377   : > { %5659 = vmatmul.msk.f32.gmra.mxu2 %vm546_vm1, %v7782_v1  ;;  %5574 = vmatmul.msk.f32.gmra.mxu3 %vm546_vm1, %v8116_v52 }
 0x379   : > { %v2769_v61 = vpop.f32.mrf.mxu2 }
 0x37a   : > { %v8122_v47 = vadd.f32 %v2769_v61, %v2560_v46  ;;  %v2968_v3 = vpop.f32.mrf.mxu3  ;;  %v8142_v46 = vld [vmem:[#allocation2 + $0x49] sm:$0xff] }
 0x37b   : > { %v2563_v56 = vpop.f32.mrf.mxu1  ;;  %v3058_v8 = vadd.f32 %v2968_v3, %v7791_v11  ;;  %v3247_v5 = vpop.f32.mrf.mxu0  ;;  %v8159_v3 = vld [vmem:[#allocation2 + $0x51] sm:$0xff] }
 0x37d   : > { %v8131_v1 = vadd.f32 %v3244_v41, %v3058_v8 }
 0x37e   : > { %5626 = vmatmul.msk.f32.gmra.mxu1 %vm546_vm1, %v8125_v25  ;;  %5609 = vmatmul.msk.f32.gmra.mxu0 %vm546_vm1, %v7839_v43  ;;  %v8150_v43 = vld [vmem:[#allocation2 + $0xfa] sm:$0xff] }
 0x37f   : > { %5660 = vmatmul.msk.f32.gmra.mxu2 %vm546_vm1, %v7804_v20  ;;  %5575 = vmatmul.msk.f32.gmra.mxu3 %vm546_vm1, %v8133_v6 }
 0x382   : > { %v2772_v11 = vpop.f32.mrf.mxu2  ;;  %v2971_v62 = vpop.f32.mrf.mxu3 }
 0x383   : > { %v8139_v32 = vadd.f32 %v2772_v11, %v2563_v56  ;;  %v2566_v60 = vpop.f32.mrf.mxu1  ;;  %v3059_v55 = vadd.f32 %v2971_v62, %v7813_v23  ;;  %v3250_v21 = vpop.f32.mrf.mxu0 }
 0x385   : > { %v8148_v20 = vadd.f32 %v3247_v5, %v3059_v55  ;;  %v8176_v55 = vld [vmem:[#allocation2 + $0x61] sm:$0xff] }
 0x386   : > { %5627 = vmatmul.msk.f32.gmra.mxu1 %vm546_vm1, %v8142_v46  ;;  %5610 = vmatmul.msk.f32.gmra.mxu0 %vm546_vm1, %v7861_v10  ;;  %v8167_v10 = vld [vmem:[#allocation2 + $0x10a] sm:$0xff] }
 0x387   : > { %5661 = vmatmul.msk.f32.gmra.mxu2 %vm546_vm1, %v7826_v50  ;;  %5576 = vmatmul.msk.f32.gmra.mxu3 %vm546_vm1, %v8150_v43 }
 0x38a   : > { %v2775_v23 = vpop.f32.mrf.mxu2  ;;  %v2974_v41 = vpop.f32.mrf.mxu3 }
 0x38b   : > { %v8156_v53 = vadd.f32 %v2775_v23, %v2566_v60  ;;  %v2569_v30 = vpop.f32.mrf.mxu1  ;;  %v3060_v61 = vadd.f32 %v2974_v41, %v7835_v63  ;;  %v3253_v56 = vpop.f32.mrf.mxu0 }
 0x38d   : > { %v8165_v50 = vadd.f32 %v3250_v21, %v3060_v61 }
 0x38e   : > { %5628 = vmatmul.msk.f32.gmra.mxu1 %vm546_vm1, %v8159_v3  ;;  %5611 = vmatmul.msk.f32.gmra.mxu0 %vm546_vm1, %v7883_v54  ;;  %v8184_v54 = vld [vmem:[#allocation2 + $0x112] sm:$0xff] }
 0x38f   : > { %5662 = vmatmul.msk.f32.gmra.mxu2 %vm546_vm1, %v7848_v7  ;;  %5577 = vmatmul.msk.f32.gmra.mxu3 %vm546_vm1, %v8167_v10 }
 0x392   : > { %v2778_v63 = vpop.f32.mrf.mxu2  ;;  %v2977_v11 = vpop.f32.mrf.mxu3 }
 0x393   : > { %v8173_v8 = vadd.f32 %v2778_v63, %v2569_v30  ;;  %v2572_v5 = vpop.f32.mrf.mxu1  ;;  %v3061_v60 = vadd.f32 %v2977_v11, %v7857_v18  ;;  %v3256_v62 = vpop.f32.mrf.mxu0  ;;  %v8193_v63 = vld [vmem:[#allocation2 + $0x69] sm:$0xff] }
 0x395   : > { %v8182_v7 = vadd.f32 %v3253_v56, %v3061_v60 }
 0x396   : > { %5629 = vmatmul.msk.f32.gmra.mxu1 %vm546_vm1, %v8176_v55  ;;  %5612 = vmatmul.msk.f32.gmra.mxu0 %vm546_vm1, %v7905_v9  ;;  %v8201_v9 = vld [vmem:[#allocation2 + $0x122] sm:$0xff] }
 0x397   : > { %5663 = vmatmul.msk.f32.gmra.mxu2 %vm546_vm1, %v7870_v36  ;;  %5578 = vmatmul.msk.f32.gmra.mxu3 %vm546_vm1, %v8184_v54 }
 0x39a   : > { %v2781_v18 = vpop.f32.mrf.mxu2  ;;  %v2980_v30 = vpop.f32.mrf.mxu3 }
 0x39b   : > { %v8190_v21 = vadd.f32 %v2781_v18, %v2572_v5  ;;  %v2575_v23 = vpop.f32.mrf.mxu1  ;;  %v3062_v41 = vadd.f32 %v2980_v30, %v7879_v48  ;;  %v3259_v61 = vpop.f32.mrf.mxu0  ;;  %v8210_v30 = vld [vmem:[#allocation2 + $0x79] sm:$0xff] }
 0x39d   : > { %v8199_v36 = vadd.f32 %v3256_v62, %v3062_v41 }
 0x39e   : > { %5630 = vmatmul.msk.f32.gmra.mxu1 %vm546_vm1, %v8193_v63  ;;  %5613 = vmatmul.msk.f32.gmra.mxu0 %vm546_vm1, %v7927_v0  ;;  %v8218_v0 = vld [vmem:[#allocation2 + $0x12a] sm:$0xff] }
 0x39f   : > { %5664 = vmatmul.msk.f32.gmra.mxu2 %vm546_vm1, %v7892_v28  ;;  %5579 = vmatmul.msk.f32.gmra.mxu3 %vm546_vm1, %v8201_v9 }
 0x3a2   : > { %v2784_v48 = vpop.f32.mrf.mxu2  ;;  %v2983_v11 = vpop.f32.mrf.mxu3 }
 0x3a3   : > { %v8207_v56 = vadd.f32 %v2784_v48, %v2575_v23  ;;  %v2578_v5 = vpop.f32.mrf.mxu1  ;;  %v3063_v60 = vadd.f32 %v2983_v11, %v7901_v31  ;;  %v3262_v18 = vpop.f32.mrf.mxu0 }
 0x3a5   : > { %v8216_v28 = vadd.f32 %v3259_v61, %v3063_v60 }
 0x3a6   : > { %5631 = vmatmul.msk.f32.gmra.mxu1 %vm546_vm1, %v8210_v30  ;;  %5614 = vmatmul.msk.f32.gmra.mxu0 %vm546_vm1, %v7949_v35  ;;  %v8235_v35 = vld [vmem:[#allocation2 + $0x13a] sm:$0xff] }
 0x3a7   : > { %5665 = vmatmul.msk.f32.gmra.mxu2 %vm546_vm1, %v7914_v24  ;;  %5580 = vmatmul.msk.f32.gmra.mxu3 %vm546_vm1, %v8218_v0 }
 0x3aa   : > { %v2787_v31 = vpop.f32.mrf.mxu2  ;;  %v2986_v41 = vpop.f32.mrf.mxu3 }
 0x3ab   : > { %v8224_v62 = vadd.f32 %v2787_v31, %v2578_v5  ;;  %v2581_v23 = vpop.f32.mrf.mxu1  ;;  %v3064_v48 = vadd.f32 %v2986_v41, %v7923_v51  ;;  %v3265_v11 = vpop.f32.mrf.mxu0 }
 0x3ad   : > { %v8233_v24 = vadd.f32 %v3262_v18, %v3064_v48 }
 0x3ae   : > { %5632 = vmatmul.msk.f32.gmra.mxu1 %vm546_vm1, %v8227_v16  ;;  %5615 = vmatmul.msk.f32.gmra.mxu0 %vm546_vm1, %v7981_v59  ;;  %v8252_v59 = vld [vmem:[#allocation2 + $0x142] sm:$0xff] }
 0x3af   : > { %5666 = vmatmul.msk.f32.gmra.mxu2 %vm546_vm1, %v7936_v44  ;;  %9464 = vst [vmem:[#allocation47_spill] sm:$0xff] %v8233_v24  ;;  %5581 = vmatmul.msk.f32.gmra.mxu3 %vm546_vm1, %v8235_v35  ;;  %v8261_v24 = vld [vmem:[#allocation2 + $0x99] sm:$0xff] }
 0x3b2   : > { %v2790_v51 = vpop.f32.mrf.mxu2  ;;  %v2989_v60 = vpop.f32.mrf.mxu3 }
 0x3b3   : > { %v8241_v61 = vadd.f32 %v2790_v51, %v2581_v23  ;;  %v2584_v5 = vpop.f32.mrf.mxu1  ;;  %v3065_v31 = vadd.f32 %v2989_v60, %v7945_v19  ;;  %v3268_v41 = vpop.f32.mrf.mxu0 }
 0x3b5   : > { %v8250_v44 = vadd.f32 %v3265_v11, %v3065_v31 }
 0x3b6   : > { %5633 = vmatmul.msk.f32.gmra.mxu1 %vm546_vm1, %v8244_v17  ;;  %5616 = vmatmul.msk.f32.gmra.mxu0 %vm546_vm1, %v8015_v42  ;;  %v5689_v42 = vld [vmem:[%s9108_s4 + $0x60] sm:$0xff] }
 0x3b7   : > { %5667 = vmatmul.msk.f32.gmra.mxu2 %vm546_vm1, %v7958_v58  ;;  %9465 = vst [vmem:[#allocation44_spill] sm:$0xff] %v8250_v44  ;;  %5582 = vmatmul.msk.f32.gmra.mxu3 %vm546_vm1, %v8252_v59  ;;  %v5723_v58 = vld [vmem:[%s9108_s4 + $0x70] sm:$0xff] }
 0x3b8   : > { %4062 = vmatpush.msra.mxu3 %v5689_v42  ;;  %4338 = vmatpush.msra.mxu0 %v5723_v58 }
 0x3ba   : > { %v2793_v19 = vpop.f32.mrf.mxu2  ;;  %v2992_v48 = vpop.f32.mrf.mxu3 }
 0x3bb   : > { %v8258_v18 = vadd.f32 %v2793_v19, %v2584_v5  ;;  %v2587_v23 = vpop.f32.mrf.mxu1  ;;  %v3066_v51 = vadd.f32 %v2992_v48, %v7977_v12  ;;  %v3271_v60 = vpop.f32.mrf.mxu0  ;;  %v8275_v12 = vld [vmem:[#allocation2 + $0x152] sm:$0xff] }
 0x3bd   : > { %v8273_v11 = vadd.f32 %v3268_v41, %v3066_v51  ;;  %v8284_v41 = vld [vmem:[#allocation2 + $0xa9] sm:$0xff] }
 0x3be   : > { %5634 = vmatmul.msk.f32.gmra.mxu1 %vm546_vm1, %v8261_v24  ;;  %5617 = vmatmul.msk.f32.gmra.mxu0 %vm546_vm1, %v8037_v29  ;;  %v4816_v29 = vld [vmem:[%s9111_s7] sm:$0xff] }
 0x3bf   : > { %5668 = vmatmul.msk.f32.gmra.mxu2 %vm546_vm1, %v7996_v37  ;;  %5583 = vmatmul.msk.f32.gmra.mxu3 %vm546_vm1, %v8275_v12 }
 0x3c0   : > { %4833 = vmatpush.msra.mxu2 %v4816_v29  ;;  %v8317_v29 = vld [vmem:[#allocation2 + $0x16a] sm:$0xff] }
 0x3c2   : > { %v2796_v37 = vpop.f32.mrf.mxu2  ;;  %v2995_v19 = vpop.f32.mrf.mxu3 }
 0x3c3   : > { %v8281_v5 = vadd.f32 %v2796_v37, %v2587_v23  ;;  %v2590_v31 = vpop.f32.mrf.mxu1  ;;  %v3067_v48 = vadd.f32 %v2995_v19, %v8008_v38  ;;  %v3274_v44 = vpop.f32.mrf.mxu0  ;;  %v8295_v23 = vld [vmem:[#allocation2 + $0x15a] sm:$0xff] }
 0x3c5   : > { %v8293_v51 = vadd.f32 %v3271_v60, %v3067_v48  ;;  %v8307_v48 = vld [vmem:[#allocation2 + $0xb1] sm:$0xff] }
 0x3c6   : > { %5635 = vmatmul.msk.f32.gmra.mxu1 %vm546_vm1, %v8284_v41  ;;  %5618 = vmatmul.msk.f32.gmra.mxu0 %vm546_vm1, %v8059_v15  ;;  %v8313_v15 = vld [vmem:[#allocation2 + $0x180] sm:$0xff] }
 0x3c7   : > { %5669 = vmatmul.msk.f32.gmra.mxu2 %vm546_vm1, %v8024_v27  ;;  %9466 = vst [vmem:[#allocation53_spill] sm:$0xff] %v8293_v51  ;;  %5584 = vmatmul.msk.f32.gmra.mxu3 %vm546_vm1, %v8295_v23  ;;  %v5757_v27 = vld [vmem:[%s9108_s4 + $0x80] sm:$0xff] }
 0x3c8   : > { %4614 = vmatpush.msra.mxu1 %v5757_v27  ;;  %9468 = vst [vmem:[#allocation69_spill] sm:$0xff] %v8313_v15 }
 0x3ca   : > { %v2799_v38 = vpop.f32.mrf.mxu2  ;;  %v2998_v37 = vpop.f32.mrf.mxu3 }
 0x3cb   : > { %v8301_v42 = vadd.f32 %v2799_v38, %v2590_v31  ;;  %v2593_v58 = vpop.f32.mrf.mxu1  ;;  %v3068_v60 = vadd.f32 %v2998_v37, %v8033_v14  ;;  %v3277_v19 = vpop.f32.mrf.mxu0 }
 0x3cd   : > { %9467 = vst [vmem:[#allocation40_spill] sm:$0xff] %v8301_v42  ;;  %v8315_v31 = vadd.f32 %v3274_v44, %v3068_v60  ;;  %v5894_v42 = vld [vmem:[#allocation2 + $0xc1] sm:$0xff] }
 0x3ce   : > { %5636 = vmatmul.msk.f32.gmra.mxu1 %vm546_vm1, %v8307_v48  ;;  %5619 = vmatmul.msk.f32.gmra.mxu0 %vm546_vm1, %v8313_v15  ;;  %v8329_v44 = vld [vmem:[#allocation2 + $0x188] sm:$0xff]  ;;  %v8333_v15 = vld [vmem:[#allocation2 + $0x172] sm:$0xff] }
 0x3cf   : > { %5670 = vmatmul.msk.f32.gmra.mxu2 %vm546_vm1, %v8046_v39  ;;  %9469 = vst [vmem:[#allocation48_spill] sm:$0xff] %v8315_v31  ;;  %5585 = vmatmul.msk.f32.gmra.mxu3 %vm546_vm1, %v8317_v29  ;;  %v5895_v31 = vld [vmem:[#allocation2 + $0xc9] sm:$0xff] }
 0x3d0   : > { %9470 = vst [vmem:[#allocation70_spill] sm:$0xff] %v8329_v44 }
 0x3d2   : > { %v2802_v14 = vpop.f32.mrf.mxu2  ;;  %v3001_v37 = vpop.f32.mrf.mxu3 }
 0x3d3   : > { %v8323_v38 = vadd.f32 %v2802_v14, %v2593_v58  ;;  %v2596_v27 = vpop.f32.mrf.mxu1  ;;  %v3069_v51 = vadd.f32 %v3001_v37, %v8055_v26  ;;  %v3280_v39 = vpop.f32.mrf.mxu0 }
 0x3d5   : > { %v8331_v60 = vadd.f32 %v3277_v19, %v3069_v51  ;;  %v3916_v19 = vld [vmem:[#allocation2 + $0x30] sm:$0xff] }
 0x3d6   : > { %5637 = vmatmul.msk.f32.gmra.mxu1 %vm546_vm1, %v5894_v42  ;;  %5620 = vmatmul.msk.f32.gmra.mxu0 %vm546_vm1, %v8329_v44 }
 0x3d7   : > { %5671 = vmatmul.msk.f32.gmra.mxu2 %vm546_vm1, %v8066_v45  ;;  %9471 = vst [vmem:[#allocation68_spill] sm:$0xff] %v8331_v60  ;;  %5586 = vmatmul.msk.f32.gmra.mxu3 %vm546_vm1, %v8333_v15 }
 0x3da   : > { %v2805_v26 = vpop.f32.mrf.mxu2  ;;  %v3004_v42 = vpop.f32.mrf.mxu3 }
 0x3db   : > { %v8339_v58 = vadd.f32 %v2805_v26, %v2596_v27  ;;  %v2599_v14 = vpop.f32.mrf.mxu1  ;;  %v3070_v37 = vadd.f32 %v3004_v42, %v8076_v40  ;;  %v3283_v45 = vpop.f32.mrf.mxu0 }
 0x3dd   : > { %v8345_v51 = vadd.f32 %v3280_v39, %v3070_v37  ;;  %v3917_v39 = vld [vmem:[#allocation2 + $0x38] sm:$0xff] }
 0x3de   : > { %5638 = vmatmul.msk.f32.gmra.mxu1 %vm546_vm1, %v5895_v31  ;;  %5725 = vmatmul.msk.f32.vlgmr.msra.gmra.mxu0 %vm546_vm1, %v8108_v49  ;;  %v9472_v31 = vld [vmem:[#allocation41_spill] sm:$0xff] }
 0x3df   : > { %5672 = vmatmul.msk.f32.gmra.mxu2 %vm546_vm1, %v8084_v57  ;;  %5691 = vmatmul.msk.f32.vlgmr.msra.gmra.mxu3 %vm546_vm1, %v3916_v19 }
 0x3e2   : > { %v2808_v27 = vpop.f32.mrf.mxu2  ;;  %v3007_v44 = vpop.f32.mrf.mxu3 }
 0x3e3   : > { %v8350_v26 = vadd.f32 %v2808_v27, %v2599_v14  ;;  %v3511_v40 = vpop.f32.mrf.mxu1  ;;  %v3071_v42 = vadd.f32 %v3007_v44, %v8092_v22  ;;  %v3286_v60 = vpop.f32.mrf.mxu0 }
 0x3e4   : > { %v3607_v49 = vadd.f32 %v3511_v40, %v8082_v2 }
 0x3e5   : > { %v8357_v57 = vadd.f32 %v3283_v45, %v3071_v42 }
 0x3e6   : > { %5639 = vmatmul.msk.f32.gmra.mxu1 %vm546_vm1, %v9472_v31  ;;  %5726 = vmatmul.msk.f32.gmra.mxu0 %vm546_vm1, %v8125_v25  ;;  %v9473_v31 = vld [vmem:[#allocation54_spill] sm:$0xff]  ;;  %v3918_v25 = vld [vmem:[#allocation2 + $0x48] sm:$0xff] }
 0x3e7   : > { %5673 = vmatmul.msk.f32.gmra.mxu2 %vm546_vm1, %v8099_v4  ;;  %5692 = vmatmul.msk.f32.gmra.mxu3 %vm546_vm1, %v3917_v39 }
 0x3ea   : > { %v3787_v14 = vpop.f32.mrf.mxu2  ;;  %v3010_v22 = vpop.f32.mrf.mxu3 }
 0x3eb   : > { %v8363_v37 = vadd.f32 %v3787_v14, %v3607_v49  ;;  %v3514_v44 = vpop.f32.mrf.mxu1  ;;  %v3072_v19 = vadd.f32 %v3010_v22, %v8105_v34  ;;  %v3289_v27 = vpop.f32.mrf.mxu0  ;;  %v9474_v14 = vld [vmem:[#allocation59_spill] sm:$0xff] }
 0x3ec   : > { %v3608_v2 = vadd.f32 %v3514_v44, %v8097_v33 }
 0x3ed   : > { %v8370_v4 = vadd.f32 %v3286_v60, %v3072_v19 }
 0x3ee   : > { %5640 = vmatmul.msk.f32.gmra.mxu1 %vm546_vm1, %v9473_v31  ;;  %5727 = vmatmul.msk.f32.gmra.mxu0 %vm546_vm1, %v8142_v46  ;;  %v3919_v46 = vld [vmem:[#allocation2 + $0x50] sm:$0xff] }
 0x3ef   : > { %5674 = vmatmul.msk.f32.gmra.mxu2 %vm546_vm1, %v8116_v52  ;;  %5693 = vmatmul.msk.f32.gmra.mxu3 %vm546_vm1, %v3918_v25  ;;  %v9475_v25 = vld [vmem:[#allocation45_spill] sm:$0xff] }
 0x3f2   : > { %v3790_v45 = vpop.f32.mrf.mxu2  ;;  %v3013_v34 = vpop.f32.mrf.mxu3 }
 0x3f3   : > { %v8376_v40 = vadd.f32 %v3790_v45, %v3608_v2  ;;  %v3517_v42 = vpop.f32.mrf.mxu1  ;;  %v3073_v39 = vadd.f32 %v3013_v34, %v8122_v47  ;;  %v3292_v49 = vpop.f32.mrf.mxu0 }
 0x3f4   : > { %v3609_v33 = vadd.f32 %v3517_v42, %v8114_v13 }
 0x3f5   : > { %v8383_v52 = vadd.f32 %v3289_v27, %v3073_v39  ;;  %v9476_v39 = vld [vmem:[#allocation58_spill] sm:$0xff] }
 0x3f6   : > { %5641 = vmatmul.msk.f32.gmra.mxu1 %vm546_vm1, %v9474_v14  ;;  %5728 = vmatmul.msk.f32.gmra.mxu0 %vm546_vm1, %v8159_v3  ;;  %v3920_v3 = vld [vmem:[#allocation2 + $0x60] sm:$0xff] }
 0x3f7   : > { %5675 = vmatmul.msk.f32.gmra.mxu2 %vm546_vm1, %v8133_v6  ;;  %5694 = vmatmul.msk.f32.gmra.mxu3 %vm546_vm1, %v3919_v46 }
 0x3fa   : > { %v3793_v60 = vpop.f32.mrf.mxu2  ;;  %v3016_v47 = vpop.f32.mrf.mxu3 }
 0x3fb   : > { %v8389_v22 = vadd.f32 %v3793_v60, %v3609_v33  ;;  %v3520_v44 = vpop.f32.mrf.mxu1  ;;  %v3074_v19 = vadd.f32 %v3016_v47, %v8139_v32  ;;  %v3295_v31 = vpop.f32.mrf.mxu0  ;;  %v9477_v47 = vld [vmem:[#allocation57_spill] sm:$0xff] }
 0x3fc   : > { %v3610_v13 = vadd.f32 %v3520_v44, %v8131_v1 }
 0x3fd   : > { %v8396_v6 = vadd.f32 %v3292_v49, %v3074_v19 }
 0x3fe   : > { %5642 = vmatmul.msk.f32.gmra.mxu1 %vm546_vm1, %v9475_v25  ;;  %5729 = vmatmul.msk.f32.gmra.mxu0 %vm546_vm1, %v8176_v55  ;;  %v3921_v55 = vld [vmem:[#allocation2 + $0x68] sm:$0xff] }
 0x3ff   : > { %5676 = vmatmul.msk.f32.gmra.mxu2 %vm546_vm1, %v8150_v43  ;;  %5695 = vmatmul.msk.f32.gmra.mxu3 %vm546_vm1, %v3920_v3 }
 0x402   : > { %v3796_v27 = vpop.f32.mrf.mxu2  ;;  %v3019_v32 = vpop.f32.mrf.mxu3 }
 0x403   : > { %v8402_v2 = vadd.f32 %v3796_v27, %v3610_v13  ;;  %v3523_v45 = vpop.f32.mrf.mxu1  ;;  %v3075_v34 = vadd.f32 %v3019_v32, %v8156_v53  ;;  %v3298_v42 = vpop.f32.mrf.mxu0  ;;  %v9478_v13 = vld [vmem:[#allocation51_spill] sm:$0xff] }
 0x404   : > { %v3611_v1 = vadd.f32 %v3523_v45, %v8148_v20 }
 0x405   : > { %v8409_v43 = vadd.f32 %v3295_v31, %v3075_v34 }
 0x406   : > { %5643 = vmatmul.msk.f32.gmra.mxu1 %vm546_vm1, %v9476_v39  ;;  %5730 = vmatmul.msk.f32.gmra.mxu0 %vm546_vm1, %v8193_v63  ;;  %v3922_v63 = vld [vmem:[#allocation2 + $0x78] sm:$0xff]  ;;  %v9479_v39 = vld [vmem:[#allocation62_spill] sm:$0xff] }
 0x407   : > { %5677 = vmatmul.msk.f32.gmra.mxu2 %vm546_vm1, %v8167_v10  ;;  %5696 = vmatmul.msk.f32.gmra.mxu3 %vm546_vm1, %v3921_v55 }
 0x40a   : > { %v3799_v49 = vpop.f32.mrf.mxu2  ;;  %v3022_v53 = vpop.f32.mrf.mxu3 }
 0x40b   : > { %v8415_v14 = vadd.f32 %v3799_v49, %v3611_v1  ;;  %v3526_v46 = vpop.f32.mrf.mxu1  ;;  %v3076_v33 = vadd.f32 %v3022_v53, %v8173_v8  ;;  %v3301_v60 = vpop.f32.mrf.mxu0 }
 0x40c   : > { %v3612_v20 = vadd.f32 %v3526_v46, %v8165_v50 }
 0x40d   : > { %v8422_v10 = vadd.f32 %v3298_v42, %v3076_v33  ;;  %v9480_v33 = vld [vmem:[#allocation55_spill] sm:$0xff] }
 0x40e   : > { %5644 = vmatmul.msk.f32.gmra.mxu1 %vm546_vm1, %v9477_v47  ;;  %5731 = vmatmul.msk.f32.gmra.mxu0 %vm546_vm1, %v8210_v30  ;;  %v3923_v30 = vld [vmem:[#allocation2 + $0x80] sm:$0xff] }
 0x40f   : > { %5678 = vmatmul.msk.f32.gmra.mxu2 %vm546_vm1, %v8184_v54  ;;  %5697 = vmatmul.msk.f32.gmra.mxu3 %vm546_vm1, %v3922_v63 }
 0x412   : > { %v3802_v44 = vpop.f32.mrf.mxu2  ;;  %v3025_v8 = vpop.f32.mrf.mxu3 }
 0x413   : > { %v8428_v19 = vadd.f32 %v3802_v44, %v3612_v20  ;;  %v3529_v31 = vpop.f32.mrf.mxu1  ;;  %v3077_v25 = vadd.f32 %v3025_v8, %v8190_v21  ;;  %v3304_v3 = vpop.f32.mrf.mxu0  ;;  %v9481_v8 = vld [vmem:[#allocation65_spill] sm:$0xff] }
 0x414   : > { %v3613_v50 = vadd.f32 %v3529_v31, %v8182_v7 }
 0x415   : > { %v8435_v54 = vadd.f32 %v3301_v60, %v3077_v25 }
 0x416   : > { %5645 = vmatmul.msk.f32.gmra.mxu1 %vm546_vm1, %v9478_v13  ;;  %5732 = vmatmul.msk.f32.gmra.mxu0 %vm546_vm1, %v8227_v16  ;;  %v3924_v16 = vld [vmem:[#allocation2 + $0x90] sm:$0xff] }
 0x417   : > { %5679 = vmatmul.msk.f32.gmra.mxu2 %vm546_vm1, %v8201_v9  ;;  %5698 = vmatmul.msk.f32.gmra.mxu3 %vm546_vm1, %v3923_v30 }
 0x41a   : > { %v3805_v27 = vpop.f32.mrf.mxu2  ;;  %v3028_v21 = vpop.f32.mrf.mxu3 }
 0x41b   : > { %v8441_v32 = vadd.f32 %v3805_v27, %v3613_v50  ;;  %v3532_v45 = vpop.f32.mrf.mxu1  ;;  %v3078_v34 = vadd.f32 %v3028_v21, %v8207_v56  ;;  %v3307_v42 = vpop.f32.mrf.mxu0  ;;  %v9483_v27 = vld [vmem:[#allocation60_spill] sm:$0xff] }
 0x41c   : > { %v3614_v7 = vadd.f32 %v3532_v45, %v8199_v36  ;;  %v9484_v21 = vld [vmem:[#allocation44_spill] sm:$0xff] }
 0x41d   : > { %v8448_v9 = vadd.f32 %v3304_v3, %v3078_v34 }
 0x41e   : > { %5646 = vmatmul.msk.f32.gmra.mxu1 %vm546_vm1, %v9479_v39  ;;  %5733 = vmatmul.msk.f32.gmra.mxu0 %vm546_vm1, %v8244_v17  ;;  %v3925_v17 = vld [vmem:[#allocation2 + $0x98] sm:$0xff] }
 0x41f   : > { %5680 = vmatmul.msk.f32.gmra.mxu2 %vm546_vm1, %v8218_v0  ;;  %5699 = vmatmul.msk.f32.gmra.mxu3 %vm546_vm1, %v3924_v16 }
 0x422   : > { %v3808_v55 = vpop.f32.mrf.mxu2  ;;  %v3031_v56 = vpop.f32.mrf.mxu3 }
 0x423   : > { %v8454_v1 = vadd.f32 %v3808_v55, %v3614_v7  ;;  %v3535_v49 = vpop.f32.mrf.mxu1  ;;  %v3079_v53 = vadd.f32 %v3031_v56, %v8224_v62  ;;  %v3310_v46 = vpop.f32.mrf.mxu0  ;;  %v9485_v55 = vld [vmem:[#allocation34_spill] sm:$0xff]  ;;  %v3928_v56 = vld [vmem:[#allocation2 + $0xc0] sm:$0xff] }
 0x424   : > { %v3615_v36 = vadd.f32 %v3535_v49, %v8216_v28  ;;  %v9482_v28 = vld [vmem:[#allocation47_spill] sm:$0xff] }
 0x425   : > { %v8461_v0 = vadd.f32 %v3307_v42, %v3079_v53 }
 0x426   : > { %5647 = vmatmul.msk.f32.gmra.mxu1 %vm546_vm1, %v9480_v33  ;;  %5734 = vmatmul.msk.f32.gmra.mxu0 %vm546_vm1, %v8261_v24  ;;  %v3926_v24 = vld [vmem:[#allocation2 + $0xa8] sm:$0xff] }
 0x427   : > { %5681 = vmatmul.msk.f32.gmra.mxu2 %vm546_vm1, %v8235_v35  ;;  %5700 = vmatmul.msk.f32.gmra.mxu3 %vm546_vm1, %v3925_v17  ;;  %v9486_v17 = vld [vmem:[#allocation40_spill] sm:$0xff] }
 0x42a   : > { %v3811_v60 = vpop.f32.mrf.mxu2  ;;  %v3034_v62 = vpop.f32.mrf.mxu3 }
 0x42b   : > { %v8467_v47 = vadd.f32 %v3811_v60, %v3615_v36  ;;  %v3538_v63 = vpop.f32.mrf.mxu1  ;;  %v3080_v20 = vadd.f32 %v3034_v62, %v8241_v61  ;;  %v3313_v44 = vpop.f32.mrf.mxu0  ;;  %v9487_v62 = vld [vmem:[#allocation39_spill] sm:$0xff] }
 0x42c   : > { %v3616_v31 = vadd.f32 %v3538_v63, %v9482_v28 }
 0x42d   : > { %v8474_v35 = vadd.f32 %v3310_v46, %v3080_v20  ;;  %v9488_v20 = vld [vmem:[#allocation53_spill] sm:$0xff] }
 0x42e   : > { %5648 = vmatmul.msk.f32.gmra.mxu1 %vm546_vm1, %v9481_v8  ;;  %5735 = vmatmul.msk.f32.gmra.mxu0 %vm546_vm1, %v8284_v41  ;;  %v3927_v41 = vld [vmem:[#allocation2 + $0xb0] sm:$0xff] }
 0x42f   : > { %5682 = vmatmul.msk.f32.gmra.mxu2 %vm546_vm1, %v8252_v59  ;;  %5701 = vmatmul.msk.f32.gmra.mxu3 %vm546_vm1, %v3926_v24 }
 0x432   : > { %v3814_v25 = vpop.f32.mrf.mxu2  ;;  %v3037_v61 = vpop.f32.mrf.mxu3 }
 0x433   : > { %v8480_v3 = vadd.f32 %v3814_v25, %v3616_v31  ;;  %v3541_v13 = vpop.f32.mrf.mxu1  ;;  %v3081_v30 = vadd.f32 %v3037_v61, %v8258_v18  ;;  %v3316_v50 = vpop.f32.mrf.mxu0 }
 0x434   : > { %v3617_v45 = vadd.f32 %v3541_v13, %v9484_v21  ;;  %v9489_v13 = vld [vmem:[#allocation32_spill] sm:$0xff] }
 0x435   : > { %v8487_v59 = vadd.f32 %v3313_v44, %v3081_v30 }
 0x436   : > { %5649 = vmatmul.msk.f32.gmra.mxu1 %vm546_vm1, %v9483_v27  ;;  %5736 = vmatmul.msk.f32.gmra.mxu0 %vm546_vm1, %v8307_v48  ;;  %v9490_v27 = vld [vmem:[#allocation48_spill] sm:$0xff] }
 0x437   : > { %5683 = vmatmul.msk.f32.gmra.mxu2 %vm546_vm1, %v8275_v12  ;;  %5702 = vmatmul.msk.f32.gmra.mxu3 %vm546_vm1, %v3927_v41  ;;  %v4204_v12 = vld [vmem:[#allocation2 + $0xc1] sm:$0xff] }
 0x43a   : > { %v3817_v34 = vpop.f32.mrf.mxu2  ;;  %v3040_v18 = vpop.f32.mrf.mxu3 }
 0x43b   : > { %v8493_v42 = vadd.f32 %v3817_v34, %v3617_v45  ;;  %v3544_v39 = vpop.f32.mrf.mxu1  ;;  %v3082_v16 = vadd.f32 %v3040_v18, %v8281_v5  ;;  %v3319_v7 = vpop.f32.mrf.mxu0 }
 0x43c   : > { %v3618_v49 = vadd.f32 %v3544_v39, %v8273_v11  ;;  %v3929_v11 = vld [vmem:[#allocation2 + $0xc8] sm:$0xff] }
 0x43d   : > { %v8500_v48 = vadd.f32 %v3316_v50, %v3082_v16  ;;  %v3930_v50 = vld [vmem:[#allocation2 + $0xd8] sm:$0xff]  ;;  %v8532_v16 = vld [vmem:[#allocation2 + $0x181] sm:$0xff] }
 0x43e   : > { %5650 = vmatmul.msk.f32.gmra.mxu1 %vm546_vm1, %v9485_v55  ;;  %5737 = vmatmul.msk.f32.gmra.mxu0 %vm546_vm1, %v4204_v12  ;;  %v3931_v12 = vld [vmem:[#allocation2 + $0xe0] sm:$0xff] }
 0x43f   : > { %5684 = vmatmul.msk.f32.gmra.mxu2 %vm546_vm1, %v8295_v23  ;;  %5703 = vmatmul.msk.f32.gmra.mxu3 %vm546_vm1, %v3928_v56  ;;  %v4205_v23 = vld [vmem:[#allocation2 + $0xc9] sm:$0xff]  ;;  %v9491_v56 = vld [vmem:[#allocation68_spill] sm:$0xff] }
 0x442   : > { %v3820_v53 = vpop.f32.mrf.mxu2  ;;  %v3043_v5 = vpop.f32.mrf.mxu3 }
 0x443   : > { %v8505_v46 = vadd.f32 %v3820_v53, %v3618_v49  ;;  %v3547_v33 = vpop.f32.mrf.mxu1  ;;  %v3083_v36 = vadd.f32 %v3043_v5, %v9486_v17  ;;  %v3322_v60 = vpop.f32.mrf.mxu0 }
 0x444   : > { %v3619_v44 = vadd.f32 %v3547_v33, %v9488_v20  ;;  %v3932_v20 = vld [vmem:[#allocation2 + $0xf0] sm:$0xff] }
 0x445   : > { %v8512_v63 = vadd.f32 %v3319_v7, %v3083_v36  ;;  %v4207_v7 = vld [vmem:[#allocation2 + $0xe1] sm:$0xff] }
 0x446   : > { %5651 = vmatmul.msk.f32.gmra.mxu1 %vm546_vm1, %v9487_v62  ;;  %5738 = vmatmul.msk.f32.gmra.mxu0 %vm546_vm1, %v4205_v23  ;;  %v8550_v62 = vld [vmem:[#allocation2 + $0x18a] sm:$0xff] }
 0x447   : > { %5685 = vmatmul.msk.f32.gmra.mxu2 %vm546_vm1, %v8317_v29  ;;  %5704 = vmatmul.msk.f32.gmra.mxu3 %vm546_vm1, %v3929_v11  ;;  %v4206_v29 = vld [vmem:[#allocation2 + $0xd9] sm:$0xff]  ;;  %v4208_v23 = vld [vmem:[#allocation2 + $0xf1] sm:$0xff] }
 0x44a   : > { %v3823_v8 = vpop.f32.mrf.mxu2  ;;  %v3046_v28 = vpop.f32.mrf.mxu3 }
 0x44b   : > { %v8517_v24 = vadd.f32 %v3823_v8, %v3619_v44  ;;  %v3550_v31 = vpop.f32.mrf.mxu1  ;;  %v3084_v25 = vadd.f32 %v3046_v28, %v8323_v38  ;;  %v3325_v61 = vpop.f32.mrf.mxu0 }
 0x44c   : > { %v3620_v41 = vadd.f32 %v3550_v31, %v9490_v27 }
 0x44d   : > { %v8524_v30 = vadd.f32 %v3322_v60, %v3084_v25  ;;  %v8548_v60 = vld [vmem:[#allocation2 + $0x189] sm:$0xff] }
 0x44e   : > { %5652 = vmatmul.msk.f32.gmra.mxu1 %vm546_vm1, %v9489_v13  ;;  %5739 = vmatmul.msk.f32.gmra.mxu0 %vm546_vm1, %v4206_v29  ;;  %v4468_v13 = vld [vmem:[#allocation2 + $0x32] sm:$0xff]  ;;  %v9492_v29 = vld [vmem:[#allocation8_spill] sm:$0xff] }
 0x44f   : > { %5686 = vmatmul.msk.f32.gmra.mxu2 %vm546_vm1, %v8333_v15  ;;  %5705 = vmatmul.msk.f32.gmra.mxu3 %vm546_vm1, %v3930_v50  ;;  %v8534_v15 = vld [vmem:[#allocation2 + $0x182] sm:$0xff]  ;;  %v4209_v50 = vld [vmem:[#allocation2 + $0xf9] sm:$0xff] }
 0x452   : > { %v3826_v21 = vpop.f32.mrf.mxu2  ;;  %v3049_v38 = vpop.f32.mrf.mxu3 }
 0x453   : > { %v8529_v45 = vadd.f32 %v3826_v21, %v3620_v41  ;;  %v3553_v34 = vpop.f32.mrf.mxu1  ;;  %v3085_v18 = vadd.f32 %v3049_v38, %v8339_v58  ;;  %v3328_v39 = vpop.f32.mrf.mxu0 }
 0x454   : > { %v3621_v49 = vadd.f32 %v3553_v34, %v9491_v56  ;;  %v4210_v56 = vld [vmem:[#allocation2 + $0x109] sm:$0xff] }
 0x455   : > { %v8540_v55 = vadd.f32 %v3325_v61, %v3085_v18 }
 0x456   : > { %5653 = vmatmul.msk.f32.gmra.mxu1 %vm546_vm1, %v8532_v16  ;;  %5740 = vmatmul.msk.f32.gmra.mxu0 %vm546_vm1, %v4207_v7  ;;  %v4469_v7 = vld [vmem:[#allocation2 + $0x3a] sm:$0xff] }
 0x457   : > { %5687 = vmatmul.msk.f32.gmra.mxu2 %vm546_vm1, %v8534_v15  ;;  %5706 = vmatmul.msk.f32.gmra.mxu3 %vm546_vm1, %v3931_v12  ;;  %v9493_v12 = vld [vmem:[#allocation10_spill] sm:$0xff] }
 0x45a   : > { %v3829_v58 = vpop.f32.mrf.mxu2  ;;  %v3052_v5 = vpop.f32.mrf.mxu3 }
 0x45b   : > { %v8545_v53 = vadd.f32 %v3829_v58, %v3621_v49  ;;  %v3556_v33 = vpop.f32.mrf.mxu1  ;;  %v3086_v17 = vadd.f32 %v3052_v5, %v8350_v26  ;;  %v4340_v36 = vpop.f32.mrf.mxu0 }
 0x45c   : > { %v3622_v44 = vadd.f32 %v3556_v33, %v8345_v51  ;;  %v3933_v51 = vld [vmem:[#allocation2 + $0xf8] sm:$0xff] }
 0x45d   : > { %v8556_v11 = vadd.f32 %v3328_v39, %v3086_v17 }
 0x45e   : > { %5654 = vmatmul.msk.f32.gmra.mxu1 %vm546_vm1, %v8548_v60  ;;  %5741 = vmatmul.msk.f32.gmra.mxu0 %vm546_vm1, %v4208_v23 }
 0x45f   : > { %5688 = vmatmul.msk.f32.gmra.mxu2 %vm546_vm1, %v8550_v62  ;;  %5707 = vmatmul.msk.f32.gmra.mxu3 %vm546_vm1, %v3932_v20  ;;  %v4470_v20 = vld [vmem:[#allocation2 + $0x4a] sm:$0xff] }
 0x462   : > { %v3832_v26 = vpop.f32.mrf.mxu2  ;;  %v4064_v31 = vpop.f32.mrf.mxu3 }
 0x463   : > { %v8561_v8 = vadd.f32 %v3832_v26, %v3622_v44  ;;  %v3559_v28 = vpop.f32.mrf.mxu1  ;;  %v4160_v25 = vadd.f32 %v4064_v31, %v8363_v37  ;;  %v4343_v61 = vpop.f32.mrf.mxu0  ;;  %v9494_v44 = vld [vmem:[#allocation12_spill] sm:$0xff]  ;;  %v4211_v26 = vld [vmem:[#allocation2 + $0x111] sm:$0xff] }
 0x464   : > { %v3623_v41 = vadd.f32 %v3559_v28, %v8357_v57  ;;  %v3934_v57 = vld [vmem:[#allocation2 + $0x108] sm:$0xff] }
 0x465   : > { %v8567_v27 = vadd.f32 %v4340_v36, %v4160_v25 }
 0x466   : > { %5759 = vmatmul.msk.f32.vlgmr.msra.gmra.mxu1 %vm546_vm1, %v4468_v13  ;;  %5742 = vmatmul.msk.f32.gmra.mxu0 %vm546_vm1, %v4209_v50  ;;  %v4471_v50 = vld [vmem:[#allocation2 + $0x52] sm:$0xff] }
 0x467   : > { %5791 = vmatmul.msk.f32.vlgmr.msra.gmra.mxu2 %vm546_vm1, %v9492_v29  ;;  %5708 = vmatmul.msk.f32.gmra.mxu3 %vm546_vm1, %v3933_v51 }
 0x46a   : > { %v3835_v21 = vpop.f32.mrf.mxu2  ;;  %v4067_v34 = vpop.f32.mrf.mxu3 }
 0x46b   : > { %v8572_v38 = vadd.f32 %v3835_v21, %v3623_v41  ;;  %v3562_v37 = vpop.f32.mrf.mxu1  ;;  %v4161_v18 = vadd.f32 %v4067_v34, %v8376_v40  ;;  %v4346_v39 = vpop.f32.mrf.mxu0  ;;  %v9495_v41 = vld [vmem:[#allocation14_spill] sm:$0xff]  ;;  %v4212_v21 = vld [vmem:[#allocation2 + $0x121] sm:$0xff] }
 0x46c   : > { %v3624_v58 = vadd.f32 %v3562_v37, %v8370_v4  ;;  %v3935_v4 = vld [vmem:[#allocation2 + $0x110] sm:$0xff] }
 0x46d   : > { %v8578_v49 = vadd.f32 %v4343_v61, %v4161_v18 }
 0x46e   : > { %5760 = vmatmul.msk.f32.gmra.mxu1 %vm546_vm1, %v4469_v7  ;;  %5743 = vmatmul.msk.f32.gmra.mxu0 %vm546_vm1, %v4210_v56  ;;  %v4472_v56 = vld [vmem:[#allocation2 + $0x62] sm:$0xff] }
 0x46f   : > { %5792 = vmatmul.msk.f32.gmra.mxu2 %vm546_vm1, %v9493_v12  ;;  %5709 = vmatmul.msk.f32.gmra.mxu3 %vm546_vm1, %v3934_v57  ;;  %v9496_v57 = vld [vmem:[#allocation16_spill] sm:$0xff] }
 0x472   : > { %v3838_v5 = vpop.f32.mrf.mxu2  ;;  %v4070_v17 = vpop.f32.mrf.mxu3 }
 0x473   : > { %v8583_v33 = vadd.f32 %v3838_v5, %v3624_v58  ;;  %v3565_v40 = vpop.f32.mrf.mxu1  ;;  %v4162_v36 = vadd.f32 %v4070_v17, %v8389_v22  ;;  %v4349_v23 = vpop.f32.mrf.mxu0  ;;  %v4213_v58 = vld [vmem:[#allocation2 + $0x129] sm:$0xff] }
 0x474   : > { %v3625_v31 = vadd.f32 %v3565_v40, %v8383_v52  ;;  %v3936_v52 = vld [vmem:[#allocation2 + $0x120] sm:$0xff]  ;;  %v3937_v40 = vld [vmem:[#allocation2 + $0x128] sm:$0xff] }
 0x475   : > { %v8589_v28 = vadd.f32 %v4346_v39, %v4162_v36 }
 0x476   : > { %5761 = vmatmul.msk.f32.gmra.mxu1 %vm546_vm1, %v4470_v20  ;;  %5744 = vmatmul.msk.f32.gmra.mxu0 %vm546_vm1, %v4211_v26  ;;  %v4473_v26 = vld [vmem:[#allocation2 + $0x6a] sm:$0xff] }
 0x477   : > { %5793 = vmatmul.msk.f32.gmra.mxu2 %vm546_vm1, %v9494_v44  ;;  %5710 = vmatmul.msk.f32.gmra.mxu3 %vm546_vm1, %v3935_v4  ;;  %v9497_v4 = vld [vmem:[#allocation18_spill] sm:$0xff] }
 0x47a   : > { %v3841_v25 = vpop.f32.mrf.mxu2  ;;  %v4073_v13 = vpop.f32.mrf.mxu3 }
 0x47b   : > { %v8594_v61 = vadd.f32 %v3841_v25, %v3625_v31  ;;  %v3568_v22 = vpop.f32.mrf.mxu1  ;;  %v4163_v29 = vadd.f32 %v4073_v13, %v8402_v2  ;;  %v4352_v51 = vpop.f32.mrf.mxu0  ;;  %v4214_v31 = vld [vmem:[#allocation2 + $0x139] sm:$0xff] }
 0x47c   : > { %v3626_v34 = vadd.f32 %v3568_v22, %v8396_v6 }
 0x47d   : > { %v8600_v37 = vadd.f32 %v4349_v23, %v4163_v29 }
 0x47e   : > { %5762 = vmatmul.msk.f32.gmra.mxu1 %vm546_vm1, %v4471_v50  ;;  %5745 = vmatmul.msk.f32.gmra.mxu0 %vm546_vm1, %v4212_v21  ;;  %v4474_v21 = vld [vmem:[#allocation2 + $0x7a] sm:$0xff] }
 0x47f   : > { %5794 = vmatmul.msk.f32.gmra.mxu2 %vm546_vm1, %v9495_v41  ;;  %5711 = vmatmul.msk.f32.gmra.mxu3 %vm546_vm1, %v3936_v52  ;;  %v9498_v52 = vld [vmem:[#allocation20_spill] sm:$0xff] }
 0x482   : > { %v3844_v18 = vpop.f32.mrf.mxu2  ;;  %v4076_v7 = vpop.f32.mrf.mxu3 }
 0x483   : > { %v8605_v39 = vadd.f32 %v3844_v18, %v3626_v34  ;;  %v3571_v2 = vpop.f32.mrf.mxu1  ;;  %v4164_v12 = vadd.f32 %v4076_v7, %v8415_v14  ;;  %v4355_v17 = vpop.f32.mrf.mxu0  ;;  %v4215_v34 = vld [vmem:[#allocation2 + $0x141] sm:$0xff] }
 0x484   : > { %v3627_v6 = vadd.f32 %v3571_v2, %v8409_v43  ;;  %v3938_v43 = vld [vmem:[#allocation2 + $0x138] sm:$0xff] }
 0x485   : > { %v8611_v5 = vadd.f32 %v4352_v51, %v4164_v12 }
 0x486   : > { %5763 = vmatmul.msk.f32.gmra.mxu1 %vm546_vm1, %v4472_v56  ;;  %5746 = vmatmul.msk.f32.gmra.mxu0 %vm546_vm1, %v4213_v58 }
 0x487   : > { %5795 = vmatmul.msk.f32.gmra.mxu2 %vm546_vm1, %v9496_v57  ;;  %5712 = vmatmul.msk.f32.gmra.mxu3 %vm546_vm1, %v3937_v40  ;;  %v4475_v40 = vld [vmem:[#allocation2 + $0x82] sm:$0xff] }
 0x48a   : > { %v3847_v36 = vpop.f32.mrf.mxu2  ;;  %v4079_v20 = vpop.f32.mrf.mxu3 }
 0x48b   : > { %v8616_v23 = vadd.f32 %v3847_v36, %v3627_v6  ;;  %v3574_v14 = vpop.f32.mrf.mxu1  ;;  %v4165_v44 = vadd.f32 %v4079_v20, %v8428_v19  ;;  %v4358_v29 = vpop.f32.mrf.mxu0  ;;  %v9499_v6 = vld [vmem:[#allocation21_spill] sm:$0xff] }
 0x48c   : > { %v3628_v22 = vadd.f32 %v3574_v14, %v8422_v10  ;;  %v3939_v10 = vld [vmem:[#allocation2 + $0x140] sm:$0xff] }
 0x48d   : > { %v8622_v25 = vadd.f32 %v4355_v17, %v4165_v44  ;;  %v4216_v17 = vld [vmem:[#allocation2 + $0x151] sm:$0xff] }
 0x48e   : > { %5764 = vmatmul.msk.f32.gmra.mxu1 %vm546_vm1, %v4473_v26  ;;  %5747 = vmatmul.msk.f32.gmra.mxu0 %vm546_vm1, %v4214_v31  ;;  %v4476_v26 = vld [vmem:[#allocation2 + $0x92] sm:$0xff] }
 0x48f   : > { %5796 = vmatmul.msk.f32.gmra.mxu2 %vm546_vm1, %v9497_v4  ;;  %5713 = vmatmul.msk.f32.gmra.mxu3 %vm546_vm1, %v3938_v43  ;;  %v9500_v4 = vld [vmem:[#allocation22_spill] sm:$0xff]  ;;  %v4217_v31 = vld [vmem:[#allocation2 + $0x159] sm:$0xff] }
 0x490   : > { %v3941_v43 = vld [vmem:[#allocation2 + $0x158] sm:$0xff] }
 0x492   : > { %v3850_v13 = vpop.f32.mrf.mxu2  ;;  %v4082_v51 = vpop.f32.mrf.mxu3 }
 0x493   : > { %v8627_v50 = vadd.f32 %v3850_v13, %v3628_v22  ;;  %v3577_v19 = vpop.f32.mrf.mxu1  ;;  %v4166_v41 = vadd.f32 %v4082_v51, %v8441_v32  ;;  %v4361_v58 = vpop.f32.mrf.mxu0  ;;  %v9501_v51 = vld [vmem:[#allocation23_spill] sm:$0xff] }
 0x494   : > { %v3629_v2 = vadd.f32 %v3577_v19, %v8435_v54  ;;  %v3940_v54 = vld [vmem:[#allocation2 + $0x150] sm:$0xff]  ;;  %v4477_v19 = vld [vmem:[#allocation2 + $0x9a] sm:$0xff] }
 0x495   : > { %v8633_v18 = vadd.f32 %v4358_v29, %v4166_v41  ;;  %v4218_v41 = vld [vmem:[#allocation2 + $0x169] sm:$0xff] }
 0x496   : > { %5765 = vmatmul.msk.f32.gmra.mxu1 %vm546_vm1, %v4474_v21  ;;  %5748 = vmatmul.msk.f32.gmra.mxu0 %vm546_vm1, %v4215_v34  ;;  %v3942_v21 = vld [vmem:[#allocation2 + $0x168] sm:$0xff] }
 0x497   : > { %5797 = vmatmul.msk.f32.gmra.mxu2 %vm546_vm1, %v9498_v52  ;;  %5714 = vmatmul.msk.f32.gmra.mxu3 %vm546_vm1, %v3939_v10 }
 0x49a   : > { %v3853_v7 = vpop.f32.mrf.mxu2  ;;  %v4085_v56 = vpop.f32.mrf.mxu3 }
 0x49b   : > { %v8638_v12 = vadd.f32 %v3853_v7, %v3629_v2  ;;  %v3580_v32 = vpop.f32.mrf.mxu1  ;;  %v4167_v57 = vadd.f32 %v4085_v56, %v8454_v1  ;;  %v4478_v2 = vld [vmem:[#allocation2 + $0xaa] sm:$0xff]  ;;  %v9502_v7 = vld [vmem:[#allocation24_spill] sm:$0xff] }
 0x49c   : > { %v3630_v14 = vadd.f32 %v3580_v32, %v8448_v9  ;;  %v4219_v32 = vld [vmem:[#allocation2 + $0x171] sm:$0xff] }
 0x49d   : > { %v8644_v36 = vadd.f32 %v4361_v58, %v4167_v57  ;;  %v3943_v56 = vld [vmem:[#allocation2 + $0x170] sm:$0xff] }
 0x49e   : > { %5766 = vmatmul.msk.f32.gmra.mxu1 %vm546_vm1, %v4475_v40  ;;  %5749 = vmatmul.msk.f32.gmra.mxu0 %vm546_vm1, %v4216_v17  ;;  %v9503_v17 = vld [vmem:[#allocation25_spill] sm:$0xff] }
 0x49f   : > { %5798 = vmatmul.msk.f32.gmra.mxu2 %vm546_vm1, %v9499_v6  ;;  %5715 = vmatmul.msk.f32.gmra.mxu3 %vm546_vm1, %v3940_v54  ;;  %v4479_v6 = vld [vmem:[#allocation2 + $0xb2] sm:$0xff] }
 0x4a2   : > { %v3856_v20 = vpop.f32.mrf.mxu2 }
 0x4a3   : > { %v8649_v44 = vadd.f32 %v3856_v20, %v3630_v14  ;;  %v3583_v1 = vpop.f32.mrf.mxu1  ;;  %v9504_v14 = vld [vmem:[#allocation69_spill] sm:$0xff] }
 0x4a4   : > { %v3631_v22 = vadd.f32 %v3583_v1, %v8461_v0 }
 0x4a6   : > { %5767 = vmatmul.msk.f32.gmra.mxu1 %vm546_vm1, %v4476_v26  ;;  %5750 = vmatmul.msk.f32.gmra.mxu0 %vm546_vm1, %v4217_v31  ;;  %v4480_v26 = vld [vmem:[#allocation2 + $0xc2] sm:$0xff]  ;;  %v9506_v31 = vld [vmem:[#allocation70_spill] sm:$0xff] }
 0x4a7   : > { %5799 = vmatmul.msk.f32.gmra.mxu2 %vm546_vm1, %v9500_v4  ;;  %5716 = vmatmul.msk.f32.gmra.mxu3 %vm546_vm1, %v3941_v43  ;;  %v9505_v4 = vld [vmem:[#allocation27_spill] sm:$0xff] }
 0x4aa   : > { %v3859_v9 = vpop.f32.mrf.mxu2 }
 0x4ab   : > { %v8657_v13 = vadd.f32 %v3859_v9, %v3631_v22  ;;  %v3586_v29 = vpop.f32.mrf.mxu1  ;;  %v4222_v9 = vld [vmem:[#allocation2 + $0x199] sm:$0xff] }
 0x4ac   : > { %v3632_v52 = vadd.f32 %v3586_v29, %v8474_v35  ;;  %v4481_v29 = vld [vmem:[#allocation2 + $0xca] sm:$0xff] }
 0x4ae   : > { %5768 = vmatmul.msk.f32.gmra.mxu1 %vm546_vm1, %v4477_v19  ;;  %5751 = vmatmul.msk.f32.gmra.mxu0 %vm546_vm1, %v4218_v41  ;;  %v3946_v19 = vld [vmem:[#allocation2 + $0x198] sm:$0xff] }
 0x4af   : > { %5800 = vmatmul.msk.f32.gmra.mxu2 %vm546_vm1, %v9501_v51  ;;  %5717 = vmatmul.msk.f32.gmra.mxu3 %vm546_vm1, %v3942_v21  ;;  %v9507_v51 = vld [vmem:[#allocation29_spill] sm:$0xff] }
 0x4b2   : > { %v3862_v0 = vpop.f32.mrf.mxu2 }
 0x4b3   : > { %v8665_v34 = vadd.f32 %v3862_v0, %v3632_v52  ;;  %v3589_v10 = vpop.f32.mrf.mxu1  ;;  %v4223_v52 = vld [vmem:[#allocation2 + $0x1a1] sm:$0xff] }
 0x4b4   : > { %v3633_v57 = vadd.f32 %v3589_v10, %v8487_v59  ;;  %v4482_v0 = vld [vmem:[#allocation2 + $0xda] sm:$0xff] }
 0x4b5   : > { %v3947_v10 = vld [vmem:[#allocation2 + $0x1a0] sm:$0xff] }
 0x4b6   : > { %5769 = vmatmul.msk.f32.gmra.mxu1 %vm546_vm1, %v4478_v2  ;;  %5752 = vmatmul.msk.f32.gmra.mxu0 %vm546_vm1, %v4219_v32  ;;  %v9508_v2 = vld [vmem:[#allocation33_spill] sm:$0xff] }
 0x4b7   : > { %5801 = vmatmul.msk.f32.gmra.mxu2 %vm546_vm1, %v9502_v7  ;;  %5718 = vmatmul.msk.f32.gmra.mxu3 %vm546_vm1, %v3943_v56 }
 0x4ba   : > { %v3865_v35 = vpop.f32.mrf.mxu2 }
 0x4bb   : > { %v8673_v58 = vadd.f32 %v3865_v35, %v3633_v57  ;;  %v3592_v40 = vpop.f32.mrf.mxu1  ;;  %v4483_v57 = vld [vmem:[#allocation2 + $0xe2] sm:$0xff] }
 0x4bc   : > { %v3634_v54 = vadd.f32 %v3592_v40, %v8500_v48  ;;  %v9509_v35 = vld [vmem:[#allocation37_spill] sm:$0xff] }
 0x4be   : > { %5770 = vmatmul.msk.f32.gmra.mxu1 %vm546_vm1, %v4479_v6  ;;  %5753 = vmatmul.msk.f32.gmra.mxu0 %vm546_vm1, %v8532_v16 }
 0x4bf   : > { %5802 = vmatmul.msk.f32.gmra.mxu2 %vm546_vm1, %v9503_v17  ;;  %5719 = vmatmul.msk.f32.gmra.mxu3 %vm546_vm1, %v9504_v14  ;;  %v8721_v14 = vld [vmem:[%s9109_s5] ss:$0 sm:$0xff] }
 0x4c2   : > { %v3868_v59 = vpop.f32.mrf.mxu2 }
 0x4c3   : > { %v8683_v20 = vadd.f32 %v3868_v59, %v3634_v54  ;;  %v3595_v1 = vpop.f32.mrf.mxu1  ;;  %v4484_v59 = vld [vmem:[#allocation2 + $0xf2] sm:$0xff] }
 0x4c4   : > { %v3635_v16 = vadd.f32 %v3595_v1, %v8512_v63  ;;  %v9510_v1 = vld [vmem:[#allocation42_spill] sm:$0xff] }
 0x4c6   : > { %5771 = vmatmul.msk.f32.gmra.mxu1 %vm546_vm1, %v4480_v26  ;;  %5754 = vmatmul.msk.f32.gmra.mxu0 %vm546_vm1, %v8548_v60 }
 0x4c7   : > { %5803 = vmatmul.msk.f32.gmra.mxu2 %vm546_vm1, %v9505_v4  ;;  %5720 = vmatmul.msk.f32.gmra.mxu3 %vm546_vm1, %v9506_v31  ;;  %v8740_v4 = vld [vmem:[%s9113_s9] ss:$0 sm:$0xff] }
 0x4ca   : > { %v3871_v48 = vpop.f32.mrf.mxu2 }
 0x4cb   : > { %v8693_v43 = vadd.f32 %v3871_v48, %v3635_v16  ;;  %v3598_v22 = vpop.f32.mrf.mxu1 }
 0x4cc   : > { %v3636_v60 = vadd.f32 %v3598_v22, %v8524_v30 }
 0x4ce   : > { %5772 = vmatmul.msk.f32.gmra.mxu1 %vm546_vm1, %v4481_v29  ;;  %5755 = vmatmul.msk.f32.gmra.mxu0 %vm546_vm1, %v4222_v9 }
 0x4cf   : > { %5804 = vmatmul.msk.f32.gmra.mxu2 %vm546_vm1, %v9507_v51  ;;  %5721 = vmatmul.msk.f32.gmra.mxu3 %vm546_vm1, %v3946_v19  ;;  %v8749_v19 = vpop.f32.mrf.mxu3  ;;  %v4485_v51 = vld [vmem:[#allocation2 + $0xfa] sm:$0xff] }
 0x4d2   : > { %v3874_v63 = vpop.f32.mrf.mxu2 }
 0x4d3   : > { %v8701_v41 = vadd.f32 %v3874_v63, %v3636_v60  ;;  %v3601_v21 = vpop.f32.mrf.mxu1  ;;  %v9511_v63 = vld [vmem:[#allocation46_spill] sm:$0xff] }
 0x4d4   : > { %v3637_v7 = vadd.f32 %v3601_v21, %v8540_v55 }
 0x4d6   : > { %5773 = vmatmul.msk.f32.gmra.mxu1 %vm546_vm1, %v4482_v0  ;;  %5756 = vmatmul.msk.f32.gmra.mxu0 %vm546_vm1, %v4223_v52 }
 0x4d7   : > { %5805 = vmatmul.msk.f32.gmra.mxu2 %vm546_vm1, %v9508_v2  ;;  %5722 = vmatmul.msk.f32.gmra.mxu3 %vm546_vm1, %v3947_v10  ;;  %v8760_v10 = vpop.f32.mrf.mxu0 }
 0x4da   : > { %v3877_v30 = vpop.f32.mrf.mxu2 }
 0x4db   : > { %v8709_v32 = vadd.f32 %v3877_v30, %v3637_v7  ;;  %v3604_v56 = vpop.f32.mrf.mxu1 }
 0x4dc   : > { %v3638_v40 = vadd.f32 %v3604_v56, %v8556_v11  ;;  %v8729_v11 = vld [vmem:[%s9112_s8] ss:$0 sm:$0xff] }
 0x4de   : > { %5774 = vmatmul.msk.f32.gmra.mxu1 %vm546_vm1, %v4483_v57  ;;  %v4486_v57 = vld [vmem:[#allocation2 + $0x10a] sm:$0xff] }
 0x4df   : > { %5806 = vmatmul.msk.f32.gmra.mxu2 %vm546_vm1, %v9509_v35 }
 0x4e2   : > { %v3880_v6 = vpop.f32.mrf.mxu2 }
 0x4e3   : > { %v8715_v17 = vadd.f32 %v3880_v6, %v3638_v40  ;;  %v4616_v55 = vpop.f32.mrf.mxu1  ;;  %v9512_v40 = vld [vmem:[#allocation52_spill] sm:$0xff]  ;;  %v8768_v6 = vpop.f32.mrf.mxu3 }
 0x4e4   : > { %v4712_v54 = vadd.f32 %v4616_v55, %v8567_v27  ;;  %v8735_v27 = vld [vmem:[%s9110_s6] ss:$0 sm:$0xff] }
 0x4e6   : > { %5775 = vmatmul.msk.f32.gmra.mxu1 %vm546_vm1, %v4484_v59  ;;  %v4748_v26 = vmul.f32 %v8721_v14, %v4712_v54 }
 0x4e7   : > { %5807 = vmatmul.msk.f32.gmra.mxu2 %vm546_vm1, %v9510_v1 }
 0x4e8   : > { %v4784_v22 = vadd.f32 %v8735_v27, %v4748_v26 }
 0x4ea   : > { %v4835_v16 = vpop.f32.mrf.mxu2 }
 0x4eb   : > { %v4935_v31 = vmul.f32 %v8729_v11, %v4835_v16  ;;  %v4619_v48 = vpop.f32.mrf.mxu1 }
 0x4ec   : > { %v4713_v29 = vadd.f32 %v4619_v48, %v8578_v49  ;;  %v8777_v48 = vpop.f32.mrf.mxu0 }
 0x4ed   : > { %v4971_v9 = vadd.f32 %v8740_v4, %v4935_v31 }
 0x4ee   : > { %5776 = vmatmul.msk.f32.gmra.mxu1 %vm546_vm1, %v4485_v51  ;;  %v4749_v52 = vmul.f32 %v8721_v14, %v4713_v29  ;;  %v9513_v29 = vld [vmem:[#allocation56_spill] sm:$0xff] }
 0x4ef   : > { %v5003_v60 = vadd.f32 %v4971_v9, %v4784_v22  ;;  %5808 = vmatmul.msk.f32.gmra.mxu2 %vm546_vm1, %v9511_v63  ;;  %v4487_v22 = vld [vmem:[#allocation2 + $0x112] sm:$0xff]  ;;  %v8783_v63 = vpop.f32.mrf.mxu3 }
 0x4f0   : > { %v4785_v7 = vadd.f32 %v8735_v27, %v4749_v52 }
 0x4f1   : > { %v5035_v21 = vmax.f32 %v5003_v60, 0.0 }
 0x4f2   : > { %v4838_v0 = vpop.f32.mrf.mxu2 }
 0x4f3   : > { %5067 = vst.msk [vmem:[%s8755_s29] sm:$0xff] %vm546_vm1, %v5035_v21  ;;  %v4936_v49 = vmul.f32 %v8729_v11, %v4838_v0  ;;  %v4622_v2 = vpop.f32.mrf.mxu1 }
 0x4f4   : > { %v4714_v56 = vadd.f32 %v4622_v2, %v8589_v28 }
 0x4f5   : > { %v4972_v30 = vadd.f32 %v8740_v4, %v4936_v49 }
 0x4f6   : > { %5777 = vmatmul.msk.f32.gmra.mxu1 %vm546_vm1, %v4486_v57  ;;  %v4750_v54 = vmul.f32 %v8721_v14, %v4714_v56  ;;  %v9514_v56 = vld [vmem:[#allocation61_spill] sm:$0xff]  ;;  %v8794_v57 = vpop.f32.mrf.mxu0 }
 0x4f7   : > { %v5004_v35 = vadd.f32 %v4972_v30, %v4785_v7  ;;  %5809 = vmatmul.msk.f32.gmra.mxu2 %vm546_vm1, %v9512_v40  ;;  %v4488_v7 = vld [vmem:[#allocation2 + $0x122] sm:$0xff] }
 0x4f8   : > { %v4786_v28 = vadd.f32 %v8735_v27, %v4750_v54 }
 0x4f9   : > { %v5036_v55 = vmax.f32 %v5004_v35, 0.0 }
 0x4fa   : > { %v4841_v59 = vpop.f32.mrf.mxu2 }
 0x4fb   : > { %5068 = vst.msk [vmem:[%s8755_s29 + $0x8] sm:$0xff] %vm546_vm1, %v5036_v55  ;;  %v4937_v1 = vmul.f32 %v8729_v11, %v4841_v59  ;;  %v4625_v26 = vpop.f32.mrf.mxu1  ;;  %v8800_v59 = vpop.f32.mrf.mxu3 }
 0x4fc   : > { %v4715_v31 = vadd.f32 %v4625_v26, %v8600_v37 }
 0x4fd   : > { %v4973_v16 = vadd.f32 %v8740_v4, %v4937_v1 }
 0x4fe   : > { %5778 = vmatmul.msk.f32.gmra.mxu1 %vm546_vm1, %v4487_v22  ;;  %v4751_v60 = vmul.f32 %v8721_v14, %v4715_v31  ;;  %v9515_v22 = vld [vmem:[#allocation64_spill] sm:$0xff] }
 0x4ff   : > { %v5005_v9 = vadd.f32 %v4973_v16, %v4786_v28  ;;  %5810 = vmatmul.msk.f32.gmra.mxu2 %vm546_vm1, %v9513_v29  ;;  %v4489_v16 = vld [vmem:[#allocation2 + $0x12a] sm:$0xff] }
 0x500   : > { %v4787_v0 = vadd.f32 %v8735_v27, %v4751_v60 }
 0x501   : > { %v5037_v51 = vmax.f32 %v5005_v9, 0.0 }
 0x502   : > { %v4844_v21 = vpop.f32.mrf.mxu2 }
 0x503   : > { %5069 = vst.msk [vmem:[%s8755_s29 + $0x10] sm:$0xff] %vm546_vm1, %v5037_v51  ;;  %v4938_v37 = vmul.f32 %v8729_v11, %v4844_v21  ;;  %v4628_v52 = vpop.f32.mrf.mxu1  ;;  %v8809_v51 = vpop.f32.mrf.mxu0 }
 0x504   : > { %v4716_v2 = vadd.f32 %v4628_v52, %v8611_v5 }
 0x505   : > { %v4974_v49 = vadd.f32 %v8740_v4, %v4938_v37 }
 0x506   : > { %5779 = vmatmul.msk.f32.gmra.mxu1 %vm546_vm1, %v4488_v7  ;;  %v4752_v40 = vmul.f32 %v8721_v14, %v4716_v2  ;;  %v4490_v2 = vld [vmem:[#allocation2 + $0x13a] sm:$0xff] }
 0x507   : > { %v5006_v30 = vadd.f32 %v4974_v49, %v4787_v0  ;;  %5811 = vmatmul.msk.f32.gmra.mxu2 %vm546_vm1, %v9514_v56  ;;  %v8817_v49 = vpop.f32.mrf.mxu3 }
 0x508   : > { %v4788_v1 = vadd.f32 %v8735_v27, %v4752_v40 }
 0x509   : > { %v5038_v35 = vmax.f32 %v5006_v30, 0.0  ;;  %v9516_v30 = vld [vmem:[#allocation6_spill] sm:$0xff] }
 0x50a   : > { %v4847_v55 = vpop.f32.mrf.mxu2 }
 0x50b   : > { %5070 = vst.msk [vmem:[%s8755_s29 + $0x18] sm:$0xff] %vm546_vm1, %v5038_v35  ;;  %v4939_v54 = vmul.f32 %v8729_v11, %v4847_v55  ;;  %v4631_v5 = vpop.f32.mrf.mxu1 }
 0x50c   : > { %v4717_v28 = vadd.f32 %v4631_v5, %v8622_v25 }
 0x50d   : > { %v4975_v26 = vadd.f32 %v8740_v4, %v4939_v54  ;;  %v8826_v54 = vpop.f32.mrf.mxu0 }
 0x50e   : > { %5780 = vmatmul.msk.f32.gmra.mxu1 %vm546_vm1, %v4489_v16  ;;  %v4753_v29 = vmul.f32 %v8721_v14, %v4717_v28  ;;  %v4491_v28 = vld [vmem:[#allocation2 + $0x142] sm:$0xff]  ;;  %v4168_v16 = vadd.f32 %v8749_v19, %v8467_v47 }
 0x50f   : > { %v5007_v31 = vadd.f32 %v4975_v26, %v4788_v1  ;;  %5812 = vmatmul.msk.f32.gmra.mxu2 %vm546_vm1, %v9515_v22  ;;  %v9517_v22 = vld [vmem:[#allocation7_spill] sm:$0xff] }
 0x510   : > { %v4789_v25 = vadd.f32 %v8735_v27, %v4753_v29 }
 0x511   : > { %v5039_v9 = vmax.f32 %v5007_v31, 0.0 }
 0x512   : > { %v4850_v60 = vpop.f32.mrf.mxu2 }
 0x513   : > { %5071 = vst.msk [vmem:[%s8755_s29 + $0x20] sm:$0xff] %vm546_vm1, %v5039_v9  ;;  %v4940_v21 = vmul.f32 %v8729_v11, %v4850_v60  ;;  %v4634_v37 = vpop.f32.mrf.mxu1  ;;  %v8836_v9 = vpop.f32.mrf.mxu3 }
 0x514   : > { %v4718_v0 = vadd.f32 %v4634_v37, %v8633_v18  ;;  %v4444_v37 = vadd.f32 %v8760_v10, %v4168_v16  ;;  %v4170_v16 = vadd.f32 %v8783_v63, %v8493_v42 }
 0x515   : > { %v4976_v52 = vadd.f32 %v8740_v4, %v4940_v21 }
 0x516   : > { %5781 = vmatmul.msk.f32.gmra.mxu1 %vm546_vm1, %v4490_v2  ;;  %v4754_v35 = vmul.f32 %v8721_v14, %v4718_v0  ;;  %v8845_v0 = vpop.f32.mrf.mxu0  ;;  %v4492_v2 = vld [vmem:[#allocation2 + $0x152] sm:$0xff] }
 0x517   : > { %v5008_v7 = vadd.f32 %v4976_v52, %v4789_v25  ;;  %5813 = vmatmul.msk.f32.gmra.mxu2 %vm546_vm1, %v9516_v30 }
 0x518   : > { %v4790_v5 = vadd.f32 %v8735_v27, %v4754_v35 }
 0x519   : > { %v5040_v56 = vmax.f32 %v5008_v7, 0.0  ;;  %v4169_v7 = vadd.f32 %v8768_v6, %v8480_v3 }
 0x51a   : > { %v4853_v40 = vpop.f32.mrf.mxu2 }
 0x51b   : > { %5072 = vst.msk [vmem:[%s8755_s29 + $0x28] sm:$0xff] %vm546_vm1, %v5040_v56  ;;  %v4941_v55 = vmul.f32 %v8729_v11, %v4853_v40  ;;  %v4637_v18 = vpop.f32.mrf.mxu1  ;;  %v9518_v56 = vld [vmem:[#allocation9_spill] sm:$0xff]  ;;  %v8853_v40 = vpop.f32.mrf.mxu3 }
 0x51c   : > { %v4719_v26 = vadd.f32 %v4637_v18, %v8644_v36 }
 0x51d   : > { %v4977_v1 = vadd.f32 %v8740_v4, %v4941_v55 }
 0x51e   : > { %5782 = vmatmul.msk.f32.gmra.mxu1 %vm546_vm1, %v4491_v28  ;;  %v4755_v60 = vmul.f32 %v8721_v14, %v4719_v26  ;;  %v4493_v28 = vld [vmem:[#allocation2 + $0x15a] sm:$0xff] }
 0x51f   : > { %v5009_v31 = vadd.f32 %v4977_v1, %v4790_v5  ;;  %5814 = vmatmul.msk.f32.gmra.mxu2 %vm546_vm1, %v9517_v22  ;;  %v4445_v5 = vadd.f32 %v8777_v48, %v4169_v7  ;;  %v9519_v22 = vld [vmem:[#allocation11_spill] sm:$0xff] }
 0x520   : > { %v4791_v19 = vadd.f32 %v8735_v27, %v4755_v60 }
 0x521   : > { %v5041_v29 = vmax.f32 %v5009_v31, 0.0 }
 0x522   : > { %v4856_v21 = vpop.f32.mrf.mxu2 }
 0x523   : > { %5073 = vst.msk [vmem:[%s8755_s29 + $0x30] sm:$0xff] %vm546_vm1, %v5041_v29  ;;  %v4942_v36 = vmul.f32 %v8729_v11, %v4856_v21  ;;  %v4640_v47 = vpop.f32.mrf.mxu1  ;;  %v8866_v29 = vpop.f32.mrf.mxu0 }
 0x524   : > { %v4720_v52 = vadd.f32 %v4640_v47, %v4444_v37  ;;  %v4446_v37 = vadd.f32 %v8794_v57, %v4170_v16  ;;  %v8873_v42 = vpop.f32.mrf.mxu3  ;;  %v9521_v16 = vld [vmem:[#allocation15_spill] sm:$0xff] }
 0x525   : > { %v4978_v25 = vadd.f32 %v8740_v4, %v4942_v36 }
 0x526   : > { %5783 = vmatmul.msk.f32.gmra.mxu1 %vm546_vm1, %v4492_v2  ;;  %v4756_v10 = vmul.f32 %v8721_v14, %v4720_v52  ;;  %v4494_v52 = vld [vmem:[#allocation2 + $0x16a] sm:$0xff]  ;;  %v4171_v2 = vadd.f32 %v8800_v59, %v8505_v46 }
 0x527   : > { %v5010_v30 = vadd.f32 %v4978_v25, %v4791_v19  ;;  %5815 = vmatmul.msk.f32.gmra.mxu2 %vm546_vm1, %v9518_v56 }
 0x528   : > { %v4792_v6 = vadd.f32 %v8735_v27, %v4756_v10 }
 0x529   : > { %v5042_v35 = vmax.f32 %v5010_v30, 0.0  ;;  %v9520_v30 = vld [vmem:[#allocation13_spill] sm:$0xff] }
 0x52a   : > { %v4859_v55 = vpop.f32.mrf.mxu2 }
 0x52b   : > { %5074 = vst.msk [vmem:[%s8755_s29 + $0x38] sm:$0xff] %vm546_vm1, %v5042_v35  ;;  %v4943_v18 = vmul.f32 %v8729_v11, %v4859_v55  ;;  %v4643_v3 = vpop.f32.mrf.mxu1  ;;  %v8883_v35 = vpop.f32.mrf.mxu0 }
 0x52c   : > { %v4721_v26 = vadd.f32 %v4643_v3, %v4445_v5 }
 0x52d   : > { %v4979_v1 = vadd.f32 %v8740_v4, %v4943_v18  ;;  %v4447_v18 = vadd.f32 %v8809_v51, %v4171_v2 }
 0x52e   : > { %5784 = vmatmul.msk.f32.gmra.mxu1 %vm546_vm1, %v4493_v28  ;;  %v4757_v48 = vmul.f32 %v8721_v14, %v4721_v26  ;;  %v4172_v26 = vadd.f32 %v8817_v49, %v8517_v24 }
 0x52f   : > { %v5011_v31 = vadd.f32 %v4979_v1, %v4792_v6  ;;  %5816 = vmatmul.msk.f32.gmra.mxu2 %vm546_vm1, %v9519_v22  ;;  %v8891_v6 = vpop.f32.mrf.mxu3  ;;  %v4495_v1 = vld [vmem:[#allocation2 + $0x172] sm:$0xff] }
 0x530   : > { %v4793_v47 = vadd.f32 %v8735_v27, %v4757_v48  ;;  %v4448_v48 = vadd.f32 %v8826_v54, %v4172_v26 }
 0x531   : > { %v5043_v60 = vmax.f32 %v5011_v31, 0.0 }
 0x532   : > { %v4862_v21 = vpop.f32.mrf.mxu2 }
 0x533   : > { %5075 = vst.msk [vmem:[%s8755_s29 + $0x40] sm:$0xff] %vm546_vm1, %v5043_v60  ;;  %v4944_v36 = vmul.f32 %v8729_v11, %v4862_v21  ;;  %v4646_v63 = vpop.f32.mrf.mxu1  ;;  %v8903_v21 = vpop.f32.mrf.mxu0 }
 0x534   : > { %v4722_v25 = vadd.f32 %v4646_v63, %v4446_v37  ;;  %v4173_v63 = vadd.f32 %v8836_v9, %v8529_v45 }
 0x535   : > { %v4980_v19 = vadd.f32 %v8740_v4, %v4944_v36 }
 0x536   : > { %5785 = vmatmul.msk.f32.gmra.mxu1 %vm546_vm1, %v4494_v52  ;;  %v4758_v57 = vmul.f32 %v8721_v14, %v4722_v25 }
 0x537   : > { %v5012_v7 = vadd.f32 %v4980_v19, %v4793_v47  ;;  %5817 = vmatmul.msk.f32.gmra.mxu2 %vm546_vm1, %v9520_v30  ;;  %v9522_v19 = vld [vmem:[#allocation17_spill] sm:$0xff]  ;;  %v4115_v25 = vpop.f32.mrf.mxu3  ;;  %v4449_v30 = vadd.f32 %v8845_v0, %v4173_v63 }
 0x538   : > { %v4794_v59 = vadd.f32 %v8735_v27, %v4758_v57 }
 0x539   : > { %v5044_v56 = vmax.f32 %v5012_v7, 0.0 }
 0x53a   : > { %v4865_v10 = vpop.f32.mrf.mxu2 }
 0x53b   : > { %5076 = vst.msk [vmem:[%s8755_s29 + $0x48] sm:$0xff] %vm546_vm1, %v5044_v56  ;;  %v4945_v55 = vmul.f32 %v8729_v11, %v4865_v10  ;;  %v4649_v46 = vpop.f32.mrf.mxu1  ;;  %v4391_v57 = vpop.f32.mrf.mxu0  ;;  %v4174_v10 = vadd.f32 %v8853_v40, %v8545_v53  ;;  %v4498_v40 = vld [vmem:[#allocation2 + $0x19a] sm:$0xff] }
 0x53c   : > { %v4723_v3 = vadd.f32 %v4649_v46, %v4447_v18  ;;  %v9523_v18 = vld [vmem:[#allocation19_spill] sm:$0xff] }
 0x53d   : > { %v4981_v5 = vadd.f32 %v8740_v4, %v4945_v55 }
 0x53e   : > { %5786 = vmatmul.msk.f32.gmra.mxu1 %vm546_vm1, %v4495_v1  ;;  %v4759_v51 = vmul.f32 %v8721_v14, %v4723_v3  ;;  %v4450_v1 = vadd.f32 %v8866_v29, %v4174_v10 }
 0x53f   : > { %v5013_v28 = vadd.f32 %v4981_v5, %v4794_v59  ;;  %5818 = vmatmul.msk.f32.gmra.mxu2 %vm546_vm1, %v9521_v16  ;;  %v4118_v59 = vpop.f32.mrf.mxu3  ;;  %v4175_v16 = vadd.f32 %v8873_v42, %v8561_v8  ;;  %v4499_v42 = vld [vmem:[#allocation2 + $0x1a2] sm:$0xff] }
 0x540   : > { %v4795_v49 = vadd.f32 %v8735_v27, %v4759_v51  ;;  %v9524_v51 = vld [vmem:[#allocation38_spill] sm:$0xff] }
 0x541   : > { %v5045_v31 = vmax.f32 %v5013_v28, 0.0 }
 0x542   : > { %v4868_v22 = vpop.f32.mrf.mxu2 }
 0x543   : > { %5077 = vst.msk [vmem:[%s8755_s29 + $0x50] sm:$0xff] %vm546_vm1, %v5045_v31  ;;  %v4946_v60 = vmul.f32 %v8729_v11, %v4868_v22  ;;  %v4652_v24 = vpop.f32.mrf.mxu1  ;;  %v4394_v22 = vpop.f32.mrf.mxu0 }
 0x544   : > { %v4724_v37 = vadd.f32 %v4652_v24, %v4448_v48 }
 0x545   : > { %v4982_v36 = vadd.f32 %v8740_v4, %v4946_v60 }
 0x546   : > { %5787 = vmatmul.msk.f32.gmra.mxu1 %vm546_vm1, %v8534_v15  ;;  %v4760_v52 = vmul.f32 %v8721_v14, %v4724_v37 }
 0x547   : > { %v5014_v47 = vadd.f32 %v4982_v36, %v4795_v49  ;;  %5819 = vmatmul.msk.f32.gmra.mxu2 %vm546_vm1, %v9522_v19  ;;  %v4451_v49 = vadd.f32 %v8883_v35, %v4175_v16  ;;  %v4121_v36 = vpop.f32.mrf.mxu3  ;;  %v4176_v19 = vadd.f32 %v8891_v6, %v8572_v38 }
 0x548   : > { %v4796_v9 = vadd.f32 %v8735_v27, %v4760_v52  ;;  %v9525_v52 = vld [vmem:[#allocation43_spill] sm:$0xff] }
 0x549   : > { %v5046_v54 = vmax.f32 %v5014_v47, 0.0 }
 0x54a   : > { %v4871_v2 = vpop.f32.mrf.mxu2 }
 0x54b   : > { %5078 = vst.msk [vmem:[%s8755_s29 + $0x58] sm:$0xff] %vm546_vm1, %v5046_v54  ;;  %v4947_v7 = vmul.f32 %v8729_v11, %v4871_v2  ;;  %v4655_v45 = vpop.f32.mrf.mxu1 }
 0x54c   : > { %v4725_v56 = vadd.f32 %v4655_v45, %v4449_v30 }
 0x54d   : > { %v4983_v15 = vadd.f32 %v8740_v4, %v4947_v7  ;;  %v4397_v7 = vpop.f32.mrf.mxu0 }
 0x54e   : > { %5788 = vmatmul.msk.f32.gmra.mxu1 %vm546_vm1, %v8550_v62  ;;  %v4761_v0 = vmul.f32 %v8721_v14, %v4725_v56 }
 0x54f   : > { %v5015_v55 = vadd.f32 %v4983_v15, %v4796_v9  ;;  %5820 = vmatmul.msk.f32.gmra.mxu2 %vm546_vm1, %v9523_v18  ;;  %v4452_v9 = vadd.f32 %v8903_v21, %v4176_v19  ;;  %v4124_v10 = vpop.f32.mrf.mxu3 }
 0x550   : > { %v4797_v26 = vadd.f32 %v8735_v27, %v4761_v0 }
 0x551   : > { %v5047_v46 = vmax.f32 %v5015_v55, 0.0  ;;  %v4177_v55 = vadd.f32 %v4115_v25, %v8583_v33  ;;  %v4178_v33 = vadd.f32 %v4118_v59, %v8594_v61  ;;  %v4179_v61 = vadd.f32 %v4121_v36, %v8605_v39 }
 0x552   : > { %v4874_v5 = vpop.f32.mrf.mxu2  ;;  %v4180_v39 = vadd.f32 %v4124_v10, %v8616_v23 }
 0x553   : > { %5079 = vst.msk [vmem:[%s8755_s29 + $0x60] sm:$0xff] %vm546_vm1, %v5047_v46  ;;  %v4948_v3 = vmul.f32 %v8729_v11, %v4874_v5  ;;  %v4658_v53 = vpop.f32.mrf.mxu1  ;;  %v4453_v21 = vadd.f32 %v4391_v57, %v4177_v55  ;;  %v4455_v19 = vadd.f32 %v4397_v7, %v4179_v61 }
 0x554   : > { %v4726_v28 = vadd.f32 %v4658_v53, %v4450_v1 }
 0x555   : > { %v4984_v62 = vadd.f32 %v8740_v4, %v4948_v3  ;;  %v4400_v1 = vpop.f32.mrf.mxu0 }
 0x556   : > { %5789 = vmatmul.msk.f32.gmra.mxu1 %vm546_vm1, %v4498_v40  ;;  %v4762_v29 = vmul.f32 %v8721_v14, %v4726_v28  ;;  %v4456_v7 = vadd.f32 %v4400_v1, %v4180_v39 }
 0x557   : > { %v5016_v31 = vadd.f32 %v4984_v62, %v4797_v26  ;;  %5821 = vmatmul.msk.f32.gmra.mxu2 %vm546_vm1, %v9524_v51  ;;  %v4127_v28 = vpop.f32.mrf.mxu3 }
 0x558   : > { %v4798_v37 = vadd.f32 %v8735_v27, %v4762_v29  ;;  %v4181_v23 = vadd.f32 %v4127_v28, %v8627_v50 }
 0x559   : > { %v5048_v60 = vmax.f32 %v5016_v31, 0.0 }
 0x55a   : > { %v4877_v48 = vpop.f32.mrf.mxu2 }
 0x55b   : > { %5080 = vst.msk [vmem:[%s8755_s29 + $0x68] sm:$0xff] %vm546_vm1, %v5048_v60  ;;  %v4949_v24 = vmul.f32 %v8729_v11, %v4877_v48  ;;  %v4661_v8 = vpop.f32.mrf.mxu1  ;;  %v4454_v60 = vadd.f32 %v4394_v22, %v4178_v33 }
 0x55c   : > { %v4727_v47 = vadd.f32 %v4661_v8, %v4451_v49 }
 0x55d   : > { %v4985_v63 = vadd.f32 %v8740_v4, %v4949_v24  ;;  %v4403_v8 = vpop.f32.mrf.mxu0 }
 0x55e   : > { %5790 = vmatmul.msk.f32.gmra.mxu1 %vm546_vm1, %v4499_v42  ;;  %v4763_v35 = vmul.f32 %v8721_v14, %v4727_v47 }
 0x55f   : > { %v5017_v54 = vadd.f32 %v4985_v63, %v4798_v37  ;;  %5822 = vmatmul.msk.f32.gmra.mxu2 %vm546_vm1, %v9525_v52  ;;  %v4130_v63 = vpop.f32.mrf.mxu3 }
 0x560   : > { %v4799_v38 = vadd.f32 %v8735_v27, %v4763_v35  ;;  %v4182_v50 = vadd.f32 %v4130_v63, %v8638_v12 }
 0x561   : > { %v5049_v2 = vmax.f32 %v5017_v54, 0.0 }
 0x562   : > { %v4880_v30 = vpop.f32.mrf.mxu2 }
 0x563   : > { %5081 = vst.msk [vmem:[%s8755_s29 + $0x70] sm:$0xff] %vm546_vm1, %v5049_v2  ;;  %v4950_v45 = vmul.f32 %v8729_v11, %v4880_v30  ;;  %v4664_v15 = vpop.f32.mrf.mxu1 }
 0x564   : > { %v4728_v56 = vadd.f32 %v4664_v15, %v4452_v9 }
 0x565   : > { %v4986_v6 = vadd.f32 %v8740_v4, %v4950_v45  ;;  %v4406_v30 = vpop.f32.mrf.mxu0 }
 0x566   : > { %v4764_v0 = vmul.f32 %v8721_v14, %v4728_v56 }
 0x567   : > { %v5018_v18 = vadd.f32 %v4986_v6, %v4799_v38  ;;  %v4133_v6 = vpop.f32.mrf.mxu3 }
 0x568   : > { %v4800_v40 = vadd.f32 %v8735_v27, %v4764_v0  ;;  %v4183_v12 = vadd.f32 %v4133_v6, %v8649_v44 }
 0x569   : > { %v5050_v46 = vmax.f32 %v5018_v18, 0.0 }
 0x56a   : > { %v4883_v5 = vpop.f32.mrf.mxu2 }
 0x56b   : > { %5082 = vst.msk [vmem:[%s8755_s29 + $0x78] sm:$0xff] %vm546_vm1, %v5050_v46  ;;  %v4951_v3 = vmul.f32 %v8729_v11, %v4883_v5  ;;  %v4667_v53 = vpop.f32.mrf.mxu1 }
 0x56c   : > { %v4729_v62 = vadd.f32 %v4667_v53, %v4453_v21  ;;  %v4457_v53 = vadd.f32 %v4403_v8, %v4181_v23 }
 0x56d   : > { %v4987_v26 = vadd.f32 %v8740_v4, %v4951_v3  ;;  %v4409_v3 = vpop.f32.mrf.mxu0 }
 0x56e   : > { %v4765_v31 = vmul.f32 %v8721_v14, %v4729_v62 }
 0x56f   : > { %v5019_v25 = vadd.f32 %v4987_v26, %v4800_v40 }
 0x570   : > { %v4801_v48 = vadd.f32 %v8735_v27, %v4765_v31 }
 0x571   : > { %v5051_v16 = vmax.f32 %v5019_v25, 0.0  ;;  %v4136_v25 = vpop.f32.mrf.mxu3 }
 0x572   : > { %v4886_v51 = vpop.f32.mrf.mxu2  ;;  %v4184_v44 = vadd.f32 %v4136_v25, %v8657_v13 }
 0x573   : > { %5083 = vst.msk [vmem:[%s8755_s29 + $0x80] sm:$0xff] %vm546_vm1, %v5051_v16  ;;  %v4952_v57 = vmul.f32 %v8729_v11, %v4886_v51  ;;  %v4670_v29 = vpop.f32.mrf.mxu1 }
 0x574   : > { %v4730_v49 = vadd.f32 %v4670_v29, %v4454_v60  ;;  %v4458_v60 = vadd.f32 %v4406_v30, %v4182_v50 }
 0x575   : > { %v4988_v24 = vadd.f32 %v8740_v4, %v4952_v57  ;;  %v4412_v29 = vpop.f32.mrf.mxu0 }
 0x576   : > { %v4766_v37 = vmul.f32 %v8721_v14, %v4730_v49 }
 0x577   : > { %v5020_v59 = vadd.f32 %v4988_v24, %v4801_v48 }
 0x578   : > { %v4802_v52 = vadd.f32 %v8735_v27, %v4766_v37 }
 0x579   : > { %v5052_v42 = vmax.f32 %v5020_v59, 0.0  ;;  %v4139_v59 = vpop.f32.mrf.mxu3 }
 0x57a   : > { %v4889_v47 = vpop.f32.mrf.mxu2  ;;  %v4185_v13 = vadd.f32 %v4139_v59, %v8665_v34 }
 0x57b   : > { %5084 = vst.msk [vmem:[%s8755_s29 + $0x88] sm:$0xff] %vm546_vm1, %v5052_v42  ;;  %v4953_v22 = vmul.f32 %v8729_v11, %v4889_v47  ;;  %v4673_v54 = vpop.f32.mrf.mxu1 }
 0x57c   : > { %v4731_v35 = vadd.f32 %v4673_v54, %v4455_v19 }
 0x57d   : > { %v4989_v2 = vadd.f32 %v8740_v4, %v4953_v22  ;;  %v4459_v22 = vadd.f32 %v4409_v3, %v4183_v12 }
 0x57e   : > { %v4767_v9 = vmul.f32 %v8721_v14, %v4731_v35  ;;  %v4415_v35 = vpop.f32.mrf.mxu0 }
 0x57f   : > { %v5021_v36 = vadd.f32 %v4989_v2, %v4802_v52  ;;  %v4461_v3 = vadd.f32 %v4415_v35, %v4185_v13 }
 0x580   : > { %v4803_v55 = vadd.f32 %v8735_v27, %v4767_v9 }
 0x581   : > { %v5053_v45 = vmax.f32 %v5021_v36, 0.0 }
 0x582   : > { %v4892_v15 = vpop.f32.mrf.mxu2 }
 0x583   : > { %5085 = vst.msk [vmem:[%s8755_s29 + $0x90] sm:$0xff] %vm546_vm1, %v5053_v45  ;;  %v4954_v38 = vmul.f32 %v8729_v11, %v4892_v15  ;;  %v4676_v56 = vpop.f32.mrf.mxu1  ;;  %v4142_v45 = vpop.f32.mrf.mxu3 }
 0x584   : > { %v4732_v46 = vadd.f32 %v4676_v56, %v4456_v7  ;;  %v4186_v34 = vadd.f32 %v4142_v45, %v8673_v58 }
 0x585   : > { %v4990_v18 = vadd.f32 %v8740_v4, %v4954_v38  ;;  %v4460_v38 = vadd.f32 %v4412_v29, %v4184_v44 }
 0x586   : > { %v4768_v5 = vmul.f32 %v8721_v14, %v4732_v46  ;;  %v4418_v46 = vpop.f32.mrf.mxu0 }
 0x587   : > { %v5022_v10 = vadd.f32 %v4990_v18, %v4803_v55 }
 0x588   : > { %v4804_v26 = vadd.f32 %v8735_v27, %v4768_v5 }
 0x589   : > { %v5054_v0 = vmax.f32 %v5022_v10, 0.0 }
 0x58a   : > { %v4895_v21 = vpop.f32.mrf.mxu2 }
 0x58b   : > { %5086 = vst.msk [vmem:[%s8755_s29 + $0x98] sm:$0xff] %vm546_vm1, %v5054_v0  ;;  %v4955_v1 = vmul.f32 %v8729_v11, %v4895_v21  ;;  %v4679_v40 = vpop.f32.mrf.mxu1  ;;  %v4145_v21 = vpop.f32.mrf.mxu3 }
 0x58c   : > { %v4733_v33 = vadd.f32 %v4679_v40, %v4457_v53  ;;  %v4187_v58 = vadd.f32 %v4145_v21, %v8683_v20 }
 0x58d   : > { %v4991_v62 = vadd.f32 %v8740_v4, %v4955_v1 }
 0x58e   : > { %v4769_v31 = vmul.f32 %v8721_v14, %v4733_v33  ;;  %v4421_v50 = vpop.f32.mrf.mxu0 }
 0x58f   : > { %v5023_v28 = vadd.f32 %v4991_v62, %v4804_v26  ;;  %v4463_v59 = vadd.f32 %v4421_v50, %v4187_v58 }
 0x590   : > { %v4805_v24 = vadd.f32 %v8735_v27, %v4769_v31  ;;  %v4462_v31 = vadd.f32 %v4418_v46, %v4186_v34 }
 0x591   : > { %v5055_v16 = vmax.f32 %v5023_v28, 0.0 }
 0x592   : > { %v4898_v51 = vpop.f32.mrf.mxu2 }
 0x593   : > { %5087 = vst.msk [vmem:[%s8755_s29 + $0xa0] sm:$0xff] %vm546_vm1, %v5055_v16  ;;  %v4956_v57 = vmul.f32 %v8729_v11, %v4898_v51  ;;  %v4682_v48 = vpop.f32.mrf.mxu1 }
 0x594   : > { %v4734_v8 = vadd.f32 %v4682_v48, %v4458_v60  ;;  %v4148_v48 = vpop.f32.mrf.mxu3 }
 0x595   : > { %v4992_v49 = vadd.f32 %v8740_v4, %v4956_v57  ;;  %v4188_v20 = vadd.f32 %v4148_v48, %v8693_v43 }
 0x596   : > { %v4770_v37 = vmul.f32 %v8721_v14, %v4734_v8 }
 0x597   : > { %v5024_v61 = vadd.f32 %v4992_v49, %v4805_v24 }
 0x598   : > { %v4806_v54 = vadd.f32 %v8735_v27, %v4770_v37 }
 0x599   : > { %v5056_v42 = vmax.f32 %v5024_v61, 0.0 }
 0x59a   : > { %v4901_v63 = vpop.f32.mrf.mxu2 }
 0x59b   : > { %5088 = vst.msk [vmem:[%s8755_s29 + $0xa8] sm:$0xff] %vm546_vm1, %v5056_v42  ;;  %v4957_v47 = vmul.f32 %v8729_v11, %v4901_v63  ;;  %v4685_v19 = vpop.f32.mrf.mxu1  ;;  %v4424_v42 = vpop.f32.mrf.mxu0 }
 0x59c   : > { %v4735_v2 = vadd.f32 %v4685_v19, %v4459_v22 }
 0x59d   : > { %v4993_v52 = vadd.f32 %v8740_v4, %v4957_v47 }
 0x59e   : > { %v4771_v30 = vmul.f32 %v8721_v14, %v4735_v2 }
 0x59f   : > { %v5025_v39 = vadd.f32 %v4993_v52, %v4806_v54  ;;  %v4151_v54 = vpop.f32.mrf.mxu3 }
 0x5a0   : > { %v4807_v6 = vadd.f32 %v8735_v27, %v4771_v30  ;;  %v4189_v43 = vadd.f32 %v4151_v54, %v8701_v41 }
 0x5a1   : > { %v5057_v36 = vmax.f32 %v5025_v39, 0.0  ;;  %v4464_v39 = vadd.f32 %v4424_v42, %v4188_v20 }
 0x5a2   : > { %v4904_v9 = vpop.f32.mrf.mxu2 }
 0x5a3   : > { %5089 = vst.msk [vmem:[%s8755_s29 + $0xb0] sm:$0xff] %vm546_vm1, %v5057_v36  ;;  %v4958_v15 = vmul.f32 %v8729_v11, %v4904_v9  ;;  %v4688_v7 = vpop.f32.mrf.mxu1 }
 0x5a4   : > { %v4736_v55 = vadd.f32 %v4688_v7, %v4460_v38 }
 0x5a5   : > { %v4994_v56 = vadd.f32 %v8740_v4, %v4958_v15  ;;  %v4427_v15 = vpop.f32.mrf.mxu0 }
 0x5a6   : > { %v4772_v10 = vmul.f32 %v8721_v14, %v4736_v55 }
 0x5a7   : > { %v5026_v18 = vadd.f32 %v4994_v56, %v4807_v6  ;;  %v4154_v56 = vpop.f32.mrf.mxu3 }
 0x5a8   : > { %v4808_v53 = vadd.f32 %v8735_v27, %v4772_v10  ;;  %v4190_v41 = vadd.f32 %v4154_v56, %v8709_v32 }
 0x5a9   : > { %v5058_v23 = vmax.f32 %v5026_v18, 0.0  ;;  %v4465_v18 = vadd.f32 %v4427_v15, %v4189_v43 }
 0x5aa   : > { %v4907_v0 = vpop.f32.mrf.mxu2 }
 0x5ab   : > { %5090 = vst.msk [vmem:[%s8755_s29 + $0xb8] sm:$0xff] %vm546_vm1, %v5058_v23  ;;  %v4959_v5 = vmul.f32 %v8729_v11, %v4907_v0  ;;  %v4691_v1 = vpop.f32.mrf.mxu1 }
 0x5ac   : > { %v4737_v26 = vadd.f32 %v4691_v1, %v4461_v3 }
 0x5ad   : > { %v4995_v40 = vadd.f32 %v8740_v4, %v4959_v5  ;;  %v4430_v5 = vpop.f32.mrf.mxu0 }
 0x5ae   : > { %v4773_v25 = vmul.f32 %v8721_v14, %v4737_v26 }
 0x5af   : > { %v5027_v62 = vadd.f32 %v4995_v40, %v4808_v53  ;;  %v4466_v40 = vadd.f32 %v4430_v5, %v4190_v41  ;;  %v4157_v34 = vpop.f32.mrf.mxu3 }
 0x5b0   : > { %v4809_v57 = vadd.f32 %v8735_v27, %v4773_v25  ;;  %v4191_v32 = vadd.f32 %v4157_v34, %v8715_v17 }
 0x5b1   : > { %v5059_v33 = vmax.f32 %v5027_v62, 0.0 }
 0x5b2   : > { %v4910_v28 = vpop.f32.mrf.mxu2 }
 0x5b3   : > { %5091 = vst.msk [vmem:[%s8755_s29 + $0xc0] sm:$0xff] %vm546_vm1, %v5059_v33  ;;  %v4960_v16 = vmul.f32 %v8729_v11, %v4910_v28  ;;  %v4694_v51 = vpop.f32.mrf.mxu1 }
 0x5b4   : > { %v4738_v29 = vadd.f32 %v4694_v51, %v4462_v31 }
 0x5b5   : > { %v4996_v60 = vadd.f32 %v8740_v4, %v4960_v16  ;;  %v4433_v16 = vpop.f32.mrf.mxu0 }
 0x5b6   : > { %v4774_v8 = vmul.f32 %v8721_v14, %v4738_v29 }
 0x5b7   : > { %v5028_v24 = vadd.f32 %v4996_v60, %v4809_v57  ;;  %v4467_v60 = vadd.f32 %v4433_v16, %v4191_v32 }
 0x5b8   : > { %v4810_v63 = vadd.f32 %v8735_v27, %v4774_v8 }
 0x5b9   : > { %v5060_v49 = vmax.f32 %v5028_v24, 0.0 }
 0x5ba   : > { %v4913_v12 = vpop.f32.mrf.mxu2 }
 0x5bb   : > { %5092 = vst.msk [vmem:[%s8755_s29 + $0xc8] sm:$0xff] %vm546_vm1, %v5060_v49  ;;  %v4961_v61 = vmul.f32 %v8729_v11, %v4913_v12  ;;  %v4697_v37 = vpop.f32.mrf.mxu1 }
 0x5bc   : > { %v4739_v22 = vadd.f32 %v4697_v37, %v4463_v59 }
 0x5bd   : > { %v4997_v47 = vadd.f32 %v8740_v4, %v4961_v61 }
 0x5be   : > { %v4775_v2 = vmul.f32 %v8721_v14, %v4739_v22 }
 0x5bf   : > { %v5029_v19 = vadd.f32 %v4997_v47, %v4810_v63 }
 0x5c0   : > { %v4811_v30 = vadd.f32 %v8735_v27, %v4775_v2 }
 0x5c1   : > { %v5061_v52 = vmax.f32 %v5029_v19, 0.0 }
 0x5c2   : > { %v4916_v35 = vpop.f32.mrf.mxu2 }
 0x5c3   : > { %5093 = vst.msk [vmem:[%s8755_s29 + $0xd0] sm:$0xff] %vm546_vm1, %v5061_v52  ;;  %v4962_v44 = vmul.f32 %v8729_v11, %v4916_v35  ;;  %v4700_v36 = vpop.f32.mrf.mxu1 }
 0x5c4   : > { %v4740_v9 = vadd.f32 %v4700_v36, %v4464_v39 }
 0x5c5   : > { %v4998_v45 = vadd.f32 %v8740_v4, %v4962_v44 }
 0x5c6   : > { %v4776_v6 = vmul.f32 %v8721_v14, %v4740_v9 }
 0x5c7   : > { %v5030_v38 = vadd.f32 %v4998_v45, %v4811_v30 }
 0x5c8   : > { %v4812_v23 = vadd.f32 %v8735_v27, %v4776_v6 }
 0x5c9   : > { %v5062_v7 = vmax.f32 %v5030_v38, 0.0 }
 0x5ca   : > { %v4919_v55 = vpop.f32.mrf.mxu2 }
 0x5cb   : > { %5094 = vst.msk [vmem:[%s8755_s29 + $0xd8] sm:$0xff] %vm546_vm1, %v5062_v7  ;;  %v4963_v13 = vmul.f32 %v8729_v11, %v4919_v55  ;;  %v4703_v46 = vpop.f32.mrf.mxu1 }
 0x5cc   : > { %v4741_v0 = vadd.f32 %v4703_v46, %v4465_v18 }
 0x5cd   : > { %v4999_v10 = vadd.f32 %v8740_v4, %v4963_v13 }
 0x5ce   : > { %v4777_v1 = vmul.f32 %v8721_v14, %v4741_v0 }
 0x5cf   : > { %v5031_v3 = vadd.f32 %v4999_v10, %v4812_v23 }
 0x5d0   : > { %v4813_v33 = vadd.f32 %v8735_v27, %v4777_v1 }
 0x5d1   : > { %v5063_v21 = vmax.f32 %v5031_v3, 0.0 }
 0x5d2   : > { %v4922_v53 = vpop.f32.mrf.mxu2 }
 0x5d3   : > { %5095 = vst.msk [vmem:[%s8755_s29 + $0xe0] sm:$0xff] %vm546_vm1, %v5063_v21  ;;  %v4964_v26 = vmul.f32 %v8729_v11, %v4922_v53  ;;  %v4706_v62 = vpop.f32.mrf.mxu1 }
 0x5d4   : > { %v4742_v50 = vadd.f32 %v4706_v62, %v4466_v40 }
 0x5d5   : > { %v5000_v25 = vadd.f32 %v8740_v4, %v4964_v26 }
 0x5d6   : > { %v4778_v51 = vmul.f32 %v8721_v14, %v4742_v50 }
 0x5d7   : > { %v5032_v28 = vadd.f32 %v5000_v25, %v4813_v33 }
 0x5d8   : > { %v4814_v58 = vadd.f32 %v8735_v27, %v4778_v51 }
 0x5d9   : > { %v5064_v31 = vmax.f32 %v5032_v28, 0.0 }
 0x5da   : > { %v4925_v57 = vpop.f32.mrf.mxu2 }
 0x5db   : > { %5096 = vst.msk [vmem:[%s8755_s29 + $0xe8] sm:$0xff] %vm546_vm1, %v5064_v31  ;;  %v4965_v29 = vmul.f32 %v8729_v11, %v4925_v57  ;;  %v4709_v48 = vpop.f32.mrf.mxu1 }
 0x5dc   : > { %v4743_v49 = vadd.f32 %v4709_v48, %v4467_v60 }
 0x5dd   : > { %v5001_v24 = vadd.f32 %v8740_v4, %v4965_v29 }
 0x5de   : > { %v4779_v12 = vmul.f32 %v8721_v14, %v4743_v49 }
 0x5df   : > { %v5033_v17 = vadd.f32 %v5001_v24, %v4814_v58 }
 0x5e0   : > { %v4815_v42 = vadd.f32 %v8735_v27, %v4779_v12 }
 0x5e1   : > { %v5065_v8 = vmax.f32 %v5033_v17, 0.0 }
 0x5e2   : > { %v4928_v61 = vpop.f32.mrf.mxu2 }
 0x5e3   : > { %5097 = vst.msk [vmem:[%s8755_s29 + $0xf0] sm:$0xff] %vm546_vm1, %v5065_v8  ;;  %v4966_v59 = vmul.f32 %v8729_v11, %v4928_v61 }
 0x5e5   : > { %v5002_v37 = vadd.f32 %v8740_v4, %v4966_v59 }
 0x5e7   : > { %v5034_v63 = vadd.f32 %v5002_v37, %v4815_v42 }
 0x5e9   : > { %v5066_v14 = vmax.f32 %v5034_v63, 0.0 }
 0x5eb   : > { %5098 = vst.msk [vmem:[%s8755_s29 + $0xf8] sm:$0xff] %vm546_vm1, %v5066_v14 }
 0x5ec   : > { %5923 = shalt.err (!%p5920_p3)
}
 0x5ed   : > { %s5961_s27 = smov 128   ;;  %s5962_s29 = smov 8  }
 0x5ee   : > { %5836 = dma.vmem_to_hbm [thread:$0]  (%p6056_p5), %s5113_s20, 4096, %s5115_s17, %s5100_s21, %s5961_s27, %s5961_s27, %s5962_s29  }
 0x5ef PF: > { %p5842_p4 = scmp.ge.s32.totalorder %s5958_s16, 2  ;;  %s5129_s28 = sand.u32 1, %s5946_s13  }
 0x5f0   : > { %s5130_s30 = scalar_lea.sflag [#allocation4], %s5129_s28 }
 0x5f1   : > { %p5839_p7 = pnand %p5842_p4, %p6060_p6 }
 0x5f3   : > { %p5840_p8 = pneg %p5839_p7 }
 0x5f5   : > { %5941 = dma.done.wait (%p5840_p8), %s5130_s30, 4096  }
 0x5f6   : > { %5943 = vsyncadd (%p5840_p8), %s5130_s30, 4294963200  ;;  %p20_p9 = scmp.ge.s32.totalorder %s6043_s19, 4   ;;  %s9526_s13 = smov %s5950_s14 }
 0x5f7   : > { %s9527_s14 = smov %s5954_s15  ;;  %s9528_s15 = smov %s6054_s22 }
 0x5f8   : > { %s9529_s16 = smov %s6043_s19  ;;  %22 = sbr.rel (!%p20_p9) target bundleno = 3 (0x3), region = 113 }
 0x5fd   :  { %5136 = vsyncpa [#allocation4], 1 }
 0x5fe   :  { %5138 = vsyncpa [#allocation4 + $0x1], 1 }

</bundles_post_ra>
